<compile_context>
chip_gen: v6e
topology: v6e:2x2x1
jax: 0.10.0
libtpu: 0.0.40
codegen_flags: <defaults>
</compile_context>

<pallas_src>
import jax
import jax.numpy as jnp
from jax.experimental import pallas as pl
from jax.experimental.pallas import tpu as pltpu

EPS = 1e-5          # nn.InstanceNorm2d default epsilon
LANE = 128          # TPU lane width; all channel axes zero-padded to this


def _round_up(x, m):
    return ((x + m - 1) // m) * m


def _mxu_is_256():
    # 256x256 MXU on v6e / v7x; 128x128 on v5e and older.
    try:
        kind = jax.devices()[0].device_kind.lower()
    except Exception:
        return True
    return not any(t in kind for t in ("v2", "v3", "v4", "v5"))


def _pick_batch_tile(n, max_tile=8):
    """Largest divisor of n <= max_tile, keeping >=2 grid steps when n > 1 so
    both v7x TensorCores get work under dimension_semantics=('parallel',)."""
    best = 1
    for bt in range(1, min(n, max_tile) + 1):
        if n % bt:
            continue
        if n > 1 and n // bt < 2:
            continue
        best = bt
    return best


# ------------------------------ fused block kernel ---------------------------

def _build_block_kernel(*, S, L, Wp, OFF, scratch_rows, inv_m, B_tile,
                        first_im2col, res_mode, with_classifier, pair_taps):
    """One kernel = one MONAI ResidualUnit (B_tile samples per grid step)."""
    taps = [dh * Wp + dw for dh in (-1, 0, 1) for dw in (-1, 0, 1)]
    TPC = 5 if pair_taps else 9            # weight tiles per 3x3 conv
    # suffix zero strip starts on an 8-aligned row (any overlapped interior rows
    # are rewritten by the per-sample interior store before they are read).
    suf_start = ((OFF + L) // 8) * 8
    suf_len = scratch_rows - suf_start

    def conv3x3(hs_ref, wsub_ref, base):
        # 3x3 stride-1 conv over the padded-flat slab held in the halo scratch.
        acc = jnp.zeros((L, LANE), jnp.float32)
        if pair_taps:
            # v6e/v7x: pair taps along K -> five (L,256)x(256,128) MXU GEMMs.
            for p in range(5):
                t0, t1 = 2 * p, 2 * p + 1
                x0 = hs_ref[pl.ds(OFF + taps[t0], L), :].astype(jnp.bfloat16)
                if t1 <= 8:
                    x1 = hs_ref[pl.ds(OFF + taps[t1], L), :].astype(jnp.bfloat16)
                else:
                    x1 = x0          # dummy half, paired with a zero weight
                xs = jnp.concatenate([x0, x1], axis=-1)          # (L, 256)
                acc = acc + jnp.dot(xs, wsub_ref[base + p],
                                    preferred_element_type=jnp.float32)
        else:
            # v5e: nine (L,128)x(128,128) GEMMs (perfect 128x128-MXU fit).
            for t in range(9):
                xs = hs_ref[pl.ds(OFF + taps[t], L), :].astype(jnp.bfloat16)
                acc = acc + jnp.dot(xs, wsub_ref[base + t],
                                    preferred_element_type=jnp.float32)
        return acc

    def norm_act_mask(y, mask, alpha):
        # InstanceNorm (biased var, affine=False) over interior pixels with
        # one-pass statistics, then PReLU; re-zero the border rows so they
        # keep acting as the next conv's padding.
        ym = y * mask
        s1 = jnp.sum(ym, axis=0, keepdims=True)
        s2 = jnp.sum(ym * ym, axis=0, keepdims=True)
        mu = s1 * inv_m
        var = jnp.maximum(s2 * inv_m - mu * mu, 0.0)
        yn = (y - mu) * jax.lax.rsqrt(var + EPS)
        act = jnp.where(yn >= 0.0, yn, alpha * yn)
        return act * mask

    def kernel(*refs):
        it = iter(refs)
        if first_im2col:
            p0_ref = next(it)                 # (B, L, K0P) bf16 im2col patches
            pr_ref = next(it)                 # (B, L, KrP) bf16 residual patches
        else:
            x_ref = next(it)                  # (B, L, LANE) bf16 input slab
        mask_ref = next(it)                   # (L, 1) f32 interior mask
        if first_im2col:
            w0_ref = next(it)                 # (K0P, LANE) bf16
        if res_mode in ("patches", "gemm"):
            wr_ref = next(it)                 # residual weight bf16
            br_ref = next(it)                 # (1, LANE) f32
        wsub_ref = next(it)                   # (n_tiles, K_tap, LANE) bf16
        bsub_ref = next(it)                   # (S, LANE) f32
        alpha_ref = next(it)                  # (S,) f32 in SMEM
        if with_classifier:
            wl_ref = next(it)                 # (LANE, NCp) bf16
            bl_ref = next(it)                 # (1, NCp) f32
        o_ref = next(it)
        hs_ref = next(it)                     # VMEM halo scratch, f32

        mask = mask_ref[...]

        # Zero only the prefix/suffix halo strips; the interior [OFF, OFF+L) is
        # fully overwritten by every subunit's masked store.  Runs every grid
        # step (scratch persists across steps on a core).
        hs_ref[pl.ds(0, OFF), :] = jnp.zeros((OFF, LANE), jnp.float32)
        hs_ref[pl.ds(suf_start, suf_len), :] = jnp.zeros((suf_len, LANE),
                                                         jnp.float32)

        for b in range(B_tile):               # unrolled batch-tile loop
            # ---- residual branch (never leaves VMEM) ----
            if res_mode == "patches":         # k x k strided residual conv
                res = (jnp.dot(pr_ref[b], wr_ref[...],
                               preferred_element_type=jnp.float32)
                       + br_ref[...]) * mask
            elif res_mode == "gemm":          # 1x1 stride-1 residual conv
                res = (jnp.dot(x_ref[b], wr_ref[...],
                               preferred_element_type=jnp.float32)
                       + br_ref[...]) * mask
            else:                             # identity residual
                res = x_ref[b].astype(jnp.float32)   # borders already zero

            # ---- subunit 0 ----
            if first_im2col:
                y = jnp.dot(p0_ref[b], w0_ref[...],
                            preferred_element_type=jnp.float32)
                wbase = 0
            else:
                hs_ref[pl.ds(OFF, L), :] = x_ref[b].astype(jnp.float32)
                y = conv3x3(hs_ref, wsub_ref, 0)
                wbase = TPC
            y = norm_act_mask(y + bsub_ref[0:1, :], mask, alpha_ref[0])

            # ---- remaining subunits: 3x3 s1 convs on the VMEM halo slab ----
            for si in range(1, S):
                hs_ref[pl.ds(OFF, L), :] = y
                y = conv3x3(hs_ref, wsub_ref, wbase)
                y = norm_act_mask(y + bsub_ref[si:si + 1, :], mask,
                                  alpha_ref[si])
                wbase += TPC

            out = y + res

            if with_classifier:
                # fused AdaptiveAvgPool2d((1,1)) + Linear (border rows are 0).
                pooled = jnp.sum(out, axis=0, keepdims=True) * inv_m   # (1,LANE)
                logits = jnp.dot(pooled.astype(jnp.bfloat16), wl_ref[...],
                                 preferred_element_type=jnp.float32) + bl_ref[...]
                o_ref[b] = logits
            else:
                o_ref[b] = out.astype(jnp.bfloat16)   # bf16 inter-block slab

    return kernel


# --------------------------------- glue --------------------------------------

def _im2col(x, k, stride, pad):
    # x: (N, H, W, C) -> (N, Ho, Wo, k*k*C), ordering (kh, kw, cin)
    if pad:
        x = jnp.pad(x, ((0, 0), (pad, pad), (pad, pad), (0, 0)))
    N, Hq, Wq, C = x.shape
    Ho = (Hq - k) // stride + 1
    Wo = (Wq - k) // stride + 1
    cols = []
    for kh in range(k):
        for kw in range(k):
            cols.append(x[:, kh:kh + stride * (Ho - 1) + 1:stride,
                           kw:kw + stride * (Wo - 1) + 1:stride, :])
    return jnp.concatenate(cols, axis=-1), Ho, Wo


def _embed_pflat(a, Ho, Wo, Wp):
    # (N,Ho,Wo,C) -> (N,(Ho+2)*Wp,C): 1-pixel zero border top/bottom/left, and
    # the rows are right-padded out to Wp columns so the dh row-shifts in the
    # halo slab stay 8-sublane aligned.
    a = jnp.pad(a, ((0, 0), (1, 1), (1, Wp - Wo - 1), (0, 0)))
    return a.reshape(a.shape[0], (Ho + 2) * Wp, a.shape[-1])


def _pad_last(a, target):
    d = target - a.shape[-1]
    if d > 0:
        a = jnp.pad(a, [(0, 0)] * (a.ndim - 1) + [(0, d)])
    return a


def _interior_mask(Ho, Wo, Wp):
    m = jnp.zeros((Ho + 2, Wp), jnp.float32).at[1:Ho + 1, 1:Wo + 1].set(1.0)
    return m.reshape((Ho + 2) * Wp, 1)


def _w_gemm(w, kp, cp):
    # conv weight (Cout, Cin, KH, KW) -> im2col GEMM matrix (kp, cp), (kh,kw,cin)
    cout, cin, kh, kw = w.shape
    wm = jnp.transpose(w, (2, 3, 1, 0)).reshape(kh * kw * cin, cout)
    wm = jnp.pad(wm, ((0, kp - kh * kw * cin), (0, cp - cout)))
    return wm.astype(jnp.bfloat16)


def _w_taps(w, cp_in, cp_out, pair_taps):
    # (Cout,Cin,3,3) -> per-tap GEMM blocks, tap order (kh, kw).
    # paired:   (5, 2*cp_in, cp_out): taps (2p, 2p+1) stacked along K, a 10th
    #           all-zero tap makes the last pair's dummy half inert.
    # unpaired: (9, cp_in, cp_out)
    cout, cin, kh, kw = w.shape
    wt = jnp.transpose(w, (2, 3, 1, 0)).reshape(kh * kw, cin, cout)
    wt = jnp.pad(wt, ((0, 0), (0, cp_in - cin), (0, cp_out - cout)))
    if pair_taps:
        wt = jnp.pad(wt, ((0, 1), (0, 0), (0, 0)))
        wt = wt.reshape(5, 2 * cp_in, cp_out)
    return wt.astype(jnp.bfloat16)


def run_residual_block(bi, blk, x, geom, classifier=None):
    """bi==0: x is NHWC input (N,H,W,Cin).  bi>0: x is a padded-flat bf16 slab
    (N, L, LANE) from the previous block.  Returns (slab_or_logits, geom)."""
    subs = blk["subunits"]
    S = len(subs)
    s0 = subs[0]
    assert s0["w"].shape[0] <= LANE, "demo kernel assumes channel counts <= 128"
    first_im2col = (bi == 0)
    pair_taps = _mxu_is_256()
    TPC = 5 if pair_taps else 9
    K_tap = 2 * LANE if pair_taps else LANE

    if first_im2col:
        assert "residual" in blk
        assert all(su["stride"] == 1 and su["k"] == 3 for su in subs[1:])
        N, _, _, cin = x.shape
        p_raw, Ho, Wo = _im2col(x, s0["k"], s0["stride"], s0["pad"])
        Wp = _round_up(Wo + 2, 8)
        K0P = _round_up(s0["k"] * s0["k"] * cin, LANE)
        p0 = _pad_last(_embed_pflat(p_raw, Ho, Wo, Wp), K0P).astype(jnp.bfloat16)
        r = blk["residual"]
        pr_raw, _, _ = _im2col(x, r["k"], r["stride"], r["pad"])
        KrP = _round_up(r["k"] * r["k"] * cin, LANE)
        pr = _pad_last(_embed_pflat(pr_raw, Ho, Wo, Wp), KrP).astype(jnp.bfloat16)
        res_mode = "patches"
    else:
        assert all(su["stride"] == 1 and su["k"] == 3 for su in subs)
        N = x.shape[0]
        Ho, Wo = geom
        Wp = _round_up(Wo + 2, 8)
        res_mode = "gemm" if "residual" in blk else "identity"

    Hp = Ho + 2
    L = Hp * Wp
    OFF = _round_up(Wp + 1, 8)
    scratch_rows = _round_up(OFF + L + Wp + 1, 8)
    inv_m = 1.0 / float(Ho * Wo)
    B_tile = _pick_batch_tile(N)

    mask = _interior_mask(Ho, Wo, Wp)
    inner_subs = subs[1:] if first_im2col else subs
    if inner_subs:
        wsub = jnp.concatenate(
            [_w_taps(su["w"], LANE, LANE, pair_taps) for su in inner_subs], axis=0)
    else:
        wsub = jnp.zeros((TPC, K_tap, LANE), jnp.bfloat16)   # unused placeholder
    bsub = jnp.stack([_pad_last(su["b"], LANE) for su in subs],
                     axis=0).astype(jnp.float32)
    alphas = jnp.asarray([su["alpha"] for su in subs], jnp.float32)

    args = []
    in_specs = []
    flops = 0
    if first_im2col:
        args += [p0, pr]
        in_specs += [pl.BlockSpec((B_tile, L, K0P), lambda n: (n, 0, 0)),
                     pl.BlockSpec((B_tile, L, KrP), lambda n: (n, 0, 0))]
        flops += 2 * L * (K0P + KrP) * LANE
    else:
        args += [x]
        in_specs += [pl.BlockSpec((B_tile, L, LANE), lambda n: (n, 0, 0))]
        if res_mode == "gemm":
            flops += 2 * L * LANE * LANE
    args += [mask]
    in_specs += [pl.BlockSpec((L, 1), lambda n: (0, 0))]
    if first_im2col:
        args += [_w_gemm(s0["w"], K0P, LANE)]
        in_specs += [pl.BlockSpec((K0P, LANE), lambda n: (0, 0))]
    if res_mode == "patches":
        r = blk["residual"]
        args += [_w_gemm(r["w"], KrP, LANE),
                 _pad_last(r["b"].reshape(1, -1), LANE).astype(jnp.float32)]
        in_specs += [pl.BlockSpec((KrP, LANE), lambda n: (0, 0)),
                     pl.BlockSpec((1, LANE), lambda n: (0, 0))]
    elif res_mode == "gemm":
        r = blk["residual"]
        args += [_w_gemm(r["w"], LANE, LANE),
                 _pad_last(r["b"].reshape(1, -1), LANE).astype(jnp.float32)]
        in_specs += [pl.BlockSpec((LANE, LANE), lambda n: (0, 0)),
                     pl.BlockSpec((1, LANE), lambda n: (0, 0))]
    args += [wsub, bsub, alphas]
    in_specs += [pl.BlockSpec(wsub.shape, lambda n: (0, 0, 0)),
                 pl.BlockSpec((S, LANE), lambda n: (0, 0)),
                 pl.BlockSpec(memory_space=pltpu.MemorySpace.SMEM)]
    flops += len(inner_subs) * 9 * 2 * L * LANE * LANE + S * 8 * L * LANE

    with_classifier = classifier is not None
    if with_classifier:
        wl = classifier["w"]                              # (num_classes, C_last)
        nc = wl.shape[0]
        NCp = _round_up(nc, LANE)
        wl_p = jnp.pad(jnp.transpose(wl),
                       ((0, LANE - wl.shape[1]), (0, NCp - nc))).astype(jnp.bfloat16)
        bl_p = _pad_last(classifier["b"].reshape(1, -1), NCp).astype(jnp.float32)
        args += [wl_p, bl_p]
        in_specs += [pl.BlockSpec((LANE, NCp), lambda n: (0, 0)),
                     pl.BlockSpec((1, NCp), lambda n: (0, 0))]
        flops += 2 * LANE * NCp
        out_shape = jax.ShapeDtypeStruct((N, 1, NCp), jnp.float32)
        out_specs = pl.BlockSpec((B_tile, 1, NCp), lambda n: (n, 0, 0))
        out_bytes = N * NCp * 4
    else:
        # inter-block slabs live in HBM as bf16 (halves the round trip)
        out_shape = jax.ShapeDtypeStruct((N, L, LANE), jnp.bfloat16)
        out_specs = pl.BlockSpec((B_tile, L, LANE), lambda n: (n, 0, 0))
        out_bytes = N * L * LANE * 2

    bytes_accessed = int(sum(int(a.size) * a.dtype.itemsize for a in args)) + out_bytes
    cost = pl.CostEstimate(flops=int(N * flops),
                           transcendentals=int(N * S * LANE),
                           bytes_accessed=int(bytes_accessed))

    kernel = _build_block_kernel(S=S, L=L, Wp=Wp, OFF=OFF,
                                 scratch_rows=scratch_rows, inv_m=inv_m,
                                 B_tile=B_tile, first_im2col=first_im2col,
                                 res_mode=res_mode,
                                 with_classifier=with_classifier,
                                 pair_taps=pair_taps)

    out = pl.pallas_call(
        kernel,
        out_shape=out_shape,
        grid=(N // B_tile,),
        in_specs=in_specs,
        out_specs=out_specs,
        scratch_shapes=[pltpu.VMEM((scratch_rows, LANE), jnp.float32)],
        compiler_params=pltpu.CompilerParams(dimension_semantics=("parallel",)),
        cost_estimate=cost,
    )(*args)
    return out, (Ho, Wo)


# ------------------------------ parameters -----------------------------------

def init_params(key, num_classes, in_channels, initial_filters, num_blocks):
    params = {"blocks": []}
    keys = jax.random.split(key, 64)
    ki = 0
    c_in = in_channels
    for i in range(num_blocks):
        c_out = initial_filters * 2 ** i
        stride = 2 if i == 0 else 1
        subunits = 2 if i == 0 else 3
        blk = {"subunits": []}
        sc = c_in
        for su in range(subunits):
            s = stride if su == 0 else 1
            w = 0.1 * jax.random.normal(keys[ki], (c_out, sc, 3, 3), jnp.float32); ki += 1
            b = 0.01 * jax.random.normal(keys[ki], (c_out,), jnp.float32); ki += 1
            blk["subunits"].append(
                {"w": w, "b": b, "alpha": 0.25, "stride": s, "k": 3, "pad": 1})
            sc = c_out
        if stride != 1 or c_in != c_out:
            rk, rpad = (3, 1) if stride != 1 else (1, 0)
            wr = 0.1 * jax.random.normal(keys[ki], (c_out, c_in, rk, rk), jnp.float32); ki += 1
            br = 0.01 * jax.random.normal(keys[ki], (c_out,), jnp.float32); ki += 1
            blk["residual"] = {"w": wr, "b": br, "stride": stride, "k": rk, "pad": rpad}
        params["blocks"].append(blk)
        c_in = c_out
    wl = 0.1 * jax.random.normal(keys[ki], (num_classes, c_in), jnp.float32); ki += 1
    bl = 0.01 * jax.random.normal(keys[ki], (num_classes,), jnp.float32)
    params["linear"] = {"w": wl, "b": bl}
    return params


# ----------------------------- forward (Pallas) -------------------------------

def flexresnet_forward(params, x_nchw, min_size):
    N, C, H, W = x_nchw.shape
    pad_h = max(0, min_size - H)
    pad_w = max(0, min_size - W)
    if pad_h or pad_w:
        x_nchw = jnp.pad(x_nchw, ((0, 0), (0, 0), (0, pad_h), (0, pad_w)))
    x = jnp.transpose(x_nchw, (0, 2, 3, 1)).astype(jnp.float32)   # NHWC

    nblk = len(params["blocks"])
    num_classes = params["linear"]["w"].shape[0]
    cur, geom = x, None
    for bi, blk in enumerate(params["blocks"]):
        cls = params["linear"] if bi == nblk - 1 else None
        cur, geom = run_residual_block(bi, blk, cur, geom, classifier=cls)
    # the last block's kernel fused pooling + classifier: cur is (N, 1, NCp)
    return cur[:, 0, :num_classes]


# -------------------------- pure-JAX reference --------------------------------

def conv_ref(x, w, b, stride, pad):
    return jax.lax.conv_general_dilated(
        x, jnp.transpose(w, (2, 3, 1, 0)), (stride, stride),
        [(pad, pad), (pad, pad)],
        dimension_numbers=("NHWC", "HWIO", "NHWC"),
        precision=jax.lax.Precision.HIGHEST) + b


def in_prelu_ref(y, alpha):
    mu = jnp.mean(y, axis=(1, 2), keepdims=True)
    var = jnp.mean((y - mu) ** 2, axis=(1, 2), keepdims=True)
    y = (y - mu) / jnp.sqrt(var + EPS)
    return jnp.where(y >= 0.0, y, alpha * y)


def forward_ref(params, x_nchw, min_size):
    N, C, H, W = x_nchw.shape
    pad_h = max(0, min_size - H)
    pad_w = max(0, min_size - W)
    if pad_h or pad_w:
        x_nchw = jnp.pad(x_nchw, ((0, 0), (0, 0), (0, pad_h), (0, pad_w)))
    x = jnp.transpose(x_nchw, (0, 2, 3, 1))
    for blk in params["blocks"]:
        if "residual" in blk:
            r = blk["residual"]
            res = conv_ref(x, r["w"], r["b"], r["stride"], r["pad"])
        else:
            res = x
        cx = x
        for su in blk["subunits"]:
            cx = conv_ref(cx, su["w"], su["b"], su["stride"], su["pad"])
            cx = in_prelu_ref(cx, su["alpha"])
        x = cx + res
    pooled = jnp.mean(x, axis=(1, 2))
    return jnp.dot(pooled, params["linear"]["w"].T,
                   precision=jax.lax.Precision.HIGHEST) + params["linear"]["b"]


# ---------------------------------- main ---------------------------------------

if __name__ == "__main__":
    num_classes = 3
    in_channels = 1
    min_size = 16          # small FlexResNet config for the demo
    initial_filters = 8
    num_blocks = 2

    key = jax.random.PRNGKey(0)
    kx, kp = jax.random.split(key)
    # 12x12 input -> forward pads bottom/right up to min_size=16
    x = jax.random.normal(kx, (2, in_channels, 12, 12), jnp.float32)
    params = init_params(kp, num_classes, in_channels, initial_filters, num_blocks)

    out = flexresnet_forward(params, x, min_size)
    out = jax.block_until_ready(out)

    ref = forward_ref(params, x, min_size)
    assert out.shape == (2, num_classes), out.shape
    # bf16 MXU operands + bf16 inter-block slabs -> looser tolerance than f32
    assert jnp.allclose(out, ref, rtol=5e-2, atol=5e-2), (out, ref)
    print("KERNEL_OK")
</pallas_src>

<mosaic_0001>
module attributes {stable_mosaic.version = 11 : i64} {
  func.func @kernel(%arg0: i32, %arg1: memref<1x160x128xbf16, #tpu.memory_space<vmem>>, %arg2: memref<1x160x128xbf16, #tpu.memory_space<vmem>>, %arg3: memref<160x1xf32, #tpu.memory_space<vmem>>, %arg4: memref<128x128xbf16, #tpu.memory_space<vmem>>, %arg5: memref<128x128xbf16, #tpu.memory_space<vmem>>, %arg6: memref<1x128xf32, #tpu.memory_space<vmem>>, %arg7: memref<5x256x128xbf16, #tpu.memory_space<vmem>>, %arg8: memref<2x128xf32, #tpu.memory_space<vmem>>, %arg9: memref<2xf32, #tpu.memory_space<smem>>, %arg10: memref<1x160x128xbf16, #tpu.memory_space<vmem>>, %arg11: memref<208x128xf32, #tpu.memory_space<vmem>>) attributes {dimension_semantics = [#tpu.dimension_semantics<parallel>], iteration_bounds = array<i64: 2>, scalar_prefetch = 0 : i64, scratch_operands = 1 : i64, tpu.core_type = #tpu.core_type<tc>, window_params = [{transform_indices = @transform_0, window_bounds = array<i64: 1, 160, 128>}, {transform_indices = @transform_1, window_bounds = array<i64: 1, 160, 128>}, {pipeline_mode = #tpu.pipeline_mode<synchronous>, transform_indices = @transform_2, window_bounds = array<i64: 160, 1>}, {pipeline_mode = #tpu.pipeline_mode<synchronous>, transform_indices = @transform_3, window_bounds = array<i64: 128, 128>}, {pipeline_mode = #tpu.pipeline_mode<synchronous>, transform_indices = @transform_4, window_bounds = array<i64: 128, 128>}, {pipeline_mode = #tpu.pipeline_mode<synchronous>, transform_indices = @transform_5, window_bounds = array<i64: 1, 128>}, {pipeline_mode = #tpu.pipeline_mode<synchronous>, transform_indices = @transform_6, window_bounds = array<i64: 5, 256, 128>}, {pipeline_mode = #tpu.pipeline_mode<synchronous>, transform_indices = @transform_7, window_bounds = array<i64: 2, 128>}, {transform_indices = @transform_8, window_bounds = array<i64: 2>}, {transform_indices = @transform_9, window_bounds = array<i64: 1, 160, 128>}]} {
    %c0 = arith.constant 0 : index
    %c0_0 = arith.constant 0 : index
    %0 = vector.load %arg3[%c0, %c0_0] : memref<160x1xf32, #tpu.memory_space<vmem>>, vector<160x1xf32>
    %cst = arith.constant 0.000000e+00 : f32
    %1 = vector.broadcast %cst : f32 to vector<24x128xf32>
    %c0_1 = arith.constant 0 : index
    %c0_2 = arith.constant 0 : index
    %2 = vector.load %arg11[%c0_1, %c0_2] : memref<208x128xf32, #tpu.memory_space<vmem>>, vector<24x128xf32>
    tpu.vector_store %arg11[%c0_1, %c0_2], %1 {strides = array<i32>} : memref<208x128xf32, #tpu.memory_space<vmem>>, vector<24x128xf32>,
    %cst_3 = arith.constant 0.000000e+00 : f32
    %3 = vector.broadcast %cst_3 : f32 to vector<24x128xf32>
    %c184 = arith.constant 184 : index
    %c0_4 = arith.constant 0 : index
    %4 = vector.load %arg11[%c184, %c0_4] : memref<208x128xf32, #tpu.memory_space<vmem>>, vector<24x128xf32>
    tpu.vector_store %arg11[%c184, %c0_4], %3 {strides = array<i32>} : memref<208x128xf32, #tpu.memory_space<vmem>>, vector<24x128xf32>,
    %c0_5 = arith.constant 0 : index
    %c0_6 = arith.constant 0 : index
    %c0_7 = arith.constant 0 : index
    %5 = vector.load %arg2[%c0_5, %c0_6, %c0_7] : memref<1x160x128xbf16, #tpu.memory_space<vmem>>, vector<1x160x128xbf16>
    %6 = vector.shape_cast %5 : vector<1x160x128xbf16> to vector<160x128xbf16>
    %c0_8 = arith.constant 0 : index
    %c0_9 = arith.constant 0 : index
    %7 = vector.load %arg5[%c0_8, %c0_9] : memref<128x128xbf16, #tpu.memory_space<vmem>>, vector<128x128xbf16>
    %cst_10 = arith.constant dense<0.000000e+00> : vector<160x128xf32>
    %8 = tpu.matmul %6, %7, %cst_10 {dimension_numbers = #tpu.dot_dimension_numbers<[1], [0], [0], [1], [0, 0, 1, 1], [], []>} : vector<160x128xbf16>, vector<128x128xbf16>, vector<160x128xf32> -> vector<160x128xf32>
    %c0_11 = arith.constant 0 : index
    %c0_12 = arith.constant 0 : index
    %9 = vector.load %arg6[%c0_11, %c0_12] : memref<1x128xf32, #tpu.memory_space<vmem>>, vector<1x128xf32>
    %10 = vector.broadcast %9 : vector<1x128xf32> to vector<160x128xf32>
    %11 = arith.addf %8, %10 : vector<160x128xf32>
    %12 = vector.broadcast %0 : vector<160x1xf32> to vector<160x128xf32>
    %13 = arith.mulf %11, %12 : vector<160x128xf32>
    %c0_13 = arith.constant 0 : index
    %c0_14 = arith.constant 0 : index
    %c0_15 = arith.constant 0 : index
    %14 = vector.load %arg1[%c0_13, %c0_14, %c0_15] : memref<1x160x128xbf16, #tpu.memory_space<vmem>>, vector<1x160x128xbf16>
    %15 = vector.shape_cast %14 : vector<1x160x128xbf16> to vector<160x128xbf16>
    %c0_16 = arith.constant 0 : index
    %c0_17 = arith.constant 0 : index
    %16 = vector.load %arg4[%c0_16, %c0_17] : memref<128x128xbf16, #tpu.memory_space<vmem>>, vector<128x128xbf16>
    %cst_18 = arith.constant dense<0.000000e+00> : vector<160x128xf32>
    %17 = tpu.matmul %15, %16, %cst_18 {dimension_numbers = #tpu.dot_dimension_numbers<[1], [0], [0], [1], [0, 0, 1, 1], [], []>} : vector<160x128xbf16>, vector<128x128xbf16>, vector<160x128xf32> -> vector<160x128xf32>
    %c0_19 = arith.constant 0 : index
    %c0_20 = arith.constant 0 : index
    %18 = vector.load %arg8[%c0_19, %c0_20] : memref<2x128xf32, #tpu.memory_space<vmem>>, vector<1x128xf32>
    %19 = vector.broadcast %18 : vector<1x128xf32> to vector<160x128xf32>
    %20 = arith.addf %17, %19 : vector<160x128xf32>
    %c0_21 = arith.constant 0 : index
    %21 = memref.load %arg9[%c0_21] : memref<2xf32, #tpu.memory_space<smem>>
    %22 = vector.broadcast %0 : vector<160x1xf32> to vector<160x128xf32>
    %23 = arith.mulf %20, %22 : vector<160x128xf32>
    %cst_22 = arith.constant dense<0.000000e+00> : vector<128xf32>
    %24 = vector.multi_reduction <add>, %23, %cst_22 [0] : vector<160x128xf32> to vector<128xf32>
    %25 = vector.shape_cast %24 : vector<128xf32> to vector<1x128xf32>
    %26 = arith.mulf %23, %23 : vector<160x128xf32>
    %cst_23 = arith.constant dense<0.000000e+00> : vector<128xf32>
    %27 = vector.multi_reduction <add>, %26, %cst_23 [0] : vector<160x128xf32> to vector<128xf32>
    %28 = vector.shape_cast %27 : vector<128xf32> to vector<1x128xf32>
    %cst_24 = arith.constant 1.562500e-02 : f32
    %29 = vector.broadcast %cst_24 : f32 to vector<1x128xf32>
    %30 = arith.mulf %25, %29 : vector<1x128xf32>
    %cst_25 = arith.constant 1.562500e-02 : f32
    %31 = vector.broadcast %cst_25 : f32 to vector<1x128xf32>
    %32 = arith.mulf %28, %31 : vector<1x128xf32>
    %33 = arith.mulf %30, %30 : vector<1x128xf32>
    %34 = arith.subf %32, %33 : vector<1x128xf32>
    %cst_26 = arith.constant 0.000000e+00 : f32
    %35 = vector.broadcast %cst_26 : f32 to vector<1x128xf32>
    %36 = arith.maximumf %34, %35 : vector<1x128xf32>
    %37 = vector.broadcast %30 : vector<1x128xf32> to vector<160x128xf32>
    %38 = arith.subf %20, %37 : vector<160x128xf32>
    %cst_27 = arith.constant 9.99999974E-6 : f32
    %39 = vector.broadcast %cst_27 : f32 to vector<1x128xf32>
    %40 = arith.addf %36, %39 : vector<1x128xf32>
    %41 = math.rsqrt %40 : vector<1x128xf32>
    %42 = vector.broadcast %41 : vector<1x128xf32> to vector<160x128xf32>
    %43 = arith.mulf %38, %42 : vector<160x128xf32>
    %cst_28 = arith.constant 0.000000e+00 : f32
    %44 = vector.broadcast %cst_28 : f32 to vector<160x128xf32>
    %45 = arith.cmpf oge, %43, %44 : vector<160x128xf32>
    %46 = vector.broadcast %21 : f32 to vector<160x128xf32>
    %47 = arith.mulf %46, %43 : vector<160x128xf32>
    %48 = arith.select %45, %43, %47 : vector<160x128xi1>, vector<160x128xf32>
    %49 = vector.broadcast %0 : vector<160x1xf32> to vector<160x128xf32>
    %50 = arith.mulf %48, %49 : vector<160x128xf32>
    %c24 = arith.constant 24 : index
    %c0_29 = arith.constant 0 : index
    %51 = vector.load %arg11[%c24, %c0_29] : memref<208x128xf32, #tpu.memory_space<vmem>>, vector<160x128xf32>
    tpu.vector_store %arg11[%c24, %c0_29], %50 {strides = array<i32>} : memref<208x128xf32, #tpu.memory_space<vmem>>, vector<160x128xf32>,
    %cst_30 = arith.constant 0.000000e+00 : f32
    %52 = vector.broadcast %cst_30 : f32 to vector<160x128xf32>
    %c7 = arith.constant 7 : index
    %c0_31 = arith.constant 0 : index
    %53 = vector.load %arg11[%c7, %c0_31] : memref<208x128xf32, #tpu.memory_space<vmem>>, vector<160x128xf32>
    %54 = arith.truncf %53 : vector<160x128xf32> to vector<160x128xbf16>
    %c8 = arith.constant 8 : index
    %c0_32 = arith.constant 0 : index
    %55 = vector.load %arg11[%c8, %c0_32] : memref<208x128xf32, #tpu.memory_space<vmem>>, vector<160x128xf32>
    %56 = arith.truncf %55 : vector<160x128xf32> to vector<160x128xbf16>
    %57 = tpu.concatenate %54, %56 in 1 : vector<160x128xbf16>, vector<160x128xbf16> -> vector<160x256xbf16>
    %c0_33 = arith.constant 0 : index
    %c0_34 = arith.constant 0 : index
    %c0_35 = arith.constant 0 : index
    %58 = vector.load %arg7[%c0_33, %c0_34, %c0_35] : memref<5x256x128xbf16, #tpu.memory_space<vmem>>, vector<1x256x128xbf16>
    %59 = vector.shape_cast %58 : vector<1x256x128xbf16> to vector<256x128xbf16>
    %cst_36 = arith.constant dense<0.000000e+00> : vector<160x128xf32>
    %60 = tpu.matmul %57, %59, %cst_36 {dimension_numbers = #tpu.dot_dimension_numbers<[1], [0], [0], [1], [0, 0, 1, 1], [], []>} : vector<160x256xbf16>, vector<256x128xbf16>, vector<160x128xf32> -> vector<160x128xf32>
    %61 = arith.addf %52, %60 : vector<160x128xf32>
    %c9 = arith.constant 9 : index
    %c0_37 = arith.constant 0 : index
    %62 = vector.load %arg11[%c9, %c0_37] : memref<208x128xf32, #tpu.memory_space<vmem>>, vector<160x128xf32>
    %63 = arith.truncf %62 : vector<160x128xf32> to vector<160x128xbf16>
    %c23 = arith.constant 23 : index
    %c0_38 = arith.constant 0 : index
    %64 = vector.load %arg11[%c23, %c0_38] : memref<208x128xf32, #tpu.memory_space<vmem>>, vector<160x128xf32>
    %65 = arith.truncf %64 : vector<160x128xf32> to vector<160x128xbf16>
    %66 = tpu.concatenate %63, %65 in 1 : vector<160x128xbf16>, vector<160x128xbf16> -> vector<160x256xbf16>
    %c1 = arith.constant 1 : index
    %c0_39 = arith.constant 0 : index
    %c0_40 = arith.constant 0 : index
    %67 = vector.load %arg7[%c1, %c0_39, %c0_40] : memref<5x256x128xbf16, #tpu.memory_space<vmem>>, vector<1x256x128xbf16>
    %68 = vector.shape_cast %67 : vector<1x256x128xbf16> to vector<256x128xbf16>
    %cst_41 = arith.constant dense<0.000000e+00> : vector<160x128xf32>
    %69 = tpu.matmul %66, %68, %cst_41 {dimension_numbers = #tpu.dot_dimension_numbers<[1], [0], [0], [1], [0, 0, 1, 1], [], []>} : vector<160x256xbf16>, vector<256x128xbf16>, vector<160x128xf32> -> vector<160x128xf32>
    %70 = arith.addf %61, %69 : vector<160x128xf32>
    %c24_42 = arith.constant 24 : index
    %c0_43 = arith.constant 0 : index
    %71 = vector.load %arg11[%c24_42, %c0_43] : memref<208x128xf32, #tpu.memory_space<vmem>>, vector<160x128xf32>
    %72 = arith.truncf %71 : vector<160x128xf32> to vector<160x128xbf16>
    %c25 = arith.constant 25 : index
    %c0_44 = arith.constant 0 : index
    %73 = vector.load %arg11[%c25, %c0_44] : memref<208x128xf32, #tpu.memory_space<vmem>>, vector<160x128xf32>
    %74 = arith.truncf %73 : vector<160x128xf32> to vector<160x128xbf16>
    %75 = tpu.concatenate %72, %74 in 1 : vector<160x128xbf16>, vector<160x128xbf16> -> vector<160x256xbf16>
    %c2 = arith.constant 2 : index
    %c0_45 = arith.constant 0 : index
    %c0_46 = arith.constant 0 : index
    %76 = vector.load %arg7[%c2, %c0_45, %c0_46] : memref<5x256x128xbf16, #tpu.memory_space<vmem>>, vector<1x256x128xbf16>
    %77 = vector.shape_cast %76 : vector<1x256x128xbf16> to vector<256x128xbf16>
    %cst_47 = arith.constant dense<0.000000e+00> : vector<160x128xf32>
    %78 = tpu.matmul %75, %77, %cst_47 {dimension_numbers = #tpu.dot_dimension_numbers<[1], [0], [0], [1], [0, 0, 1, 1], [], []>} : vector<160x256xbf16>, vector<256x128xbf16>, vector<160x128xf32> -> vector<160x128xf32>
    %79 = arith.addf %70, %78 : vector<160x128xf32>
    %c39 = arith.constant 39 : index
    %c0_48 = arith.constant 0 : index
    %80 = vector.load %arg11[%c39, %c0_48] : memref<208x128xf32, #tpu.memory_space<vmem>>, vector<160x128xf32>
    %81 = arith.truncf %80 : vector<160x128xf32> to vector<160x128xbf16>
    %c40 = arith.constant 40 : index
    %c0_49 = arith.constant 0 : index
    %82 = vector.load %arg11[%c40, %c0_49] : memref<208x128xf32, #tpu.memory_space<vmem>>, vector<160x128xf32>
    %83 = arith.truncf %82 : vector<160x128xf32> to vector<160x128xbf16>
    %84 = tpu.concatenate %81, %83 in 1 : vector<160x128xbf16>, vector<160x128xbf16> -> vector<160x256xbf16>
    %c3 = arith.constant 3 : index
    %c0_50 = arith.constant 0 : index
    %c0_51 = arith.constant 0 : index
    %85 = vector.load %arg7[%c3, %c0_50, %c0_51] : memref<5x256x128xbf16, #tpu.memory_space<vmem>>, vector<1x256x128xbf16>
    %86 = vector.shape_cast %85 : vector<1x256x128xbf16> to vector<256x128xbf16>
    %cst_52 = arith.constant dense<0.000000e+00> : vector<160x128xf32>
    %87 = tpu.matmul %84, %86, %cst_52 {dimension_numbers = #tpu.dot_dimension_numbers<[1], [0], [0], [1], [0, 0, 1, 1], [], []>} : vector<160x256xbf16>, vector<256x128xbf16>, vector<160x128xf32> -> vector<160x128xf32>
    %88 = arith.addf %79, %87 : vector<160x128xf32>
    %c41 = arith.constant 41 : index
    %c0_53 = arith.constant 0 : index
    %89 = vector.load %arg11[%c41, %c0_53] : memref<208x128xf32, #tpu.memory_space<vmem>>, vector<160x128xf32>
    %90 = arith.truncf %89 : vector<160x128xf32> to vector<160x128xbf16>
    %91 = tpu.concatenate %90, %90 in 1 : vector<160x128xbf16>, vector<160x128xbf16> -> vector<160x256xbf16>
    %c4 = arith.constant 4 : index
    %c0_54 = arith.constant 0 : index
    %c0_55 = arith.constant 0 : index
    %92 = vector.load %arg7[%c4, %c0_54, %c0_55] : memref<5x256x128xbf16, #tpu.memory_space<vmem>>, vector<1x256x128xbf16>
    %93 = vector.shape_cast %92 : vector<1x256x128xbf16> to vector<256x128xbf16>
    %cst_56 = arith.constant dense<0.000000e+00> : vector<160x128xf32>
    %94 = tpu.matmul %91, %93, %cst_56 {dimension_numbers = #tpu.dot_dimension_numbers<[1], [0], [0], [1], [0, 0, 1, 1], [], []>} : vector<160x256xbf16>, vector<256x128xbf16>, vector<160x128xf32> -> vector<160x128xf32>
    %95 = arith.addf %88, %94 : vector<160x128xf32>
    %c1_57 = arith.constant 1 : index
    %c0_58 = arith.constant 0 : index
    %96 = vector.load %arg8[%c1_57, %c0_58] : memref<2x128xf32, #tpu.memory_space<vmem>>, vector<1x128xf32>
    %97 = vector.broadcast %96 : vector<1x128xf32> to vector<160x128xf32>
    %98 = arith.addf %95, %97 : vector<160x128xf32>
    %c1_59 = arith.constant 1 : index
    %99 = memref.load %arg9[%c1_59] : memref<2xf32, #tpu.memory_space<smem>>
    %100 = vector.broadcast %0 : vector<160x1xf32> to vector<160x128xf32>
    %101 = arith.mulf %98, %100 : vector<160x128xf32>
    %cst_60 = arith.constant dense<0.000000e+00> : vector<128xf32>
    %102 = vector.multi_reduction <add>, %101, %cst_60 [0] : vector<160x128xf32> to vector<128xf32>
    %103 = vector.shape_cast %102 : vector<128xf32> to vector<1x128xf32>
    %104 = arith.mulf %101, %101 : vector<160x128xf32>
    %cst_61 = arith.constant dense<0.000000e+00> : vector<128xf32>
    %105 = vector.multi_reduction <add>, %104, %cst_61 [0] : vector<160x128xf32> to vector<128xf32>
    %106 = vector.shape_cast %105 : vector<128xf32> to vector<1x128xf32>
    %cst_62 = arith.constant 1.562500e-02 : f32
    %107 = vector.broadcast %cst_62 : f32 to vector<1x128xf32>
    %108 = arith.mulf %103, %107 : vector<1x128xf32>
    %cst_63 = arith.constant 1.562500e-02 : f32
    %109 = vector.broadcast %cst_63 : f32 to vector<1x128xf32>
    %110 = arith.mulf %106, %109 : vector<1x128xf32>
    %111 = arith.mulf %108, %108 : vector<1x128xf32>
    %112 = arith.subf %110, %111 : vector<1x128xf32>
    %cst_64 = arith.constant 0.000000e+00 : f32
    %113 = vector.broadcast %cst_64 : f32 to vector<1x128xf32>
    %114 = arith.maximumf %112, %113 : vector<1x128xf32>
    %115 = vector.broadcast %108 : vector<1x128xf32> to vector<160x128xf32>
    %116 = arith.subf %98, %115 : vector<160x128xf32>
    %cst_65 = arith.constant 9.99999974E-6 : f32
    %117 = vector.broadcast %cst_65 : f32 to vector<1x128xf32>
    %118 = arith.addf %114, %117 : vector<1x128xf32>
    %119 = math.rsqrt %118 : vector<1x128xf32>
    %120 = vector.broadcast %119 : vector<1x128xf32> to vector<160x128xf32>
    %121 = arith.mulf %116, %120 : vector<160x128xf32>
    %cst_66 = arith.constant 0.000000e+00 : f32
    %122 = vector.broadcast %cst_66 : f32 to vector<160x128xf32>
    %123 = arith.cmpf oge, %121, %122 : vector<160x128xf32>
    %124 = vector.broadcast %99 : f32 to vector<160x128xf32>
    %125 = arith.mulf %124, %121 : vector<160x128xf32>
    %126 = arith.select %123, %121, %125 : vector<160x128xi1>, vector<160x128xf32>
    %127 = vector.broadcast %0 : vector<160x1xf32> to vector<160x128xf32>
    %128 = arith.mulf %126, %127 : vector<160x128xf32>
    %129 = arith.addf %128, %13 : vector<160x128xf32>
    %130 = arith.truncf %129 : vector<160x128xf32> to vector<160x128xbf16>
    %c0_67 = arith.constant 0 : index
    %c0_68 = arith.constant 0 : index
    %c0_69 = arith.constant 0 : index
    %131 = vector.load %arg10[%c0_67, %c0_68, %c0_69] : memref<1x160x128xbf16, #tpu.memory_space<vmem>>, vector<1x160x128xbf16>
    %132 = vector.shape_cast %131 : vector<1x160x128xbf16> to vector<160x128xbf16>
    %133 = vector.shape_cast %130 : vector<160x128xbf16> to vector<1x160x128xbf16>
    tpu.vector_store %arg10[%c0_67, %c0_68, %c0_69], %133 {strides = array<i32>} : memref<1x160x128xbf16, #tpu.memory_space<vmem>>, vector<1x160x128xbf16>,
    return
  }
  func.func @transform_0(%arg0: i32) -> (i32, i32, i32) {
    %c0_i32 = arith.constant 0 : i32
    %c0_i32_0 = arith.constant 0 : i32
    %c0_i32_1 = arith.constant 0 : i32
    return %arg0, %c0_i32, %c0_i32_0 : i32, i32, i32
  }
  func.func @transform_1(%arg0: i32) -> (i32, i32, i32) {
    %c0_i32 = arith.constant 0 : i32
    %c0_i32_0 = arith.constant 0 : i32
    %c0_i32_1 = arith.constant 0 : i32
    return %arg0, %c0_i32, %c0_i32_0 : i32, i32, i32
  }
  func.func @transform_2(%arg0: i32) -> (i32, i32) {
    %c0_i32 = arith.constant 0 : i32
    %c0_i32_0 = arith.constant 0 : i32
    %c0_i32_1 = arith.constant 0 : i32
    return %c0_i32, %c0_i32_0 : i32, i32
  }
  func.func @transform_3(%arg0: i32) -> (i32, i32) {
    %c0_i32 = arith.constant 0 : i32
    %c0_i32_0 = arith.constant 0 : i32
    %c0_i32_1 = arith.constant 0 : i32
    return %c0_i32, %c0_i32_0 : i32, i32
  }
  func.func @transform_4(%arg0: i32) -> (i32, i32) {
    %c0_i32 = arith.constant 0 : i32
    %c0_i32_0 = arith.constant 0 : i32
    %c0_i32_1 = arith.constant 0 : i32
    return %c0_i32, %c0_i32_0 : i32, i32
  }
  func.func @transform_5(%arg0: i32) -> (i32, i32) {
    %c0_i32 = arith.constant 0 : i32
    %c0_i32_0 = arith.constant 0 : i32
    %c0_i32_1 = arith.constant 0 : i32
    return %c0_i32, %c0_i32_0 : i32, i32
  }
  func.func @transform_6(%arg0: i32) -> (i32, i32, i32) {
    %c0_i32 = arith.constant 0 : i32
    %c0_i32_0 = arith.constant 0 : i32
    %c0_i32_1 = arith.constant 0 : i32
    %c0_i32_2 = arith.constant 0 : i32
    return %c0_i32, %c0_i32_0, %c0_i32_1 : i32, i32, i32
  }
  func.func @transform_7(%arg0: i32) -> (i32, i32) {
    %c0_i32 = arith.constant 0 : i32
    %c0_i32_0 = arith.constant 0 : i32
    %c0_i32_1 = arith.constant 0 : i32
    return %c0_i32, %c0_i32_0 : i32, i32
  }
  func.func @transform_8(%arg0: i32) -> i32 {
    %c0_i32 = arith.constant 0 : i32
    %c0_i32_0 = arith.constant 0 : i32
    return %c0_i32 : i32
  }
  func.func @transform_9(%arg0: i32) -> (i32, i32, i32) {
    %c0_i32 = arith.constant 0 : i32
    %c0_i32_0 = arith.constant 0 : i32
    %c0_i32_1 = arith.constant 0 : i32
    return %arg0, %c0_i32, %c0_i32_0 : i32, i32, i32
  }
}

</mosaic_0001>

<bundles_post_ra>
// kernel: tpu_custom_call.1
= control target key start
LH: loop header
LB: loop body
LE: loop exit
PB: predicated region body
PF: predicated region fallthrough
CT: control target
= control target key end

     0   :  { %s5984_s0 = inlined_call_operand.vmem [shape: bf16[2,160,128], index: 0, kind: input, shape index: {}]   ;;  %s5985_s1 = inlined_call_operand.hbm [shape: bf16[2,160,128], index: 1, kind: input, shape index: {}]   ;;  %s5986_s2 = inlined_call_operand.vmem [shape: f32[160,1], index: 2, kind: input, shape index: {}]   ;;  %s5987_s3 = inlined_call_operand.hbm [shape: bf16[128,128], index: 3, kind: input, shape index: {}]   ;;  %s5988_s4 = inlined_call_operand.hbm [shape: bf16[128,128], index: 4, kind: input, shape index: {}]   ;;  %s5989_s5 = inlined_call_operand.vmem [shape: f32[1,128], index: 5, kind: input, shape index: {}]   ;;  %s5990_s6 = inlined_call_operand.hbm [shape: bf16[5,256,128], index: 6, kind: input, shape index: {}]   ;;  %s5991_s7 = inlined_call_operand.vmem [shape: f32[2,128], index: 7, kind: input, shape index: {}]   ;;  %s5992_s8 = inlined_call_operand.vmem [shape: f32[2], index: 8, kind: input, shape index: {}]   ;;  %s5993_s9 = inlined_call_operand.hbm [shape: bf16[2,160,128], index: 9, kind: output, shape index: {}]  }
   0x1   :  { %6023 = sst [smem:[#allocation61_spill]] %s5987_s3 }
   0x2   :  { %6024 = sst [smem:[#allocation62_spill]] %s5988_s4 }
   0x3   :  { %6025 = sst [smem:[#allocation63_spill]] %s5990_s6 }
   0x4   :  { %14 = vsyncpa [#allocation4], 0 }
   0x5   :  { %16 = vsyncpa [#allocation4 + $0x1], 0 }
   0x6   :  { %17 = vsyncpa [#allocation8], 0 }
   0x7   :  { %18 = vsyncpa [#allocation11], 0 }
   0x8   :  { %19 = vsyncpa [#allocation6], 0 }
   0x9   :  { %20 = vsyncpa [#allocation5], 0 }
   0xa   :  { %22 = vsyncpa [#allocation5 + $0x1], 0  ;;  %s4564_s30 = smov 0   ;;  %s4566_s10 = smov 0  }
   0xb   :  { %s4568_s11 = smov 0   ;;  %s4570_s12 = smov 0  }
   0xc LB: > { %s4585_s13 = sadd.s32 4294967295, %s4499_s12   ;;  %s3357_s14 = sadd.s32 4294967294, %s4499_s12   ;;  %s4499_s12 = sphi %s4570_s12, %s6172_s12   ;;  %s4495_s11 = sphi %s4568_s11, %s6171_s11   ;;  %s4491_s10 = sphi %s4566_s10, %s6170_s10   ;;  %s4487_s30 = sphi %s4564_s30, %s6169_s30  }
   0xd   : > { %p74_p0 = scmp.ne.s32.totalorder %s4491_s10, %s4487_s30  ;;  %p5994_p1 = scmp.eq.s32.totalorder %s4585_s13, 0 }
   0xe   : > { %p245_p2 = scmp.eq.s32.totalorder %s4585_s13, 1  ;;  %p251_p3 = scmp.eq.s32.totalorder %s3357_s14, 1 }
   0xf   : > { %p4594_p4 = por %p5994_p1, %p74_p0  ;;  %p3358_p5 = scmp.ge.s32.totalorder %s4499_s12, 1 }
  0x10   : > { %p4599_p6 = por %p251_p3, %p74_p0  ;;  %p258_p7 = scmp.lt.s32.totalorder %s4499_s12, 3 }
  0x11   : > { %s6026_s15 = scalar_select %p4594_p4, 1, 0 }
  0x12   : > { %s6027_s16 = scalar_select %p4599_p6, 1, 0 }
  0x13   : > { %p4604_p8 = pnand %p3358_p5, %p258_p7  ;;  %s4501_s18 = smov [#allocation7]  }
  0x14   : > { %s273_s19 = sshll.u32 %s4501_s18, 4  ;;  %s4502_s21 = smov [#allocation9]   ;;  %s274_s19 = int_to_ptr.vmem [resolvable:$true] %s273_s19 }
  0x15   : > { %s6028_s17 = scalar_select %p4604_p8, 1, 0 }
  0x16   : > { %p4106_p9 = pneg %p4604_p8  ;;  %s286_s22 = sshll.u32 %s4502_s21, 4  ;;  %s287_s22 = int_to_ptr.vmem [resolvable:$true] %s286_s22 }
  0x17   : > { %s4503_s23 = smov [#allocation10]   ;;  %s4313_s25 = scalar_lea.vmem %s274_s19, 1024 }
  0x18   : > { %p4613_p11 = pnand %p4106_p9, %p5994_p1  ;;  %s302_s24 = sshll.u32 %s4503_s23, 4  ;;  %s303_s24 = int_to_ptr.vmem [resolvable:$true] %s302_s24 }
  0x19   : > { %p4314_p13 = scmp.ne.s32.totalorder %s274_s19, %s4313_s25  ;;  %p4321_p5 = scmp.lt.s32.totalorder %s274_s19, %s274_s19 }
  0x1a   : > { %p4304_p12 = pneg %p4613_p11  ;;  %p4322_p7 = scmp.lt.s32.totalorder %s4313_s25, %s4313_s25 }
  0x1c   : > { %p4316_p0 = pnand %p4314_p13, %p4304_p12  ;;  %p4323_p9 = por %p4322_p7, %p4321_p5 }
  0x1e   : > { %p4317_p3 = pneg %p4316_p0 }
  0x20   : > { %p4324_p10 = pnand %p4323_p9, %p4317_p3 }
  0x22   : > { %4327 = shalt.err (!%p4324_p10)
}
  0x23   : > { %s5995_s26 = smov 64   ;;  %s5996_s27 = smov 4  }
  0x24   : > { %s6030_s3 = sld [smem:[#allocation61_spill]]  ;;  %s4339_s14 = scalar_lea.vmem %s287_s22, 1024 }
  0x25   : > { %p4340_p13 = scmp.ne.s32.totalorder %s287_s22, %s4339_s14  ;;  %p4347_p3 = scmp.lt.s32.totalorder %s287_s22, %s287_s22 }
  0x26   : > { %p4348_p10 = scmp.lt.s32.totalorder %s4339_s14, %s4339_s14 }
  0x27   : > { %p4342_p0 = pnand %p4340_p13, %p4304_p12 }
  0x28   : > { %p4349_p7 = por %p4348_p10, %p4347_p3 }
  0x29   : > { %p4343_p5 = pneg %p4342_p0 }
  0x2a   : > { %4109 = dma.hbm_to_vmem [thread:$0]  (!%p4613_p11), %s6030_s3, 1024, %s274_s19, [#allocation8], %s5995_s26, %s5995_s26, %s5996_s27  }
  0x2b   : > { %p4350_p9 = pnand %p4349_p7, %p4343_p5 }
  0x2d   : > { %4353 = shalt.err (!%p4350_p9)
}
  0x2e   : > { %s6031_s4 = sld [smem:[#allocation62_spill]]  ;;  %s319_s25 = sshll.u32 %s5992_s8, 4  ;;  %s320_s25 = int_to_ptr.vmem [resolvable:$true] %s319_s25 }
  0x2f   : > { %s4365_s28 = scalar_lea.vmem %s303_s24, 10240  ;;  %p4373_p3 = scmp.lt.s32.totalorder %s303_s24, %s303_s24 }
  0x30   : > { %p4366_p13 = scmp.ne.s32.totalorder %s303_s24, %s4365_s28  ;;  %p4374_p10 = scmp.lt.s32.totalorder %s4365_s28, %s4365_s28 }
  0x32   : > { %p4368_p0 = pnand %p4366_p13, %p4304_p12  ;;  %p4375_p7 = por %p4374_p10, %p4373_p3 }
  0x34   : > { %4112 = dma.hbm_to_vmem [thread:$0]  (!%p4613_p11), %s6031_s4, 1024, %s287_s22, [#allocation8], %s5995_s26, %s5995_s26, %s5996_s27  }
  0x35   : > { %p4369_p5 = pneg %p4368_p0 }
  0x37   : > { %p4376_p9 = pnand %p4375_p7, %p4369_p5 }
  0x39   : > { %4379 = shalt.err (!%p4376_p9)
}
  0x3a   : > { %s6032_s6 = sld [smem:[#allocation63_spill]]  ;;  %s4380_s14 = scalar_lea.vmem %s320_s25, 16 }
  0x3b   : > { %p4381_p1 = scmp.ne.s32.totalorder %s320_s25, %s4380_s14  ;;  %p4388_p3 = scmp.lt.s32.totalorder %s320_s25, %s320_s25 }
  0x3c   : > { %p4389_p5 = scmp.lt.s32.totalorder %s4380_s14, %s4380_s14 }
  0x3d   : > { %p4383_p13 = pnand %p4381_p1, %p4304_p12 }
  0x3e   : > { %p4390_p10 = por %p4389_p5, %p4388_p3 }
  0x3f   : > { %p4384_p0 = pneg %p4383_p13 }
  0x40   : > { %4115 = dma.hbm_to_vmem [thread:$0]  (!%p4613_p11), %s6032_s6, 10240, %s303_s24, [#allocation11], %s5995_s26, %s5995_s26, %s5996_s27  }
  0x41   : > { %p4391_p7 = pnand %p4390_p10, %p4384_p0 }
  0x43   : > { %4394 = shalt.err (!%p4391_p7)
}
  0x44   : > { %s4506_s18 = smov [#allocation12]   ;;  %s4661_s24 = sadd.s32 1, %s4499_s12  }
  0x45   : > { %4118 = dma.vmem_to_smem (!%p4613_p11), %s320_s25, 16, %s4506_s18, [#allocation6]  }
  0x46   : > { %s58_s21 = ssub.s32 %s4499_s12, %s4661_s24  ;;  %s61_s19 = sadd.s32 1, %s4495_s11 }
  0x47   : > { %p59_p1 = scmp.eq.s32.totalorder %s58_s21, 0  ;;  %p68_p12 = scmp.ne.s32.totalorder %s4495_s11, %s4491_s10 }
  0x48   : > { %p69_p9 = scmp.eq.s32.totalorder %s4499_s12, 0  ;;  %p4131_p3 = scmp.lt.s32.totalorder %s4499_s12, 2 }
  0x49   : > { %s4670_s20 = scalar_select %p59_p1, %s4495_s11, %s61_s19  }
  0x4a   : > { %p70_p13 = por %p69_p9, %p68_p12  ;;  %p4674_p0 = por %p245_p2, %p68_p12 }
  0x4b   : > { %s338_s28 = sand.u32 1, %s4495_s11   ;;  %s4082_s25 = smul.u32 1280, %s4499_s12 }
  0x4c   : > { %s6033_s23 = scalar_select %p4674_p0, 1, 0 }
  0x4d   : > { %s4081_s22 = smul.u32 80, %s338_s28  ;;  %p4681_p11 = pnand %p4131_p3, %p70_p13 }
  0x4e   : > { %s4688_s21 = scalar_lea.hbm %s5985_s1, %s4082_s25  ;;  %s4692_s27 = scalar_lea.sflag [#allocation4], %s338_s28 }
  0x4f   : > { %s342_s19 = scalar_lea.vmem [#allocation3], %s4081_s22  ;;  %s4395_s3 = scalar_lea.hbm %s4688_s21, 1280 }
  0x50   : > { %s349_s26 = sshll.u32 %s342_s19, 4  ;;  %p4396_p2 = scmp.ne.s32.totalorder %s4688_s21, %s4395_s3  ;;  %s4690_s26 = int_to_ptr.vmem [resolvable:$true] %s349_s26 }
  0x51   : > { %p4397_p5 = pneg %p4681_p11  ;;  %s4400_s25 = scalar_lea.hbm %s5985_s1, 2560 }
  0x52   : > { %p4401_p1 = scmp.lt.s32.totalorder %s4688_s21, %s5985_s1  ;;  %p4402_p12 = scmp.lt.s32.totalorder %s4400_s25, %s4395_s3 }
  0x53   : > { %p4398_p10 = pnand %p4397_p5, %p4396_p2 }
  0x54   : > { %p4403_p9 = por %p4402_p12, %p4401_p1 }
  0x55   : > { %p4399_p7 = pneg %p4398_p10 }
  0x57   : > { %p4404_p13 = pnand %p4403_p9, %p4399_p7 }
  0x59   : > { %4407 = shalt.err (!%p4404_p13)
}
  0x5a   : > { %s4408_s28 = scalar_lea.vmem %s4690_s26, 1280  ;;  %s4507_s22 = smov [#allocation3]  }
  0x5b   : > { %p4409_p3 = scmp.ne.s32.totalorder %s4690_s26, %s4408_s28  ;;  %s4413_s19 = sshll.u32 %s4507_s22, 4  ;;  %s4414_s19 = int_to_ptr.vmem [resolvable:$false] %s4413_s19 }
  0x5c   : > { %s4415_s4 = scalar_lea.vmem %s4414_s19, 2560  ;;  %p4416_p10 = scmp.lt.s32.totalorder %s4690_s26, %s4414_s19 }
  0x5d   : > { %p4411_p6 = pnand %p4409_p3, %p4397_p5  ;;  %p4417_p0 = scmp.lt.s32.totalorder %s4415_s4, %s4408_s28 }
  0x5f   : > { %p4412_p2 = pneg %p4411_p6  ;;  %p4418_p4 = por %p4417_p0, %p4416_p10 }
  0x61   : > { %p4419_p8 = pnand %p4418_p4, %p4412_p2 }
  0x63   : > { %4422 = shalt.err (!%p4419_p8)
}
  0x64   : > { %s6035_s3 = smov 4   ;;  %s6036_s6 = smov 64  }
  0x65   : > { %4122 = dma.hbm_to_vmem [thread:$0]  (!%p4681_p11), %s4688_s21, 1280, %s4690_s26, %s4692_s27, %s6036_s6, %s6036_s6, %s6035_s3  }
  0x66   : > { %p6037_p6 = scmp.ne.s32.totalorder %s6028_s17, 0 }
  0x68   : > { %361 = sbr.rel (%p6037_p6) target bundleno = 1023 (0x3ff), region = 56 }
  0x6d   : > { %s4719_s14 = sand.u32 1, %s4491_s10   ;;  %p6038_p4 = scmp.ne.s32.totalorder %s6026_s15, 0 }
  0x6e   : > { %s4083_s25 = smul.u32 80, %s4719_s14  ;;  %s364_s18 = scalar_lea.sflag [#allocation4], %s4719_s14 }
  0x70   : > { %s4725_s29 = scalar_lea.vmem [#allocation3], %s4083_s25 }
  0x71   : > { %4466 = dma.done.wait (%p6038_p4), %s364_s18, 1280  }
  0x72   : > { %4468 = vsyncadd (%p6038_p4), %s364_s18, 4294966016  ;;  %p6039_p8 = scmp.eq.s32.totalorder %s4585_s13, 0 }
  0x74   : > { %4470 = dma.done.wait (%p6039_p8), [#allocation8], 2048   ;;  %p6040_p0 = pmov %p6039_p8 }
  0x76   : > { %4472 = vsyncadd (%p6040_p0), [#allocation8], 4294965248  ;;  %p6041_p11 = pmov %p6040_p0 }
  0x77   : > { %p6042_p5 = pmov %p6040_p0 }
  0x78   : > { %4474 = dma.done.wait (%p6041_p11), [#allocation11], 10240  }
  0x79   : > { %4476 = vsyncadd (%p6042_p5), [#allocation11], 4294957056  ;;  %p6043_p7 = pmov %p6040_p0 }
  0x7a   : > { %p6044_p1 = pmov %p6040_p0 }
  0x7b   : > { %4478 = dma.done.wait (%p6043_p7), [#allocation6], 16  }
  0x7c   : > { %4480 = vsyncadd (%p6044_p1), [#allocation6], 4294967280 }
  0x7d   : > { %388 = sfence }
  0x7e   : > { %v4181_v0 = vld [vmem:[#allocation9 + $0x38] sm:$0xff]   ;;  %v4182_v1 = vld [vmem:[#allocation9 + $0x30] sm:$0xff]   ;;  %v4508_v2 = vmov 0   ;;  %v4183_v3 = vld [vmem:[#allocation9 + $0x28] sm:$0xff]   ;;  %p424_p12 = scmp.lt.s32.totalorder %s4585_s13, 1  ;;  %s5670_s22 = sld [smem:[#allocation12 + $0x1]] }
  0x7f   : > { %4009 = vmatprep.subr.bf16.mxu1 %v4181_v0  ;;  %4179 = vset.pattern.permute.xlu0 %v4508_v2  ;;  %v4184_v4 = vld [vmem:[#allocation9 + $0x20] sm:$0xff]   ;;  %v4185_v6 = vld [vmem:[#allocation9 + $0x18] sm:$0xff]   ;;  %v4186_v7 = vld [vmem:[#allocation9 + $0x10] sm:$0xff]   ;;  %s5820_s19 = scalar_lea.vmem [#allocation13], %s4083_s25  ;;  %s4085_s25 = smul.u32 1280, %s4585_s13 }
  0x80   : > { %4010 = vmatpush3.bf16.msra.mxu1 %v4181_v0  ;;  %4180 = vset.pattern.permute.xlu1 %v4508_v2  ;;  %v4189_v5 = vld [vmem:[%s4725_s29] sm:$0xff]   ;;  %s425_s15 = scalar_select %p424_p12, %s4585_s13, 1  ;;  %v4187_v8 = vld [vmem:[#allocation9 + $0x8] sm:$0xff]   ;;  %v4191_v10 = vld [vmem:[#allocation7 + $0x38] sm:$0xff]  }
  0x81   : > { %4011 = vmatprep.subr.bf16.mxu1 %v4182_v1  ;;  %4025 = vmatprep.mubr.bf16.mxu1 %v4189_v5  ;;  %v4188_v9 = vld [vmem:[#allocation9] sm:$0xff]   ;;  %v4190_v11 = vld [vmem:[%s4725_s29 + $0x8] sm:$0xff]   ;;  %v4192_v13 = vld [vmem:[#allocation7 + $0x30] sm:$0xff]   ;;  %s3231_s13 = sshll.u32 %s5820_s19, 4  ;;  %s5930_s3 = scalar_lea.hbm %s5993_s9, %s4085_s25  ;;  %s5935_s13 = int_to_ptr.vmem [resolvable:$true] %s3231_s13 }
  0x82   : > { %s4084_s17 = smul.u32 80, %s425_s15  ;;  %v4193_v12 = vld [vmem:[%s4725_s29 + $0x10] sm:$0xff]   ;;  %v4195_v16 = vld [vmem:[#allocation7 + $0x28] sm:$0xff]   ;;  %v431_v17 = vld [vmem:[%s5986_s2 + $0x8] sm:$0xff]  ;;  %s1102_s15 = sld [smem:[#allocation12]] }
  0x83   : > { %v430_v14 = vld [vmem:[%s5986_s2] sm:$0xff]  ;;  %v432_v15 = vld [vmem:[%s5986_s2 + $0x10] sm:$0xff]  ;;  %v4194_v18 = vld [vmem:[%s4725_s29 + $0x18] sm:$0xff]   ;;  %s3218_s6 = scalar_lea.sflag [#allocation5], %s4719_s14  ;;  %p6166_p13 = scmp.ne.s32.totalorder %s6033_s23, 0 }
  0x84   : > { %4012 = vmatpush3.bf16.msra.mxu1 %v4182_v1  ;;  %s4749_s21 = scalar_lea.vmem %s5984_s0, %s4084_s17  ;;  %722 = vperm.xlu0 %4179, %v430_v14   ;;  %v433_v19 = vld [vmem:[%s5986_s2 + $0x18] sm:$0xff]  ;;  %v4196_v20 = vld [vmem:[%s4725_s29 + $0x20] sm:$0xff]   ;;  %v4199_v23 = vld [vmem:[#allocation7 + $0x18] sm:$0xff]   ;;  %v4509_v14 = vmov 0.0   ;;  %s4511_s18 = smov [#allocation13]  }
  0x85   : > { %4013 = vmatprep.subr.bf16.mxu1 %v4183_v3  ;;  %732 = vperm.xlu1 %4180, %v432_v15   ;;  %v4197_v21 = vld [vmem:[#allocation7 + $0x20] sm:$0xff]   ;;  %v434_v22 = vld [vmem:[%s5986_s2 + $0x20] sm:$0xff]  ;;  %v435_v24 = vld [vmem:[%s5986_s2 + $0x28] sm:$0xff]  ;;  %451 = vst [vmem:[#allocation2 + $0x8] sm:$0xff] %v4509_v14 }
  0x86   : > { %v436_v25 = vld [vmem:[%s5986_s2 + $0x30] sm:$0xff]  ;;  %v4198_v26 = vld [vmem:[%s4725_s29 + $0x28] sm:$0xff]   ;;  %v4202_v29 = vld [vmem:[#allocation7 + $0x10] sm:$0xff]   ;;  %452 = vst [vmem:[#allocation2 + $0x10] sm:$0xff] %v4509_v14 }
  0x87   : > { %v437_v27 = vld [vmem:[%s5986_s2 + $0x38] sm:$0xff]  ;;  %v4200_v28 = vld [vmem:[%s4725_s29 + $0x30] sm:$0xff]   ;;  %v439_v31 = vld [vmem:[%s5986_s2 + $0x48] sm:$0xff]  ;;  %450 = vst [vmem:[#allocation2] sm:$0xff] %v4509_v14 }
  0x88   : > { %4014 = vmatpush3.bf16.msra.mxu1 %v4183_v3  ;;  %727 = vperm.xlu0 %4179, %v431_v17   ;;  %v438_v30 = vld [vmem:[%s5986_s2 + $0x40] sm:$0xff]  ;;  %v4203_v32 = vld [vmem:[#allocation7 + $0x8] sm:$0xff]   ;;  %v440_v33 = vld [vmem:[%s5986_s2 + $0x50] sm:$0xff]  ;;  %453 = vst [vmem:[#allocation2 + $0xb8] sm:$0xff] %v4509_v14 }
  0x89   : > { %4015 = vmatprep.subr.bf16.mxu1 %v4184_v4  ;;  %737 = vperm.xlu1 %4180, %v433_v19   ;;  %v4201_v34 = vld [vmem:[%s4725_s29 + $0x38] sm:$0xff]   ;;  %v4204_v36 = vld [vmem:[%s4725_s29 + $0x40] sm:$0xff]   ;;  %v4205_v41 = vld [vmem:[%s4725_s29 + $0x48] sm:$0xff]   ;;  %454 = vst [vmem:[#allocation2 + $0xc0] sm:$0xff] %v4509_v14 }
  0x8a   : > { %v441_v35 = vld [vmem:[%s5986_s2 + $0x58] sm:$0xff]  ;;  %v4206_v37 = vld [vmem:[#allocation7] sm:$0xff]   ;;  %v442_v38 = vld [vmem:[%s5986_s2 + $0x60] sm:$0xff]  ;;  %455 = vst [vmem:[#allocation2 + $0xc8] sm:$0xff] %v4509_v14 }
  0x8b   : > { %v443_v39 = vld [vmem:[%s5986_s2 + $0x68] sm:$0xff]  ;;  %v444_v40 = vld [vmem:[%s5986_s2 + $0x70] sm:$0xff]  ;;  %v445_v42 = vld [vmem:[%s5986_s2 + $0x78] sm:$0xff] }
  0x8c   : > { %4016 = vmatpush3.bf16.msra.mxu1 %v4184_v4  ;;  %742 = vperm.xlu0 %4179, %v434_v22   ;;  %v4207_v43 = vld [vmem:[%s4749_s21] sm:$0xff]   ;;  %v447_v45 = vld [vmem:[%s5986_s2 + $0x88] sm:$0xff]  ;;  %v448_v46 = vld [vmem:[%s5986_s2 + $0x90] sm:$0xff] }
  0x8d   : > { %4017 = vmatprep.subr.bf16.mxu1 %v4185_v6  ;;  %747 = vperm.xlu1 %4180, %v435_v24   ;;  %v446_v44 = vld [vmem:[%s5986_s2 + $0x80] sm:$0xff]  ;;  %v4208_v47 = vld [vmem:[%s4749_s21 + $0x8] sm:$0xff]   ;;  %v449_v48 = vld [vmem:[%s5986_s2 + $0x98] sm:$0xff] }
  0x8e   : > { %v4209_v49 = vld [vmem:[%s4749_s21 + $0x10] sm:$0xff]   ;;  %v4210_v50 = vld [vmem:[%s4749_s21 + $0x18] sm:$0xff]   ;;  %v4211_v51 = vld [vmem:[%s4749_s21 + $0x20] sm:$0xff]  }
  0x8f   : > { %v4212_v52 = vld [vmem:[%s4749_s21 + $0x28] sm:$0xff]   ;;  %v4213_v53 = vld [vmem:[%s4749_s21 + $0x30] sm:$0xff]   ;;  %v4214_v54 = vld [vmem:[%s4749_s21 + $0x38] sm:$0xff]  }
  0x90   : > { %4018 = vmatpush3.bf16.msra.mxu1 %v4185_v6  ;;  %752 = vperm.xlu0 %4179, %v436_v25   ;;  %v4215_v55 = vld [vmem:[%s4749_s21 + $0x40] sm:$0xff]   ;;  %v4216_v56 = vld [vmem:[%s4749_s21 + $0x48] sm:$0xff]   ;;  %v4222_v61 = vld [vmem:[#allocation10 + $0x68] sm:$0xff]   ;;  %s4423_s21 = scalar_lea.vmem %s5935_s13, 1280 }
  0x91   : > { %4019 = vmatprep.subr.bf16.mxu1 %v4186_v7  ;;  %757 = vperm.xlu1 %4180, %v437_v27   ;;  %v4217_v57 = vld [vmem:[#allocation10 + $0x78] sm:$0xff]   ;;  %v4219_v59 = vld [vmem:[#allocation10 + $0x70] sm:$0xff]   ;;  %v4224_v62 = vld [vmem:[#allocation10 + $0x28] sm:$0xff]   ;;  %p4424_p9 = scmp.ne.s32.totalorder %s5935_s13, %s4423_s21 }
  0x92   : > { %v4218_v58 = vld [vmem:[#allocation10 + $0x38] sm:$0xff]   ;;  %v4220_v60 = vld [vmem:[#allocation10 + $0x30] sm:$0xff]   ;;  %v4226_v1 = vld [vmem:[#allocation10 + $0x60] sm:$0xff]  }
  0x93   : > { %v4221_v63 = vld [vmem:[#allocation10 + $0xf8] sm:$0xff]   ;;  %v4228_v2 = vld [vmem:[#allocation10 + $0x20] sm:$0xff]   ;;  %v4225_v3 = vld [vmem:[#allocation10 + $0xf0] sm:$0xff]   ;;  %p4425_p3 = pnand %p4424_p9, %p6166_p13 }
  0x94   : > { %4020 = vmatpush3.bf16.msra.mxu1 %v4186_v7  ;;  %762 = vperm.xlu0 %4179, %v438_v30   ;;  %v4223_v0 = vld [vmem:[#allocation10 + $0xb8] sm:$0xff]   ;;  %v4227_v4 = vld [vmem:[#allocation10 + $0xb0] sm:$0xff]   ;;  %v4229_v7 = vld [vmem:[#allocation10 + $0xe8] sm:$0xff]  }
  0x95   : > { %4021 = vmatprep.subr.bf16.mxu1 %v4187_v8  ;;  %767 = vperm.xlu1 %4180, %v439_v31   ;;  %v4230_v5 = vld [vmem:[#allocation10 + $0x58] sm:$0xff]   ;;  %v4240_v15 = vld [vmem:[#allocation10 + $0x8] sm:$0xff]   ;;  %v4242_v19 = vld [vmem:[#allocation10 + $0x40] sm:$0xff]   ;;  %p4426_p2 = pneg %p4425_p3 }
  0x96   : > { %3629 = vmatprep.subr.bf16.mxu0 %v4221_v63  ;;  %v4232_v6 = vld [vmem:[#allocation10 + $0x18] sm:$0xff]   ;;  %v4241_v22 = vld [vmem:[#allocation10 + $0xd0] sm:$0xff]   ;;  %v4246_v30 = vld [vmem:[#allocation10 + $0x88] sm:$0xff]  }
  0x97   : > { %3630 = vmatpush3.bf16.msra.mxu0 %v4223_v0  ;;  %v4239_v17 = vld [vmem:[#allocation10 + $0x98] sm:$0xff]  }
  0x98   : > { %4022 = vmatpush3.bf16.msra.mxu1 %v4187_v8  ;;  %772 = vperm.xlu0 %4179, %v440_v33   ;;  %v4231_v8 = vld [vmem:[#allocation10 + $0xa8] sm:$0xff]   ;;  %v1341_v24 = vld [vmem:[#allocation2 + $0x7] sm:$0xff]  ;;  %v1342_v25 = vld [vmem:[#allocation2 + $0xf] sm:$0xff] }
  0x99   : > { %4023 = vmatprep.subr.bf16.mxu1 %v4188_v9  ;;  %777 = vperm.xlu1 %4180, %v441_v35   ;;  %v1361_v27 = vpack.c.bf16 %v1342_v25, %v1341_v24 }
  0x9a   : > { %3631 = vmatprep.subr.bf16.mxu0 %v4225_v3 }
  0x9b   : > { %3632 = vmatpush3.bf16.msra.mxu0 %v4227_v4 }
  0x9c   : > { %4024 = vmatpush3.bf16.msra.mxu1 %v4188_v9  ;;  %782 = vperm.xlu0 %4179, %v442_v38   ;;  %v4234_v9 = vld [vmem:[#allocation10 + $0x50] sm:$0xff]  }
  0x9d   : > { %4045 = vmatprep.subr.bf16.mxu1 %v4191_v10  ;;  %787 = vperm.xlu1 %4180, %v443_v39   ;;  %v4249_v39 = vld [vmem:[#allocation10 + $0x178] sm:$0xff]  }
  0x9e   : > { %3633 = vmatprep.subr.bf16.mxu0 %v4229_v7 }
  0x9f   : > { %4026 = vmatmul.mubr.bf16.vlgmr.msra.gmra.mxu1 %v4190_v11  ;;  %3634 = vmatpush3.bf16.msra.mxu0 %v4231_v8  ;;  %v4233_v11 = vld [vmem:[#allocation10 + $0xe0] sm:$0xff]  }
  0xa0   : > { %4046 = vmatpush3.bf16.msra.mxu1 %v4191_v10  ;;  %4029 = vmatprep.mubr.bf16.mxu1 %v4193_v12  ;;  %v4236_v10 = vld [vmem:[#allocation10 + $0x10] sm:$0xff]   ;;  %v4235_v12 = vld [vmem:[#allocation10 + $0xa0] sm:$0xff]  }
  0xa1   : > { %4047 = vmatprep.subr.bf16.mxu1 %v4192_v13  ;;  %792 = vperm.xlu0 %4179, %v444_v40  }
  0xa2   : > { %797 = vperm.xlu1 %4180, %v445_v42   ;;  %3635 = vmatprep.subr.bf16.mxu0 %v4233_v11 }
  0xa3   : > { %3636 = vmatpush3.bf16.msra.mxu0 %v4235_v12 }
  0xa4   : > { %4048 = vmatpush3.bf16.msra.mxu1 %v4192_v13  ;;  %v4238_v13 = vld [vmem:[#allocation10 + $0x48] sm:$0xff]  }
  0xa5   : > { %4049 = vmatprep.subr.bf16.mxu1 %v4195_v16  ;;  %802 = vperm.xlu0 %4179, %v446_v44  }
  0xa6   : > { %807 = vperm.xlu1 %4180, %v447_v45  }
  0xa7   : > { %4030 = vmatmul.mubr.bf16.gmra.mxu1 %v4194_v18 }
  0xa8   : > { %4050 = vmatpush3.bf16.msra.mxu1 %v4195_v16  ;;  %4033 = vmatprep.mubr.bf16.mxu1 %v4196_v20  ;;  %v4237_v16 = vld [vmem:[#allocation10 + $0xd8] sm:$0xff]   ;;  %v4244_v20 = vld [vmem:[#allocation10] sm:$0xff]  }
  0xa9   : > { %4051 = vmatprep.subr.bf16.mxu1 %v4197_v21  ;;  %812 = vperm.xlu0 %4179, %v448_v46  }
  0xaa   : > { %817 = vperm.xlu1 %4180, %v449_v48   ;;  %3637 = vmatprep.subr.bf16.mxu0 %v4237_v16 }
  0xab   : > { %3638 = vmatpush3.bf16.msra.mxu0 %v4239_v17 }
  0xac   : > { %4052 = vmatpush3.bf16.msra.mxu1 %v4197_v21  ;;  %3639 = vmatprep.subr.bf16.mxu0 %v4241_v22 }
  0xad   : > { %4053 = vmatprep.subr.bf16.mxu1 %v4199_v23 }
  0xaf   : > { %4034 = vmatmul.mubr.bf16.gmra.mxu1 %v4198_v26 }
  0xb0   : > { %4054 = vmatpush3.bf16.msra.mxu1 %v4199_v23  ;;  %4037 = vmatprep.mubr.bf16.mxu1 %v4200_v28  ;;  %v4243_v23 = vld [vmem:[#allocation10 + $0x90] sm:$0xff]   ;;  %v4510_v28 = vmov 0.0|0.0  }
  0xb1   : > { %4055 = vmatprep.subr.bf16.mxu1 %v4202_v29  ;;  %3640 = vmatpush3.bf16.msra.mxu0 %v4243_v23 }
  0xb4   : > { %4056 = vmatpush3.bf16.msra.mxu1 %v4202_v29  ;;  %v4245_v29 = vld [vmem:[#allocation10 + $0xc8] sm:$0xff]  }
  0xb5   : > { %4057 = vmatprep.subr.bf16.mxu1 %v4203_v32  ;;  %3641 = vmatprep.subr.bf16.mxu0 %v4245_v29 }
  0xb6   : > { %3642 = vmatpush3.bf16.msra.mxu0 %v4246_v30 }
  0xb7   : > { %4038 = vmatmul.mubr.bf16.gmra.mxu1 %v4201_v34  ;;  %v4248_v34 = vld [vmem:[#allocation10 + $0x80] sm:$0xff]  }
  0xb8   : > { %4041 = vmatprep.mubr.bf16.mxu1 %v4204_v36  ;;  %4058 = vmatpush3.bf16.msra.mxu1 %v4203_v32  ;;  %v4247_v32 = vld [vmem:[#allocation10 + $0xc0] sm:$0xff]  }
  0xb9   : > { %4059 = vmatprep.subr.bf16.mxu1 %v4206_v37  ;;  %3643 = vmatprep.subr.bf16.mxu0 %v4247_v32 }
  0xba   : > { %3644 = vmatpush3.bf16.msra.mxu0 %v4248_v34 }
  0xbb   : > { %3781 = vmatprep.subr.bf16.mxu0 %v4249_v39 }
  0xbc   : > { %4060 = vmatpush3.bf16.msra.mxu1 %v4206_v37 }
  0xbd   : > { %3705 = vmatprep.subr.bf16.mxu1 %v4217_v57 }
  0xbf   : > { %4042 = vmatmul.mubr.bf16.gmra.mxu1 %v4205_v41 }
  0xc0   : > { %4061 = vmatprep.mubr.bf16.mxu1 %v4207_v43 }
  0xc7   : > { %4062 = vmatmul.mubr.bf16.vlgmr.msra.gmra.mxu1 %v4208_v47 }
  0xc8   : > { %4065 = vmatprep.mubr.bf16.mxu1 %v4209_v49  ;;  %3706 = vmatpush3.bf16.msra.mxu1 %v4218_v58  ;;  %v4885_v58 = vld [vmem:[%s5991_s7] ss:$0 sm:$0xff] }
  0xc9   : > { %3707 = vmatprep.subr.bf16.mxu1 %v4219_v59 }
  0xcc   : > { %3708 = vmatpush3.bf16.msra.mxu1 %v4220_v60 }
  0xcd   : > { %3709 = vmatprep.subr.bf16.mxu1 %v4222_v61 }
  0xcf   : > { %4066 = vmatmul.mubr.bf16.gmra.mxu1 %v4210_v50 }
  0xd0   : > { %4069 = vmatprep.mubr.bf16.mxu1 %v4211_v51  ;;  %3710 = vmatpush3.bf16.msra.mxu1 %v4224_v62 }
  0xd1   : > { %3711 = vmatprep.subr.bf16.mxu1 %v4226_v1 }
  0xd4   : > { %3712 = vmatpush3.bf16.msra.mxu1 %v4228_v2 }
  0xd5   : > { %3713 = vmatprep.subr.bf16.mxu1 %v4230_v5 }
  0xd7   : > { %4070 = vmatmul.mubr.bf16.gmra.mxu1 %v4212_v52 }
  0xd8   : > { %4073 = vmatprep.mubr.bf16.mxu1 %v4213_v53  ;;  %3714 = vmatpush3.bf16.msra.mxu1 %v4232_v6 }
  0xd9   : > { %3715 = vmatprep.subr.bf16.mxu1 %v4234_v9 }
  0xdc   : > { %3716 = vmatpush3.bf16.msra.mxu1 %v4236_v10 }
  0xdd   : > { %3717 = vmatprep.subr.bf16.mxu1 %v4238_v13 }
  0xdf   : > { %4074 = vmatmul.mubr.bf16.gmra.mxu1 %v4214_v54 }
  0xe0   : > { %4077 = vmatprep.mubr.bf16.mxu1 %v4215_v55  ;;  %3718 = vmatpush3.bf16.msra.mxu1 %v4240_v15 }
  0xe1   : > { %3719 = vmatprep.subr.bf16.mxu1 %v4242_v19 }
  0xe4   : > { %3720 = vmatpush3.bf16.msra.mxu1 %v4244_v20 }
  0xe7   : > { %4078 = vmatmul.mubr.bf16.gmra.mxu1 %v4216_v56 }
  0xe8   : > { %1836 = vmatprep.mubr.bf16.mxu1 %v4510_v28 }
  0xef   : > { %1837 = vmatmul.mubr.bf16.vlgmr.msra.gmra.mxu1 %v1361_v27 }
  0xff   : > { %v4858_v45 = vpop.permute.xlu0 %722 }
 0x100   : > { %v4862_v47 = vpop.permute.xlu1 %732 }
 0x101   : > { %6060 = vst [vmem:[#allocation34_spill] sm:$0xff] %v4862_v47 }
 0x103   : > { %v4868_v50 = vpop.permute.xlu0 %727 }
 0x104   : > { %6063 = vst [vmem:[#allocation37_spill] sm:$0xff] %v4868_v50  ;;  %v4872_v52 = vpop.permute.xlu1 %737 }
 0x105   : > { %6065 = vst [vmem:[#allocation39_spill] sm:$0xff] %v4872_v52 }
 0x107   : > { %v4878_v55 = vpop.permute.xlu0 %742 }
 0x108   : > { %v4880_v57 = vpop.permute.xlu1 %747 }
 0x10b   : > { %v4890_v62 = vpop.permute.xlu0 %752 }
 0x10c   : > { %v4898_v2 = vpop.permute.xlu1 %757 }
 0x10f   : > { %v4911_v10 = vpop.permute.xlu0 %762 }
 0x110   : > { %v4919_v17 = vpop.permute.xlu1 %767 }
 0x113   : > { %v4931_v39 = vpop.permute.xlu0 %772 }
 0x114   : > { %6068 = vst [vmem:[#allocation42_spill] sm:$0xff] %v4931_v39 }
 0x15f   : > { %v4830_v18 = vpop.f32.mrf.mxu1 }
 0x160   : > { %6045 = vst [vmem:[#allocation19_spill] sm:$0xff] %v4830_v18 }
 0x161   : > { %v4832_v21 = vpop.f32.mrf.mxu1 }
 0x162   : > { %6046 = vst [vmem:[#allocation20_spill] sm:$0xff] %v4832_v21 }
 0x163   : > { %v4834_v26 = vpop.f32.mrf.mxu1 }
 0x164   : > { %6047 = vst [vmem:[#allocation21_spill] sm:$0xff] %v4834_v26 }
 0x165   : > { %v4836_v31 = vpop.f32.mrf.mxu1 }
 0x166   : > { %6048 = vst [vmem:[#allocation22_spill] sm:$0xff] %v4836_v31 }
 0x167   : > { %v4838_v33 = vpop.f32.mrf.mxu1 }
 0x168   : > { %6049 = vst [vmem:[#allocation23_spill] sm:$0xff] %v4838_v33 }
 0x169   : > { %v4840_v35 = vpop.f32.mrf.mxu1 }
 0x16a   : > { %6050 = vst [vmem:[#allocation24_spill] sm:$0xff] %v4840_v35 }
 0x16b   : > { %v4842_v36 = vpop.f32.mrf.mxu1 }
 0x16c   : > { %6051 = vst [vmem:[#allocation25_spill] sm:$0xff] %v4842_v36  ;;  %v4277_v36 = vld [vmem:[#allocation10 + $0x1c0] sm:$0xff]  }
 0x16d   : > { %v4844_v37 = vpop.f32.mrf.mxu1 }
 0x16e   : > { %6052 = vst [vmem:[#allocation26_spill] sm:$0xff] %v4844_v37  ;;  %v4276_v37 = vld [vmem:[#allocation10 + $0x188] sm:$0xff]  }
 0x16f   : > { %v4846_v38 = vpop.f32.mrf.mxu1 }
 0x170   : > { %6053 = vst [vmem:[#allocation27_spill] sm:$0xff] %v4846_v38 }
 0x171   : > { %v4848_v40 = vpop.f32.mrf.mxu1 }
 0x172   : > { %6054 = vst [vmem:[#allocation28_spill] sm:$0xff] %v4848_v40 }
 0x173   : > { %v4850_v41 = vpop.f32.mrf.mxu1 }
 0x174   : > { %6055 = vst [vmem:[#allocation29_spill] sm:$0xff] %v4850_v41 }
 0x175   : > { %v4852_v42 = vpop.f32.mrf.mxu1 }
 0x176   : > { %6056 = vst [vmem:[#allocation30_spill] sm:$0xff] %v4852_v42 }
 0x177   : > { %v4854_v43 = vpop.f32.mrf.mxu1 }
 0x178   : > { %6057 = vst [vmem:[#allocation31_spill] sm:$0xff] %v4854_v43 }
 0x179   : > { %v4856_v44 = vpop.f32.mrf.mxu1 }
 0x17a   : > { %6058 = vst [vmem:[#allocation32_spill] sm:$0xff] %v4856_v44 }
 0x17b   : > { %v4860_v46 = vpop.f32.mrf.mxu1 }
 0x17c   : > { %6059 = vst [vmem:[#allocation33_spill] sm:$0xff] %v4860_v46 }
 0x17d   : > { %v4864_v48 = vpop.f32.mrf.mxu1 }
 0x17e   : > { %6061 = vst [vmem:[#allocation35_spill] sm:$0xff] %v4864_v48 }
 0x17f   : > { %v4866_v49 = vpop.f32.mrf.mxu1 }
 0x180   : > { %6062 = vst [vmem:[#allocation36_spill] sm:$0xff] %v4866_v49 }
 0x181   : > { %v4870_v51 = vpop.f32.mrf.mxu1 }
 0x182   : > { %6064 = vst [vmem:[#allocation38_spill] sm:$0xff] %v4870_v51 }
 0x183   : > { %v4874_v53 = vpop.f32.mrf.mxu1 }
 0x184   : > { %6066 = vst [vmem:[#allocation40_spill] sm:$0xff] %v4874_v53 }
 0x185   : > { %v4876_v54 = vpop.f32.mrf.mxu1 }
 0x186   : > { %6067 = vst [vmem:[#allocation41_spill] sm:$0xff] %v4876_v54 }
 0x187   : > { %v4063_v56 = vpop.f32.mrf.mxu1 }
 0x188   : > { %v4893_v63 = vadd.f32 %v4063_v56, %v4885_v58 }
 0x189   : > { %v1023_v59 = vpop.f32.mrf.mxu1 }
 0x18a   : > { %v4888_v60 = vadd.f32 %v4885_v58, %v1023_v59  ;;  %v1105_v6 = vmul.f32 %v4893_v63, %v4862_v47 }
 0x18b   : > { %v4064_v61 = vpop.f32.mrf.mxu1 }
 0x18c   : > { %v4896_v0 = vadd.f32 %v4064_v61, %v4885_v58  ;;  %v1103_v3 = vmul.f32 %v4888_v60, %v4858_v45  ;;  %v1150_v19 = vmul.f32 %v1105_v6, %v1105_v6 }
 0x18d   : > { %v1026_v1 = vpop.f32.mrf.mxu1 }
 0x18e   : > { %v4903_v4 = vadd.f32 %v4885_v58, %v1026_v1  ;;  %v1106_v8 = vmul.f32 %v4896_v0, %v4872_v52  ;;  %v1148_v11 = vmul.f32 %v1103_v3, %v1103_v3 }
 0x18f   : > { %v4067_v5 = vpop.f32.mrf.mxu1 }
 0x190   : > { %v1104_v7 = vmul.f32 %v4903_v4, %v4868_v50  ;;  %v4917_v15 = vadd.f32 %v4067_v5, %v4885_v58  ;;  %v1151_v24 = vmul.f32 %v1106_v8, %v1106_v8 }
 0x191   : > { %v1039_v9 = vpop.f32.mrf.mxu1 }
 0x192   : > { %v1123_v12 = vadd.f32 %v1104_v7, %v1103_v3  ;;  %v1149_v13 = vmul.f32 %v1104_v7, %v1104_v7  ;;  %v4914_v14 = vadd.f32 %v4885_v58, %v1039_v9  ;;  %v1109_v32 = vmul.f32 %v4917_v15, %v4890_v62  ;;  %v4258_v3 = vld [vmem:[#allocation10 + $0x1f8] sm:$0xff]   ;;  %v4261_v7 = vld [vmem:[#allocation10 + $0x1f0] sm:$0xff]  }
 0x193   : > { %v4068_v16 = vpop.f32.mrf.mxu1  ;;  %3857 = vmatprep.subr.bf16.mxu1 %v4258_v3 }
 0x194   : > { %v1124_v20 = vadd.f32 %v1123_v12, %v1105_v6  ;;  %v1168_v22 = vadd.f32 %v1149_v13, %v1148_v11  ;;  %v1107_v23 = vmul.f32 %v4914_v14, %v4878_v55  ;;  %v4924_v29 = vadd.f32 %v4068_v16, %v4885_v58  ;;  %v4260_v6 = vld [vmem:[#allocation10 + $0x1b8] sm:$0xff]  }
 0x195   : > { %v1042_v25 = vpop.f32.mrf.mxu1  ;;  %3858 = vmatpush3.bf16.msra.mxu1 %v4260_v6 }
 0x196   : > { %v1169_v27 = vadd.f32 %v1168_v22, %v1150_v19  ;;  %v1125_v28 = vadd.f32 %v1124_v20, %v1106_v8  ;;  %v4927_v30 = vadd.f32 %v4885_v58, %v1042_v25  ;;  %v1152_v59 = vmul.f32 %v1107_v23, %v1107_v23  ;;  %v4935_v8 = vpop.permute.xlu1 %777  ;;  %v4262_v22 = vld [vmem:[#allocation10 + $0x1b0] sm:$0xff]   ;;  %3859 = vmatprep.subr.bf16.mxu1 %v4261_v7 }
 0x197   : > { %v4071_v34 = vpop.f32.mrf.mxu1  ;;  %6069 = vst [vmem:[#allocation43_spill] sm:$0xff] %v4935_v8  ;;  %v1110_v11 = vmul.f32 %v4924_v29, %v4898_v2 }
 0x198   : > { %v1126_v56 = vadd.f32 %v1125_v28, %v1107_v23  ;;  %v1170_v61 = vadd.f32 %v1169_v27, %v1151_v24  ;;  %v1108_v1 = vmul.f32 %v4927_v30, %v4880_v57  ;;  %v4940_v16 = vadd.f32 %v4071_v34, %v4885_v58 }
 0x199   : > { %v1055_v5 = vpop.f32.mrf.mxu1  ;;  %v1154_v23 = vmul.f32 %v1109_v32, %v1109_v32  ;;  %v1155_v34 = vmul.f32 %v1110_v11, %v1110_v11  ;;  %3860 = vmatpush3.bf16.msra.mxu1 %v4262_v22  ;;  %v4267_v22 = vld [vmem:[#allocation10 + $0x1e0] sm:$0xff]  }
 0x19a   : > { %v1171_v9 = vadd.f32 %v1170_v61, %v1152_v59  ;;  %v1127_v12 = vadd.f32 %v1126_v56, %v1108_v1  ;;  %v1153_v13 = vmul.f32 %v1108_v1, %v1108_v1  ;;  %v4943_v19 = vadd.f32 %v4885_v58, %v1055_v5  ;;  %v4950_v59 = vpop.permute.xlu0 %782  ;;  %v4957_v6 = vpop.permute.xlu1 %787 }
 0x19b   : > { %v4072_v20 = vpop.f32.mrf.mxu1  ;;  %6070 = vst [vmem:[#allocation44_spill] sm:$0xff] %v4950_v59  ;;  %6071 = vst [vmem:[#allocation45_spill] sm:$0xff] %v4957_v6 }
 0x19c   : > { %v1128_v24 = vadd.f32 %v1127_v12, %v1109_v32  ;;  %v1172_v25 = vadd.f32 %v1171_v9, %v1153_v13  ;;  %v1111_v27 = vmul.f32 %v4943_v19, %v4911_v10  ;;  %v4948_v28 = vadd.f32 %v4072_v20, %v4885_v58  ;;  %v4263_v20 = vld [vmem:[#allocation10 + $0x1e8] sm:$0xff]  }
 0x19d   : > { %v1058_v56 = vpop.f32.mrf.mxu1  ;;  %v1113_v32 = vmul.f32 %v4940_v16, %v4931_v39  ;;  %3861 = vmatprep.subr.bf16.mxu1 %v4263_v20 }
 0x19e   : > { %v1173_v61 = vadd.f32 %v1172_v25, %v1154_v23  ;;  %v1129_v1 = vadd.f32 %v1128_v24, %v1110_v11  ;;  %v4953_v3 = vadd.f32 %v4885_v58, %v1058_v56  ;;  %v1156_v9 = vmul.f32 %v1111_v27, %v1111_v27  ;;  %v4264_v24 = vld [vmem:[#allocation10 + $0x1a8] sm:$0xff]  }
 0x19f   : > { %v4075_v5 = vpop.f32.mrf.mxu1  ;;  %v1114_v11 = vmul.f32 %v4948_v28, %v4935_v8  ;;  %3862 = vmatpush3.bf16.msra.mxu1 %v4264_v24 }
 0x1a0   : > { %v1130_v7 = vadd.f32 %v1129_v1, %v1111_v27  ;;  %v1174_v12 = vadd.f32 %v1173_v61, %v1155_v34  ;;  %v1112_v13 = vmul.f32 %v4953_v3, %v4919_v17  ;;  %v1158_v1 = vmul.f32 %v1113_v32, %v1113_v32  ;;  %v4268_v34 = vld [vmem:[#allocation10 + $0x1a0] sm:$0xff]   ;;  %v4966_v61 = vpop.permute.xlu0 %792  ;;  %3863 = vmatprep.subr.bf16.mxu1 %v4267_v22  ;;  %v4269_v22 = vld [vmem:[#allocation10 + $0x1d8] sm:$0xff]  }
 0x1a1   : > { %v1071_v23 = vpop.f32.mrf.mxu1  ;;  %6072 = vst [vmem:[#allocation46_spill] sm:$0xff] %v4966_v61  ;;  %v4969_v48 = vadd.f32 %v4075_v5, %v4885_v58 }
 0x1a2   : > { %v1175_v25 = vadd.f32 %v1174_v12, %v1156_v9  ;;  %v1131_v56 = vadd.f32 %v1130_v7, %v1112_v13  ;;  %v1157_v54 = vmul.f32 %v1112_v13, %v1112_v13  ;;  %v4964_v53 = vadd.f32 %v4885_v58, %v1071_v23  ;;  %v4973_v12 = vpop.permute.xlu1 %797 }
 0x1a3   : > { %v4076_v27 = vpop.f32.mrf.mxu1  ;;  %6073 = vst [vmem:[#allocation47_spill] sm:$0xff] %v4973_v12  ;;  %v1159_v13 = vmul.f32 %v1114_v11, %v1114_v11  ;;  %3864 = vmatpush3.bf16.msra.mxu1 %v4268_v34 }
 0x1a4   : > { %v1132_v51 = vadd.f32 %v1131_v56, %v1113_v32  ;;  %v1176_v49 = vadd.f32 %v1175_v25, %v1157_v54  ;;  %v1115_v7 = vmul.f32 %v4964_v53, %v4950_v59  ;;  %v4976_v24 = vadd.f32 %v4076_v27, %v4885_v58  ;;  %3865 = vmatprep.subr.bf16.mxu1 %v4269_v22 }
 0x1a5   : > { %v1074_v9 = vpop.f32.mrf.mxu1  ;;  %v1117_v32 = vmul.f32 %v4969_v48, %v4966_v61 }
 0x1a6   : > { %v1177_v20 = vadd.f32 %v1176_v49, %v1158_v1  ;;  %v1133_v23 = vadd.f32 %v1132_v51, %v1114_v11  ;;  %v4979_v46 = vadd.f32 %v4885_v58, %v1074_v9  ;;  %v1160_v25 = vmul.f32 %v1115_v7, %v1115_v7  ;;  %v4270_v51 = vld [vmem:[#allocation10 + $0x198] sm:$0xff]   ;;  %v4272_v11 = vld [vmem:[#allocation10 + $0x1d0] sm:$0xff]   ;;  %v4985_v1 = vpop.permute.xlu0 %802  ;;  %v4992_v43 = vpop.permute.xlu1 %807 }
 0x1a7   : > { %v4079_v54 = vpop.f32.mrf.mxu1  ;;  %6074 = vst [vmem:[#allocation48_spill] sm:$0xff] %v4985_v1  ;;  %v1118_v34 = vmul.f32 %v4976_v24, %v4973_v12  ;;  %3866 = vmatpush3.bf16.msra.mxu1 %v4270_v51  ;;  %6075 = vst [vmem:[#allocation49_spill] sm:$0xff] %v4992_v43  ;;  %v1162_v42 = vmul.f32 %v1117_v32, %v1117_v32 }
 0x1a8   : > { %v1134_v5 = vadd.f32 %v1133_v23, %v1115_v7  ;;  %v1178_v56 = vadd.f32 %v1177_v20, %v1159_v13  ;;  %v1116_v44 = vmul.f32 %v4979_v46, %v4957_v6  ;;  %v4274_v20 = vld [vmem:[#allocation10 + $0x190] sm:$0xff]   ;;  %3867 = vmatprep.subr.bf16.mxu1 %v4272_v11 }
 0x1a9   : > { %v1087_v49 = vpop.f32.mrf.mxu1 }
 0x1aa   : > { %v1179_v27 = vadd.f32 %v1178_v56, %v1160_v25  ;;  %v4988_v9 = vadd.f32 %v4885_v58, %v1087_v49  ;;  %v1135_v23 = vadd.f32 %v1134_v5, %v1116_v44  ;;  %v1161_v7 = vmul.f32 %v1116_v44, %v1116_v44  ;;  %v5005_v11 = vpop.permute.xlu0 %812 }
 0x1ab   : > { %v4080_v13 = vpop.f32.mrf.mxu1  ;;  %v4995_v25 = vadd.f32 %v4079_v54, %v4885_v58  ;;  %v1163_v44 = vmul.f32 %v1118_v34, %v1118_v34  ;;  %3868 = vmatpush3.bf16.msra.mxu1 %v4274_v20  ;;  %6076 = vst [vmem:[#allocation50_spill] sm:$0xff] %v5005_v11 }
 0x1ac   : > { %v1136_v41 = vadd.f32 %v1135_v23, %v1117_v32  ;;  %v1180_v40 = vadd.f32 %v1179_v27, %v1161_v7  ;;  %v1119_v56 = vmul.f32 %v4988_v9, %v4985_v1  ;;  %v5003_v38 = vadd.f32 %v4080_v13, %v4885_v58  ;;  %v4275_v32 = vld [vmem:[#allocation10 + $0x1c8] sm:$0xff]   ;;  %v4278_v13 = vld [vmem:[#allocation10 + $0x180] sm:$0xff]  }
 0x1ad   : > { %v1090_v22 = vpop.f32.mrf.mxu1  ;;  %v1121_v27 = vmul.f32 %v4995_v25, %v5005_v11  ;;  %3869 = vmatprep.subr.bf16.mxu1 %v4275_v32 }
 0x1ae   : > { %v5000_v49 = vadd.f32 %v4885_v58, %v1090_v22  ;;  %v1181_v5 = vadd.f32 %v1180_v40, %v1162_v42  ;;  %v1137_v51 = vadd.f32 %v1136_v41, %v1118_v34  ;;  %v1164_v7 = vmul.f32 %v1119_v56, %v1119_v56  ;;  %v5011_v40 = vpop.permute.xlu1 %817 }
 0x1af   : > { %6077 = vst [vmem:[#allocation51_spill] sm:$0xff] %v5011_v40  ;;  %v1122_v58 = vmul.f32 %v5003_v38, %v5011_v40  ;;  %3870 = vmatpush3.bf16.msra.mxu1 %v4276_v37  ;;  %v1166_v20 = vmul.f32 %v1121_v27, %v1121_v27 }
 0x1b0   : > { %v1120_v54 = vmul.f32 %v5000_v49, %v4992_v43  ;;  %v1138_v23 = vadd.f32 %v1137_v51, %v1119_v56  ;;  %v1182_v22 = vadd.f32 %v1181_v5, %v1163_v44  ;;  %3871 = vmatprep.subr.bf16.mxu1 %v4277_v36 }
 0x1b1   : > { %v1167_v51 = vmul.f32 %v1122_v58, %v1122_v58 }
 0x1b2   : > { %v1165_v41 = vmul.f32 %v1120_v54, %v1120_v54  ;;  %v1183_v42 = vadd.f32 %v1182_v22, %v1164_v7  ;;  %v1139_v34 = vadd.f32 %v1138_v23, %v1120_v54 }
 0x1b3   : > { %3872 = vmatpush3.bf16.msra.mxu1 %v4278_v13 }
 0x1b4   : > { %v1140_v35 = vadd.f32 %v1139_v34, %v1121_v27  ;;  %v1184_v33 = vadd.f32 %v1183_v42, %v1165_v41 }
 0x1b6   : > { %v1141_v56 = vadd.f32 %v1140_v35, %v1122_v58  ;;  %v1185_v44 = vadd.f32 %v1184_v33, %v1166_v20  ;;  %v5019_v58 = vstv %s1102_s15  ;;  %s4427_s15 = sshll.u32 %s4511_s18, 4  ;;  %s4428_s15 = int_to_ptr.vmem [resolvable:$false] %s4427_s15 }
 0x1b7   : > { %s4429_s17 = scalar_lea.vmem %s4428_s15, 2560  ;;  %p4430_p10 = scmp.lt.s32.totalorder %s5935_s13, %s4428_s15 }
 0x1b8   : > { %v1142_v5 = vrot.slane %v1141_v56, 4  ;;  %v1186_v31 = vadd.f32 %v1185_v44, %v1167_v51  ;;  %p4431_p6 = scmp.lt.s32.totalorder %s4429_s17, %s4423_s21 }
 0x1ba   : > { %v1143_v26 = vadd.f32 %v1142_v5, %v1141_v56  ;;  %v1187_v21 = vrot.slane %v1186_v31, 4  ;;  %p4432_p4 = por %p4431_p6, %p4430_p10 }
 0x1bc   : > { %v1144_v32 = vrot.slane %v1143_v26, 2  ;;  %v1188_v7 = vadd.f32 %v1187_v21, %v1186_v31  ;;  %p4433_p8 = pnand %p4432_p4, %p4426_p2 }
 0x1be   : > { %v1145_v22 = vadd.f32 %v1144_v32, %v1143_v26  ;;  %v1189_v18 = vrot.slane %v1188_v7, 2 }
 0x1c0   : > { %v1146_v40 = vrot.slane %v1145_v22, 1  ;;  %v1190_v54 = vadd.f32 %v1189_v18, %v1188_v7 }
 0x1c2   : > { %v1147_v37 = vadd.f32 %v1146_v40, %v1145_v22  ;;  %v1191_v23 = vrot.slane %v1190_v54, 1 }
 0x1c4   : > { %v1192_v36 = vadd.f32 %v1191_v23, %v1190_v54  ;;  %v5015_v11 = vmul.f32 0.015625, %v1147_v37 }
 0x1c6   : > { %v1194_v27 = vmul.f32 0.015625, %v1192_v36  ;;  %v1195_v33 = vmul.f32 %v5015_v11, %v5015_v11  ;;  %v1215_v21 = vsub.f32 %v5000_v49, %v5015_v11  ;;  %v1198_v18 = vsub.f32 %v4888_v60, %v5015_v11 }
 0x1c7   : > { %v1199_v26 = vsub.f32 %v4903_v4, %v5015_v11  ;;  %v1200_v31 = vsub.f32 %v4893_v63, %v5015_v11  ;;  %v1201_v40 = vsub.f32 %v4896_v0, %v5015_v11  ;;  %v1202_v34 = vsub.f32 %v4914_v14, %v5015_v11 }
 0x1c8   : > { %v1196_v35 = vsub.f32 %v1194_v27, %v1195_v33  ;;  %v1203_v13 = vsub.f32 %v4927_v30, %v5015_v11  ;;  %v1204_v49 = vsub.f32 %v4917_v15, %v5015_v11  ;;  %v1205_v60 = vsub.f32 %v4924_v29, %v5015_v11 }
 0x1c9   : > { %v1206_v4 = vsub.f32 %v4943_v19, %v5015_v11  ;;  %v1207_v63 = vsub.f32 %v4953_v3, %v5015_v11  ;;  %v1208_v0 = vsub.f32 %v4940_v16, %v5015_v11  ;;  %v1209_v14 = vsub.f32 %v4948_v28, %v5015_v11 }
 0x1ca   : > { %v1197_v41 = vmax.f32 %v1196_v35, 0.0  ;;  %v1210_v15 = vsub.f32 %v4964_v53, %v5015_v11  ;;  %v1211_v29 = vsub.f32 %v4979_v46, %v5015_v11  ;;  %v1212_v30 = vsub.f32 %v4969_v48, %v5015_v11 }
 0x1cb   : > { %v1213_v46 = vsub.f32 %v4976_v24, %v5015_v11  ;;  %v4252_v24 = vld [vmem:[#allocation10 + $0x130] sm:$0xff]  }
 0x1cc   : > { %v1218_v42 = vadd.f32 1e-05, %v1197_v41 }
 0x1ce   : > { %4297 = vrsqrt.f32 %v1218_v42 }
 0x1db   : > { %v5045_v20 = vpop.eup %4297 }
 0x1dc   : > { %v1237_v19 = vmul.f32 %v5045_v20, %v1215_v21  ;;  %v1220_v3 = vmul.f32 %v5045_v20, %v1198_v18  ;;  %v1221_v51 = vmul.f32 %v5045_v20, %v1199_v26  ;;  %v1222_v56 = vmul.f32 %v5045_v20, %v1200_v31 }
 0x1dd   : > { %v1223_v44 = vmul.f32 %v5045_v20, %v1201_v40  ;;  %v1224_v5 = vmul.f32 %v5045_v20, %v1202_v34  ;;  %v1225_v32 = vmul.f32 %v5045_v20, %v1203_v13  ;;  %v1226_v7 = vmul.f32 %v5045_v20, %v1204_v49 }
 0x1de   : > { %vm1257_vm0 = vcmp.ge.f32.partialorder %v1237_v19, 0.0  ;;  %v1278_v22 = vmul.f32 %v5019_v58, %v1237_v19  ;;  %vm1240_vm1 = vcmp.ge.f32.partialorder %v1220_v3, 0.0  ;;  %vm1241_vm2 = vcmp.ge.f32.partialorder %v1221_v51, 0.0 }
 0x1df   : > { %v1261_v54 = vmul.f32 %v5019_v58, %v1220_v3  ;;  %v1262_v37 = vmul.f32 %v5019_v58, %v1221_v51  ;;  %vm1242_vm3 = vcmp.ge.f32.partialorder %v1222_v56, 0.0  ;;  %vm1243_vm4 = vcmp.ge.f32.partialorder %v1223_v44, 0.0 }
 0x1e0   : > { %v1298_v23 = vsel %vm1257_vm0, %v1237_v19, %v1278_v22  ;;  %v1263_v36 = vmul.f32 %v5019_v58, %v1222_v56  ;;  %v1264_v27 = vmul.f32 %v5019_v58, %v1223_v44  ;;  %vm1244_vm5 = vcmp.ge.f32.partialorder %v1224_v5, 0.0 }
 0x1e1   : > { %v5069_v33 = vmul.f32 %v1298_v23, %v4992_v43  ;;  %v1281_v35 = vsel %vm1240_vm1, %v1220_v3, %v1261_v54  ;;  %v1282_v41 = vsel %vm1241_vm2, %v1221_v51, %v1262_v37  ;;  %vm1245_vm6 = vcmp.ge.f32.partialorder %v1225_v32, 0.0 }
 0x1e2   : > { %v1301_v42 = vmul.f32 %v1281_v35, %v4858_v45  ;;  %v1302_v21 = vmul.f32 %v1282_v41, %v4868_v50  ;;  %v1283_v18 = vsel %vm1242_vm3, %v1222_v56, %v1263_v36  ;;  %v1284_v26 = vsel %vm1243_vm4, %v1223_v44, %v1264_v27  ;;  %v1433_v41 = vld [vmem:[#allocation2 + $0x9] sm:$0xff] }
 0x1e3   : > { %1338 = vst [vmem:[#allocation2 + $0xa0] sm:$0xff] %v5069_v33  ;;  %v1303_v31 = vmul.f32 %v1283_v18, %v4862_v47  ;;  %v1304_v40 = vmul.f32 %v1284_v26, %v4872_v52  ;;  %v1265_v34 = vmul.f32 %v5019_v58, %v1224_v5  ;;  %v1266_v13 = vmul.f32 %v5019_v58, %v1225_v32 }
 0x1e4   : > { %1321 = vst [vmem:[#allocation2 + $0x18] sm:$0xff] %v1301_v42  ;;  %1322 = vst [vmem:[#allocation2 + $0x20] sm:$0xff] %v1302_v21  ;;  %v5078_v49 = vpack.c.bf16 %v1302_v21, %v1301_v42  ;;  %v1227_v19 = vmul.f32 %v5045_v20, %v1205_v60  ;;  %vm1246_vm7 = vcmp.ge.f32.partialorder %v1226_v7, 0.0  ;;  %v1267_v3 = vmul.f32 %v5019_v58, %v1226_v7 }
 0x1e5   : > { %1323 = vst [vmem:[#allocation2 + $0x28] sm:$0xff] %v1303_v31  ;;  %1324 = vst [vmem:[#allocation2 + $0x30] sm:$0xff] %v1304_v40  ;;  %v5082_v51 = vpack.c.bf16 %v1304_v40, %v1303_v31  ;;  %v1285_v56 = vsel %vm1244_vm5, %v1224_v5, %v1265_v34  ;;  %v1286_v44 = vsel %vm1245_vm6, %v1225_v32, %v1266_v13 }
 0x1e6   : > { %v1228_v22 = vmul.f32 %v5045_v20, %v1206_v4  ;;  %1844 = vmatprep.mubr.bf16.mxu1 %v5078_v49  ;;  %v1305_v54 = vmul.f32 %v1285_v56, %v4878_v55  ;;  %v1306_v37 = vmul.f32 %v1286_v44, %v4880_v57  ;;  %vm1247_vm8 = vcmp.ge.f32.partialorder %v1227_v19, 0.0  ;;  %v4250_v44 = vld [vmem:[#allocation10 + $0x138] sm:$0xff]  }
 0x1e7   : > { %v1268_v60 = vmul.f32 %v5019_v58, %v1227_v19  ;;  %v1287_v23 = vsel %vm1246_vm7, %v1226_v7, %v1267_v3  ;;  %v1229_v36 = vmul.f32 %v5045_v20, %v1207_v63  ;;  %v1230_v35 = vmul.f32 %v5045_v20, %v1208_v0 }
 0x1e8   : > { %vm1248_vm9 = vcmp.ge.f32.partialorder %v1228_v22, 0.0  ;;  %v1269_v27 = vmul.f32 %v5019_v58, %v1228_v22  ;;  %1325 = vst [vmem:[#allocation2 + $0x38] sm:$0xff] %v1305_v54  ;;  %1326 = vst [vmem:[#allocation2 + $0x40] sm:$0xff] %v1306_v37  ;;  %v5093_v5 = vpack.c.bf16 %v1306_v37, %v1305_v54  ;;  %v1307_v32 = vmul.f32 %v1287_v23, %v4890_v62  ;;  %v4251_v37 = vld [vmem:[#allocation10 + $0x170] sm:$0xff]  }
 0x1e9   : > { %v1288_v4 = vsel %vm1247_vm8, %v1227_v19, %v1268_v60  ;;  %vm1249_vm10 = vcmp.ge.f32.partialorder %v1229_v36, 0.0  ;;  %v1270_v63 = vmul.f32 %v5019_v58, %v1229_v36  ;;  %v1231_v18 = vmul.f32 %v5045_v20, %v1209_v14 }
 0x1ea   : > { %v1308_v7 = vmul.f32 %v1288_v4, %v4898_v2  ;;  %v1289_v42 = vsel %vm1248_vm9, %v1228_v22, %v1269_v27  ;;  %1327 = vst [vmem:[#allocation2 + $0x48] sm:$0xff] %v1307_v32  ;;  %vm1250_vm11 = vcmp.ge.f32.partialorder %v1230_v35, 0.0  ;;  %v1271_v16 = vmul.f32 %v5019_v58, %v1230_v35 }
 0x1eb   : > { %v1309_v21 = vmul.f32 %v1289_v42, %v4911_v10  ;;  %v1343_v26 = vld [vmem:[#allocation2 + $0x17] sm:$0xff]  ;;  %v1344_v0 = vld [vmem:[#allocation2 + $0x1f] sm:$0xff]  ;;  %v1290_v34 = vsel %vm1249_vm10, %v1229_v36, %v1270_v63  ;;  %v1232_v13 = vmul.f32 %v5045_v20, %v1210_v15  ;;  %v1233_v28 = vmul.f32 %v5045_v20, %v1211_v29 }
 0x1ec   : > { %v1434_v31 = vld [vmem:[#allocation2 + $0x11] sm:$0xff]  ;;  %1328 = vst [vmem:[#allocation2 + $0x50] sm:$0xff] %v1308_v7  ;;  %v5108_v40 = vpack.c.bf16 %v1308_v7, %v1307_v32  ;;  %v1362_v14 = vpack.c.bf16 %v1344_v0, %v1343_v26  ;;  %v1345_v3 = vld [vmem:[#allocation2 + $0x27] sm:$0xff]  ;;  %v1310_v22 = vmul.f32 %v1290_v34, %v4919_v17  ;;  %vm1251_vm12 = vcmp.ge.f32.partialorder %v1231_v18, 0.0 }
 0x1ed   : > { %v1453_v19 = vpack.c.bf16 %v1434_v31, %v1433_v41  ;;  %v1346_v56 = vld [vmem:[#allocation2 + $0x2f] sm:$0xff]  ;;  %1329 = vst [vmem:[#allocation2 + $0x58] sm:$0xff] %v1309_v21  ;;  %v1272_v53 = vmul.f32 %v5019_v58, %v1231_v18  ;;  %v1291_v15 = vsel %vm1250_vm11, %v1230_v35, %v1271_v16  ;;  %vm1252_vm13 = vcmp.ge.f32.partialorder %v1232_v13, 0.0  ;;  %v4253_v35 = vld [vmem:[#allocation10 + $0x168] sm:$0xff]  }
 0x1ee   : > { %v5119_v54 = vpack.c.bf16 %v1346_v56, %v1345_v3  ;;  %1627 = vmatprep.mubr.bf16.mxu0 %v1362_v14  ;;  %1845 = vmatmul.mubr.bf16.gmra.mxu1 %v1362_v14  ;;  %1330 = vst [vmem:[#allocation2 + $0x60] sm:$0xff] %v1310_v22  ;;  %v5125_v29 = vpack.c.bf16 %v1310_v22, %v1309_v21  ;;  %vm1253_vm14 = vcmp.ge.f32.partialorder %v1233_v28, 0.0  ;;  %v1435_v21 = vld [vmem:[#allocation2 + $0x19] sm:$0xff]  ;;  %v4255_v3 = vld [vmem:[#allocation10 + $0x160] sm:$0xff]  }
 0x1ef   : > { %v1311_v60 = vmul.f32 %v1291_v15, %v4931_v39  ;;  %1628 = vmatmul.mubr.bf16.vlgmr.msra.gmra.mxu0 %v1453_v19  ;;  %1852 = vmatprep.mubr.bf16.mxu1 %v5082_v51  ;;  %v1292_v23 = vsel %vm1251_vm12, %v1231_v18, %v1272_v53  ;;  %v1273_v36 = vmul.f32 %v5019_v58, %v1232_v13  ;;  %v1436_v18 = vld [vmem:[#allocation2 + $0x21] sm:$0xff]  ;;  %v1347_v31 = vld [vmem:[#allocation2 + $0x37] sm:$0xff] }
 0x1f0   : > { %v1274_v27 = vmul.f32 %v5019_v58, %v1233_v28  ;;  %1635 = vmatprep.mubr.bf16.mxu0 %v5119_v54  ;;  %3782 = vmatpush3.bf16.msra.mxu0 %v4250_v44  ;;  %v1312_v4 = vmul.f32 %v1292_v23, %v4935_v8  ;;  %v1214_v32 = vsub.f32 %v4988_v9, %v5015_v11  ;;  %v1348_v34 = vld [vmem:[#allocation2 + $0x3f] sm:$0xff]  ;;  %v4257_v23 = vld [vmem:[#allocation10 + $0x158] sm:$0xff]  }
 0x1f1   : > { %1331 = vst [vmem:[#allocation2 + $0x68] sm:$0xff] %v1311_v60  ;;  %3783 = vmatprep.subr.bf16.mxu0 %v4251_v37  ;;  %v1293_v41 = vsel %vm1252_vm13, %v1232_v13, %v1273_v36  ;;  %v1234_v63 = vmul.f32 %v5045_v20, %v1212_v30  ;;  %v1235_v42 = vmul.f32 %v5045_v20, %v1213_v46  ;;  %v4254_v13 = vld [vmem:[#allocation10 + $0x128] sm:$0xff]  }
 0x1f2   : > { %v1294_v7 = vsel %vm1253_vm14, %v1233_v28, %v1274_v27  ;;  %1332 = vst [vmem:[#allocation2 + $0x70] sm:$0xff] %v1312_v4  ;;  %v5140_v16 = vpack.c.bf16 %v1312_v4, %v1311_v60  ;;  %v1313_v26 = vmul.f32 %v1293_v41, %v4950_v59  ;;  %v1216_v0 = vsub.f32 %v4995_v25, %v5015_v11  ;;  %v1438_v4 = vld [vmem:[#allocation2 + $0x31] sm:$0xff] }
 0x1f3   : > { %v1314_v9 = vmul.f32 %v1294_v7, %v4957_v6  ;;  %vm1254_vm15 = vcmp.ge.f32.partialorder %v1234_v63, 0.0  ;;  %vm1255_vm0 = vcmp.ge.f32.partialorder %v1235_v42, 0.0  ;;  %v1275_v48 = vmul.f32 %v5019_v58, %v1234_v63  ;;  %v1349_v7 = vld [vmem:[#allocation2 + $0x47] sm:$0xff] }
 0x1f4   : > { %v1217_v30 = vsub.f32 %v5003_v38, %v5015_v11  ;;  %3784 = vmatpush3.bf16.msra.mxu0 %v4252_v24  ;;  %1333 = vst [vmem:[#allocation2 + $0x78] sm:$0xff] %v1313_v26  ;;  %v1276_v14 = vmul.f32 %v5019_v58, %v1235_v42  ;;  %v1236_v19 = vmul.f32 %v5045_v20, %v1214_v32  ;;  %v1437_v24 = vld [vmem:[#allocation2 + $0x29] sm:$0xff] }
 0x1f5   : > { %1334 = vst [vmem:[#allocation2 + $0x80] sm:$0xff] %v1314_v9  ;;  %v5149_v28 = vpack.c.bf16 %v1314_v9, %v1313_v26  ;;  %v5153_v25 = vpack.c.bf16 %v1436_v18, %v1435_v21  ;;  %3785 = vmatprep.subr.bf16.mxu0 %v4253_v35  ;;  %v1295_v56 = vsel %vm1254_vm15, %v1234_v63, %v1275_v48  ;;  %v1350_v63 = vld [vmem:[#allocation2 + $0x4f] sm:$0xff] }
 0x1f6   : > { %v1238_v44 = vmul.f32 %v5045_v20, %v1216_v0  ;;  %v1239_v22 = vmul.f32 %v5045_v20, %v1217_v30  ;;  %1853 = vmatmul.mubr.bf16.gmra.mxu1 %v5119_v54  ;;  %v5158_v38 = vpack.c.bf16 %v1348_v34, %v1347_v31  ;;  %v1296_v11 = vsel %vm1255_vm0, %v1235_v42, %v1276_v14  ;;  %v4256_v20 = vld [vmem:[#allocation10 + $0x120] sm:$0xff]   ;;  %v6078_v42 = vld [vmem:[#allocation50_spill] sm:$0xff]  ;;  %v4265_v31 = vld [vmem:[#allocation10 + $0x150] sm:$0xff]  }
 0x1f7   : > { %v1315_v37 = vmul.f32 %v1295_v56, %v4966_v61  ;;  %vm1256_vm1 = vcmp.ge.f32.partialorder %v1236_v19, 0.0  ;;  %1636 = vmatmul.mubr.bf16.gmra.mxu0 %v5153_v25  ;;  %1860 = vmatprep.mubr.bf16.mxu1 %v5093_v5  ;;  %v1316_v53 = vmul.f32 %v1296_v11, %v4973_v12  ;;  %v1277_v15 = vmul.f32 %v5019_v58, %v1236_v19  ;;  %v6079_v21 = vld [vmem:[#allocation51_spill] sm:$0xff]  ;;  %v4259_v26 = vld [vmem:[#allocation10 + $0x118] sm:$0xff]   ;;  %v4266_v30 = vld [vmem:[#allocation10 + $0x110] sm:$0xff]  }
 0x1f8   : > { %vm1258_vm2 = vcmp.ge.f32.partialorder %v1238_v44, 0.0  ;;  %vm1259_vm3 = vcmp.ge.f32.partialorder %v1239_v22, 0.0  ;;  %1643 = vmatprep.mubr.bf16.mxu0 %v5158_v38  ;;  %3786 = vmatpush3.bf16.msra.mxu0 %v4254_v13  ;;  %v1279_v46 = vmul.f32 %v5019_v58, %v1238_v44  ;;  %v1280_v60 = vmul.f32 %v5019_v58, %v1239_v22  ;;  %v4271_v13 = vld [vmem:[#allocation10 + $0x148] sm:$0xff]   ;;  %v4279_v11 = vld [vmem:[#allocation10 + $0x140] sm:$0xff]  }
 0x1f9   : > { %1335 = vst [vmem:[#allocation2 + $0x88] sm:$0xff] %v1315_v37  ;;  %3787 = vmatprep.subr.bf16.mxu0 %v4255_v3  ;;  %1336 = vst [vmem:[#allocation2 + $0x90] sm:$0xff] %v1316_v53  ;;  %v5169_v36 = vpack.c.bf16 %v1316_v53, %v1315_v37  ;;  %v1297_v27 = vsel %vm1256_vm1, %v1236_v19, %v1277_v15  ;;  %v5182_v0 = vpack.c.bf16 %v1438_v4, %v1437_v24  ;;  %v1439_v14 = vld [vmem:[#allocation2 + $0x39] sm:$0xff]  ;;  %v1440_v19 = vld [vmem:[#allocation2 + $0x41] sm:$0xff] }
 0x1fa   : > { %v5173_v32 = vmul.f32 %v1297_v27, %v4985_v1  ;;  %v1299_v35 = vsel %vm1258_vm2, %v1238_v44, %v1279_v46  ;;  %v1300_v41 = vsel %vm1259_vm3, %v1239_v22, %v1280_v60  ;;  %v5187_v48 = vpack.c.bf16 %v1350_v63, %v1349_v7  ;;  %v1351_v3 = vld [vmem:[#allocation2 + $0x57] sm:$0xff]  ;;  %v1352_v56 = vld [vmem:[#allocation2 + $0x5f] sm:$0xff]  ;;  %v4281_v15 = vld [vmem:[#allocation10 + $0x278] sm:$0xff]  }
 0x1fb   : > { %v1319_v58 = vmul.f32 %v1299_v35, %v6078_v42  ;;  %v1320_v18 = vmul.f32 %v1300_v41, %v6079_v21  ;;  %v4273_v44 = vld [vmem:[#allocation10 + $0x108] sm:$0xff]   ;;  %v5192_v22 = vpack.c.bf16 %v1440_v19, %v1439_v14  ;;  %v5195_v37 = vpack.c.bf16 %v1352_v56, %v1351_v3  ;;  %v4280_v53 = vld [vmem:[#allocation10 + $0x100] sm:$0xff]   ;;  %v1353_v60 = vld [vmem:[#allocation2 + $0x67] sm:$0xff] }
 0x1fc   : > { %3788 = vmatpush3.bf16.msra.mxu0 %v4256_v20  ;;  %1337 = vst [vmem:[#allocation2 + $0x98] sm:$0xff] %v5173_v32  ;;  %v1400_v9 = vpack.c.bf16 %v5069_v33, %v5173_v32  ;;  %v1441_v20 = vld [vmem:[#allocation2 + $0x49] sm:$0xff]  ;;  %v1442_v46 = vld [vmem:[#allocation2 + $0x51] sm:$0xff]  ;;  %v1443_v4 = vld [vmem:[#allocation2 + $0x59] sm:$0xff] }
 0x1fd   : > { %3789 = vmatprep.subr.bf16.mxu0 %v4257_v23  ;;  %1339 = vst [vmem:[#allocation2 + $0xa8] sm:$0xff] %v1319_v58  ;;  %1340 = vst [vmem:[#allocation2 + $0xb0] sm:$0xff] %v1320_v18  ;;  %v5184_v34 = vpack.c.bf16 %v1320_v18, %v1319_v58  ;;  %v1354_v23 = vld [vmem:[#allocation2 + $0x6f] sm:$0xff]  ;;  %v5200_v27 = vpack.c.bf16 %v1442_v46, %v1441_v20  ;;  %v1444_v35 = vld [vmem:[#allocation2 + $0x61] sm:$0xff] }
 0x1fe   : > { %1861 = vmatmul.mubr.bf16.gmra.mxu1 %v5158_v38  ;;  %v5203_v24 = vpack.c.bf16 %v1354_v23, %v1353_v60  ;;  %v1355_v41 = vld [vmem:[#allocation2 + $0x77] sm:$0xff]  ;;  %v1356_v7 = vld [vmem:[#allocation2 + $0x7f] sm:$0xff]  ;;  %v5208_v63 = vpack.c.bf16 %v1444_v35, %v1443_v4  ;;  %v1445_v18 = vld [vmem:[#allocation2 + $0x69] sm:$0xff] }
 0x1ff   : > { %1644 = vmatmul.mubr.bf16.gmra.mxu0 %v5182_v0  ;;  %1868 = vmatprep.mubr.bf16.mxu1 %v5108_v40  ;;  %v5211_v58 = vpack.c.bf16 %v1356_v7, %v1355_v41  ;;  %v1447_v19 = vld [vmem:[#allocation2 + $0x79] sm:$0xff] }
 0x200   : > { %1651 = vmatprep.mubr.bf16.mxu0 %v5187_v48  ;;  %3790 = vmatpush3.bf16.msra.mxu0 %v4259_v26  ;;  %v1446_v26 = vld [vmem:[#allocation2 + $0x71] sm:$0xff]  ;;  %v1448_v3 = vld [vmem:[#allocation2 + $0x81] sm:$0xff]  ;;  %v1449_v60 = vld [vmem:[#allocation2 + $0x89] sm:$0xff] }
 0x201   : > { %3791 = vmatprep.subr.bf16.mxu0 %v4265_v31  ;;  %v1357_v31 = vld [vmem:[#allocation2 + $0x87] sm:$0xff] }
 0x203   : > { %v1359_v56 = vld [vmem:[#allocation2 + $0x97] sm:$0xff] }
 0x204   : > { %3792 = vmatpush3.bf16.msra.mxu0 %v4266_v30  ;;  %v1358_v30 = vld [vmem:[#allocation2 + $0x8f] sm:$0xff]  ;;  %v1463_v4 = vld [vmem:[#allocation2 + $0xa7] sm:$0xff]  ;;  %v1451_v33 = vld [vmem:[#allocation2 + $0x99] sm:$0xff] }
 0x205   : > { %3793 = vmatprep.subr.bf16.mxu0 %v4271_v13  ;;  %v5216_v13 = vpack.c.bf16 %v1446_v26, %v1445_v18  ;;  %v5219_v14 = vpack.c.bf16 %v1358_v30, %v1357_v31  ;;  %v1450_v23 = vld [vmem:[#allocation2 + $0x91] sm:$0xff]  ;;  %v4282_v26 = vld [vmem:[#allocation10 + $0x238] sm:$0xff]   ;;  %v4283_v31 = vld [vmem:[#allocation10 + $0x270] sm:$0xff]  }
 0x206   : > { %1869 = vmatmul.mubr.bf16.gmra.mxu1 %v5187_v48  ;;  %v1464_v35 = vld [vmem:[#allocation2 + $0xaf] sm:$0xff]  ;;  %v5236_v41 = vpack.c.bf16 %v1450_v23, %v1449_v60  ;;  %v4284_v30 = vld [vmem:[#allocation10 + $0x230] sm:$0xff]  }
 0x207   : > { %1652 = vmatmul.mubr.bf16.gmra.mxu0 %v5192_v22  ;;  %1876 = vmatprep.mubr.bf16.mxu1 %v5125_v29  ;;  %v5239_v7 = vpack.c.bf16 %v1464_v35, %v1463_v4 }
 0x208   : > { %1659 = vmatprep.mubr.bf16.mxu0 %v5195_v37  ;;  %3794 = vmatpush3.bf16.msra.mxu0 %v4273_v44  ;;  %v1360_v44 = vld [vmem:[#allocation2 + $0x9f] sm:$0xff] }
 0x209   : > { %3795 = vmatprep.subr.bf16.mxu0 %v4279_v11  ;;  %v3721_v11 = vpop.f32.mrf.mxu1 }
 0x20b   : > { %v3722_v20 = vpop.f32.mrf.mxu1 }
 0x20c   : > { %3796 = vmatpush3.bf16.msra.mxu0 %v4280_v53  ;;  %v5224_v53 = vpack.c.bf16 %v1448_v3, %v1447_v19  ;;  %v5234_v46 = vadd.f32 %v3722_v20, %v3721_v11  ;;  %v4286_v19 = vld [vmem:[#allocation10 + $0x228] sm:$0xff]   ;;  %v4287_v3 = vld [vmem:[#allocation10 + $0x260] sm:$0xff]  }
 0x20d   : > { %3933 = vmatprep.subr.bf16.mxu0 %v4281_v15  ;;  %v5227_v15 = vpack.c.bf16 %v1360_v44, %v1359_v56  ;;  %v4294_v56 = vld [vmem:[#allocation10 + $0x208] sm:$0xff]   ;;  %v4295_v44 = vld [vmem:[#allocation10 + $0x240] sm:$0xff]  }
 0x20e   : > { %1877 = vmatmul.mubr.bf16.gmra.mxu1 %v5195_v37  ;;  %v2562_v20 = vld [vmem:[#allocation2 + $0x31] sm:$0xff] }
 0x20f   : > { %1660 = vmatmul.mubr.bf16.gmra.mxu0 %v5200_v27  ;;  %1884 = vmatprep.mubr.bf16.mxu1 %v5140_v16 }
 0x210   : > { %1667 = vmatprep.mubr.bf16.mxu0 %v5203_v24 }
 0x216   : > { %1885 = vmatmul.mubr.bf16.gmra.mxu1 %v5203_v24 }
 0x217   : > { %1668 = vmatmul.mubr.bf16.gmra.mxu0 %v5208_v63  ;;  %1892 = vmatprep.mubr.bf16.mxu1 %v5149_v28 }
 0x218   : > { %1675 = vmatprep.mubr.bf16.mxu0 %v5211_v58 }
 0x21e   : > { %1893 = vmatmul.mubr.bf16.gmra.mxu1 %v5211_v58 }
 0x21f   : > { %1676 = vmatmul.mubr.bf16.gmra.mxu0 %v5216_v13  ;;  %1900 = vmatprep.mubr.bf16.mxu1 %v5169_v36 }
 0x220   : > { %1683 = vmatprep.mubr.bf16.mxu0 %v5219_v14 }
 0x226   : > { %1901 = vmatmul.mubr.bf16.gmra.mxu1 %v5219_v14 }
 0x227   : > { %1684 = vmatmul.mubr.bf16.gmra.mxu0 %v5224_v53  ;;  %1908 = vmatprep.mubr.bf16.mxu1 %v1400_v9  ;;  %v1452_v9 = vld [vmem:[#allocation2 + $0xa1] sm:$0xff] }
 0x228   : > { %1691 = vmatprep.mubr.bf16.mxu0 %v5227_v15  ;;  %v5244_v18 = vpack.c.bf16 %v1452_v9, %v1451_v33 }
 0x22e   : > { %1909 = vmatmul.mubr.bf16.gmra.mxu1 %v5227_v15 }
 0x22f   : > { %1692 = vmatmul.mubr.bf16.gmra.mxu0 %v5236_v41  ;;  %2460 = vmatprep.mubr.bf16.mxu1 %v5082_v51 }
 0x230   : > { %1699 = vmatprep.mubr.bf16.mxu0 %v5239_v7 }
 0x236   : > { %2461 = vmatmul.mubr.bf16.vlgmr.msra.gmra.mxu1 %v5119_v54  ;;  %v4285_v54 = vld [vmem:[#allocation10 + $0x268] sm:$0xff]  }
 0x237   : > { %1700 = vmatmul.mubr.bf16.gmra.mxu0 %v5244_v18  ;;  %2468 = vmatprep.mubr.bf16.mxu1 %v5093_v5 }
 0x238   : > { %2138 = vmatprep.mubr.bf16.mxu0 %v5153_v25  ;;  %v4289_v25 = vld [vmem:[#allocation10 + $0x258] sm:$0xff]  }
 0x23e   : > { %2469 = vmatmul.mubr.bf16.gmra.mxu1 %v5158_v38  ;;  %v4290_v38 = vld [vmem:[#allocation10 + $0x218] sm:$0xff]  }
 0x23f   : > { %2139 = vmatmul.mubr.bf16.vlgmr.msra.gmra.mxu0 %v5078_v49  ;;  %2476 = vmatprep.mubr.bf16.mxu1 %v5108_v40  ;;  %v4288_v49 = vld [vmem:[#allocation10 + $0x220] sm:$0xff]  }
 0x240   : > { %2146 = vmatprep.mubr.bf16.mxu0 %v5182_v0  ;;  %3934 = vmatpush3.bf16.msra.mxu0 %v4282_v26  ;;  %v4291_v0 = vld [vmem:[#allocation10 + $0x250] sm:$0xff]  }
 0x241   : > { %3935 = vmatprep.subr.bf16.mxu0 %v4283_v31 }
 0x244   : > { %3936 = vmatpush3.bf16.msra.mxu0 %v4284_v30 }
 0x245   : > { %3937 = vmatprep.subr.bf16.mxu0 %v4285_v54 }
 0x246   : > { %2477 = vmatmul.mubr.bf16.gmra.mxu1 %v5187_v48  ;;  %v4293_v48 = vld [vmem:[#allocation10 + $0x248] sm:$0xff]  }
 0x247   : > { %2147 = vmatmul.mubr.bf16.gmra.mxu0 %v5082_v51  ;;  %2484 = vmatprep.mubr.bf16.mxu1 %v5125_v29  ;;  %v4292_v51 = vld [vmem:[#allocation10 + $0x210] sm:$0xff]  }
 0x248   : > { %2154 = vmatprep.mubr.bf16.mxu0 %v5192_v22  ;;  %3938 = vmatpush3.bf16.msra.mxu0 %v4286_v19 }
 0x249   : > { %3939 = vmatprep.subr.bf16.mxu0 %v4287_v3 }
 0x24c   : > { %3940 = vmatpush3.bf16.msra.mxu0 %v4288_v49 }
 0x24d   : > { %3941 = vmatprep.subr.bf16.mxu0 %v4289_v25 }
 0x24e   : > { %2485 = vmatmul.mubr.bf16.gmra.mxu1 %v5195_v37  ;;  %v2284_v37 = vld [vmem:[#allocation2 + $0xa0] sm:$0xff] }
 0x24f   : > { %2155 = vmatmul.mubr.bf16.gmra.mxu0 %v5093_v5  ;;  %2492 = vmatprep.mubr.bf16.mxu1 %v5140_v16  ;;  %v4296_v5 = vld [vmem:[#allocation10 + $0x200] sm:$0xff]  }
 0x250   : > { %2162 = vmatprep.mubr.bf16.mxu0 %v5200_v27  ;;  %3942 = vmatpush3.bf16.msra.mxu0 %v4290_v38 }
 0x251   : > { %3943 = vmatprep.subr.bf16.mxu0 %v4291_v0 }
 0x254   : > { %3944 = vmatpush3.bf16.msra.mxu0 %v4292_v51 }
 0x255   : > { %3945 = vmatprep.subr.bf16.mxu0 %v4293_v48 }
 0x256   : > { %2493 = vmatmul.mubr.bf16.gmra.mxu1 %v5203_v24  ;;  %v2296_v24 = vpack.c.bf16 %v2284_v37, %v5173_v32  ;;  %v2258_v32 = vld [vmem:[#allocation2 + $0xbf] sm:$0xff] }
 0x257   : > { %2163 = vmatmul.mubr.bf16.gmra.mxu0 %v5108_v40  ;;  %2500 = vmatprep.mubr.bf16.mxu1 %v5149_v28  ;;  %v4301_v40 = vld [vmem:[#allocation2 + $0x8] sm:$0xff] }
 0x258   : > { %2170 = vmatprep.mubr.bf16.mxu0 %v5208_v63  ;;  %3946 = vmatpush3.bf16.msra.mxu0 %v4294_v56 }
 0x259   : > { %3947 = vmatprep.subr.bf16.mxu0 %v4295_v44 }
 0x25c   : > { %3948 = vmatpush3.bf16.msra.mxu0 %v4296_v5 }
 0x25e   : > { %2501 = vmatmul.mubr.bf16.gmra.mxu1 %v5211_v58  ;;  %v1965_v58 = vld [vmem:[#allocation2 + $0xa9] sm:$0xff] }
 0x25f   : > { %2171 = vmatmul.mubr.bf16.gmra.mxu0 %v5125_v29  ;;  %2508 = vmatprep.mubr.bf16.mxu1 %v5169_v36  ;;  %v2298_v29 = vpack.c.bf16 %v4301_v40, %v4301_v40 }
 0x260   : > { %2178 = vmatprep.mubr.bf16.mxu0 %v5216_v13 }
 0x266   : > { %2509 = vmatmul.mubr.bf16.gmra.mxu1 %v5219_v14  ;;  %v1966_v14 = vld [vmem:[#allocation2 + $0xb1] sm:$0xff] }
 0x267   : > { %2179 = vmatmul.mubr.bf16.gmra.mxu0 %v5140_v16  ;;  %2516 = vmatprep.mubr.bf16.mxu1 %v2296_v24  ;;  %v2257_v16 = vld [vmem:[#allocation2 + $0xb7] sm:$0xff] }
 0x268   : > { %2186 = vmatprep.mubr.bf16.mxu0 %v5224_v53  ;;  %v2268_v11 = vpack.c.bf16 %v2258_v32, %v2257_v16 }
 0x26e   : > { %2517 = vmatmul.mubr.bf16.gmra.mxu1 %v5227_v15  ;;  %v2561_v15 = vld [vmem:[#allocation2 + $0x29] sm:$0xff] }
 0x26f   : > { %2187 = vmatmul.mubr.bf16.gmra.mxu0 %v5149_v28  ;;  %2524 = vmatprep.mubr.bf16.mxu1 %v5184_v34  ;;  %v5281_v28 = vpack.c.bf16 %v1966_v14, %v1965_v58  ;;  %v2581_v60 = vpack.c.bf16 %v2562_v20, %v2561_v15 }
 0x270   : > { %2194 = vmatprep.mubr.bf16.mxu0 %v5236_v41 }
 0x276   : > { %2525 = vmatmul.mubr.bf16.gmra.mxu1 %v5239_v7 }
 0x277   : > { %2195 = vmatmul.mubr.bf16.gmra.mxu0 %v5169_v36  ;;  %2532 = vmatprep.mubr.bf16.mxu1 %v2298_v29  ;;  %v3724_v36 = vpop.f32.mrf.mxu1 }
 0x278   : > { %2202 = vmatprep.mubr.bf16.mxu0 %v5244_v18 }
 0x279   : > { %v3725_v23 = vpop.f32.mrf.mxu1 }
 0x27a   : > { %v3726_v26 = vadd.f32 %v3725_v23, %v3724_v36 }
 0x27e   : > { %2533 = vmatmul.mubr.bf16.gmra.mxu1 %v2268_v11 }
 0x27f   : > { %2203 = vmatmul.mubr.bf16.gmra.mxu0 %v2296_v24 }
 0x280   : > { %2210 = vmatprep.mubr.bf16.mxu0 %v5281_v28 }
 0x287   : > { %2211 = vmatmul.mubr.bf16.gmra.mxu0 %v5184_v34 }
 0x288   : > { %2752 = vmatprep.mubr.bf16.mxu0 %v2581_v60 }
 0x28f   : > { %2753 = vmatmul.mubr.bf16.vlgmr.msra.gmra.mxu0 %v2581_v60 }
 0x290   : > { %2760 = vmatprep.mubr.bf16.mxu0 %v5192_v22 }
 0x297   : > { %2761 = vmatmul.mubr.bf16.gmra.mxu0 %v5192_v22 }
 0x298   : > { %2768 = vmatprep.mubr.bf16.mxu0 %v5200_v27 }
 0x29f   : > { %2769 = vmatmul.mubr.bf16.gmra.mxu0 %v5200_v27 }
 0x2a0   : > { %2776 = vmatprep.mubr.bf16.mxu0 %v5208_v63 }
 0x2a7   : > { %2777 = vmatmul.mubr.bf16.gmra.mxu0 %v5208_v63 }
 0x2a8   : > { %2784 = vmatprep.mubr.bf16.mxu0 %v5216_v13 }
 0x2ae   : > { %v3727_v4 = vpop.f32.mrf.mxu1 }
 0x2af   : > { %v3645_v34 = vpop.f32.mrf.mxu0  ;;  %2785 = vmatmul.mubr.bf16.gmra.mxu0 %v5216_v13 }
 0x2b0   : > { %2792 = vmatprep.mubr.bf16.mxu0 %v5224_v53  ;;  %v3728_v35 = vpop.f32.mrf.mxu1 }
 0x2b1   : > { %v3646_v22 = vpop.f32.mrf.mxu0  ;;  %v3729_v7 = vadd.f32 %v3728_v35, %v3727_v4 }
 0x2b2   : > { %v3647_v33 = vadd.f32 %v3646_v22, %v3645_v34  ;;  %v3730_v9 = vpop.f32.mrf.mxu1 }
 0x2b3   : > { %v3648_v27 = vpop.f32.mrf.mxu0 }
 0x2b4   : > { %v5295_v31 = vadd.f32 %v5234_v46, %v3647_v33  ;;  %v3731_v63 = vpop.f32.mrf.mxu1 }
 0x2b5   : > { %v3649_v30 = vpop.f32.mrf.mxu0  ;;  %v3732_v54 = vadd.f32 %v3731_v63, %v3730_v9  ;;  %v2579_v9 = vld [vmem:[#allocation2 + $0xb9] sm:$0xff] }
 0x2b6   : > { %v3650_v19 = vadd.f32 %v3649_v30, %v3648_v27  ;;  %v3733_v3 = vpop.f32.mrf.mxu1  ;;  %v2580_v27 = vld [vmem:[#allocation2 + $0xc1] sm:$0xff] }
 0x2b7   : > { %v3651_v49 = vpop.f32.mrf.mxu0  ;;  %2793 = vmatmul.mubr.bf16.gmra.mxu0 %v5224_v53 }
 0x2b8   : > { %v5298_v13 = vadd.f32 %v3726_v26, %v3650_v19  ;;  %2800 = vmatprep.mubr.bf16.mxu0 %v5236_v41  ;;  %v3734_v25 = vpop.f32.mrf.mxu1 }
 0x2b9   : > { %v3652_v38 = vpop.f32.mrf.mxu0  ;;  %v3735_v0 = vadd.f32 %v3734_v25, %v3733_v3  ;;  %v2590_v3 = vpack.c.bf16 %v2580_v27, %v2579_v9 }
 0x2ba   : > { %v3653_v51 = vadd.f32 %v3652_v38, %v3651_v49  ;;  %v3736_v48 = vpop.f32.mrf.mxu1 }
 0x2bb   : > { %v3654_v56 = vpop.f32.mrf.mxu0 }
 0x2bc   : > { %v5301_v46 = vadd.f32 %v3729_v7, %v3653_v51  ;;  %v3737_v44 = vpop.f32.mrf.mxu1 }
 0x2bd   : > { %v3655_v5 = vpop.f32.mrf.mxu0  ;;  %v3738_v37 = vadd.f32 %v3737_v44, %v3736_v48 }
 0x2be   : > { %v3656_v24 = vadd.f32 %v3655_v5, %v3654_v56  ;;  %v3739_v40 = vpop.f32.mrf.mxu1 }
 0x2bf   : > { %v3657_v29 = vpop.f32.mrf.mxu0  ;;  %2801 = vmatmul.mubr.bf16.gmra.mxu0 %v5236_v41 }
 0x2c0   : > { %v5304_v53 = vadd.f32 %v3732_v54, %v3656_v24  ;;  %2808 = vmatprep.mubr.bf16.mxu0 %v5244_v18  ;;  %v3740_v16 = vpop.f32.mrf.mxu1 }
 0x2c1   : > { %v3658_v32 = vpop.f32.mrf.mxu0  ;;  %v3741_v58 = vadd.f32 %v3740_v16, %v3739_v40 }
 0x2c2   : > { %v3659_v14 = vadd.f32 %v3658_v32, %v3657_v29  ;;  %v3742_v11 = vpop.f32.mrf.mxu1 }
 0x2c3   : > { %v3660_v15 = vpop.f32.mrf.mxu0 }
 0x2c4   : > { %v5307_v20 = vadd.f32 %v3735_v0, %v3659_v14  ;;  %v3743_v60 = vpop.f32.mrf.mxu1 }
 0x2c5   : > { %v3661_v36 = vpop.f32.mrf.mxu0  ;;  %v3744_v23 = vadd.f32 %v3743_v60, %v3742_v11 }
 0x2c6   : > { %v3662_v4 = vadd.f32 %v3661_v36, %v3660_v15  ;;  %v3745_v34 = vpop.f32.mrf.mxu1 }
 0x2c7   : > { %v3663_v35 = vpop.f32.mrf.mxu0  ;;  %2809 = vmatmul.mubr.bf16.gmra.mxu0 %v5244_v18 }
 0x2c8   : > { %v5310_v41 = vadd.f32 %v3738_v37, %v3662_v4  ;;  %2816 = vmatprep.mubr.bf16.mxu0 %v5281_v28  ;;  %v3746_v22 = vpop.f32.mrf.mxu1 }
 0x2c9   : > { %v3664_v7 = vpop.f32.mrf.mxu0  ;;  %v3747_v33 = vadd.f32 %v3746_v22, %v3745_v34 }
 0x2ca   : > { %v3665_v26 = vadd.f32 %v3664_v7, %v3663_v35  ;;  %v3748_v63 = vpop.f32.mrf.mxu1 }
 0x2cb   : > { %v3666_v30 = vpop.f32.mrf.mxu0 }
 0x2cc   : > { %v5313_v54 = vadd.f32 %v3741_v58, %v3665_v26  ;;  %v3749_v19 = vpop.f32.mrf.mxu1 }
 0x2cd   : > { %v3667_v49 = vpop.f32.mrf.mxu0  ;;  %v3750_v25 = vadd.f32 %v3749_v19, %v3748_v63 }
 0x2ce   : > { %v3668_v38 = vadd.f32 %v3667_v49, %v3666_v30  ;;  %v3751_v18 = vpop.f32.mrf.mxu1 }
 0x2cf   : > { %v3669_v0 = vpop.f32.mrf.mxu0  ;;  %2817 = vmatmul.mubr.bf16.gmra.mxu0 %v5281_v28 }
 0x2d0   : > { %v5316_v51 = vadd.f32 %v3744_v23, %v3668_v38  ;;  %v3752_v48 = vpop.f32.mrf.mxu1  ;;  %2824 = vmatprep.mubr.bf16.mxu0 %v2590_v3 }
 0x2d1   : > { %v3670_v56 = vpop.f32.mrf.mxu0  ;;  %v3753_v44 = vadd.f32 %v3752_v48, %v3751_v18 }
 0x2d2   : > { %v3671_v5 = vadd.f32 %v3670_v56, %v3669_v0  ;;  %v3754_v37 = vpop.f32.mrf.mxu1 }
 0x2d3   : > { %v3672_v24 = vpop.f32.mrf.mxu0 }
 0x2d4   : > { %v5318_v40 = vadd.f32 %v3747_v33, %v3671_v5  ;;  %v3755_v29 = vpop.f32.mrf.mxu1 }
 0x2d5   : > { %v3673_v16 = vpop.f32.mrf.mxu0  ;;  %v3756_v32 = vadd.f32 %v3755_v29, %v3754_v37 }
 0x2d6   : > { %v3674_v58 = vadd.f32 %v3673_v16, %v3672_v24  ;;  %v3757_v14 = vpop.f32.mrf.mxu1 }
 0x2d7   : > { %v3675_v11 = vpop.f32.mrf.mxu0  ;;  %2825 = vmatmul.mubr.bf16.gmra.mxu0 %v2590_v3 }
 0x2d8   : > { %v5320_v15 = vadd.f32 %v3750_v25, %v3674_v58  ;;  %v3758_v28 = vpop.f32.mrf.mxu1 }
 0x2d9   : > { %v3676_v60 = vpop.f32.mrf.mxu0  ;;  %v3759_v36 = vadd.f32 %v3758_v28, %v3757_v14 }
 0x2da   : > { %v3677_v23 = vadd.f32 %v3676_v60, %v3675_v11  ;;  %v3760_v4 = vpop.f32.mrf.mxu1 }
 0x2db   : > { %v3678_v34 = vpop.f32.mrf.mxu0 }
 0x2dc   : > { %v5322_v35 = vadd.f32 %v3753_v44, %v3677_v23  ;;  %v3761_v22 = vpop.f32.mrf.mxu1 }
 0x2dd   : > { %v3679_v7 = vpop.f32.mrf.mxu0  ;;  %v3762_v33 = vadd.f32 %v3761_v22, %v3760_v4 }
 0x2de   : > { %v3680_v9 = vadd.f32 %v3679_v7, %v3678_v34  ;;  %v3763_v27 = vpop.f32.mrf.mxu1 }
 0x2df   : > { %v3681_v26 = vpop.f32.mrf.mxu0 }
 0x2e0   : > { %v5324_v63 = vadd.f32 %v3756_v32, %v3680_v9  ;;  %v3764_v30 = vpop.f32.mrf.mxu1 }
 0x2e1   : > { %v3682_v19 = vpop.f32.mrf.mxu0  ;;  %v3765_v3 = vadd.f32 %v3764_v30, %v3763_v27 }
 0x2e2   : > { %v3683_v49 = vadd.f32 %v3682_v19, %v3681_v26  ;;  %v3766_v25 = vpop.f32.mrf.mxu1 }
 0x2e3   : > { %v3684_v38 = vpop.f32.mrf.mxu0 }
 0x2e4   : > { %v5326_v18 = vadd.f32 %v3759_v36, %v3683_v49  ;;  %v3767_v0 = vpop.f32.mrf.mxu1 }
 0x2e5   : > { %v3685_v48 = vpop.f32.mrf.mxu0  ;;  %v3768_v56 = vadd.f32 %v3767_v0, %v3766_v25 }
 0x2e6   : > { %v3686_v44 = vadd.f32 %v3685_v48, %v3684_v38  ;;  %v3769_v5 = vpop.f32.mrf.mxu1 }
 0x2e7   : > { %v3687_v37 = vpop.f32.mrf.mxu0 }
 0x2e8   : > { %v5328_v24 = vadd.f32 %v3762_v33, %v3686_v44  ;;  %v3770_v29 = vpop.f32.mrf.mxu1 }
 0x2e9   : > { %v3688_v16 = vpop.f32.mrf.mxu0  ;;  %v3771_v32 = vadd.f32 %v3770_v29, %v3769_v5 }
 0x2ea   : > { %v3689_v58 = vadd.f32 %v3688_v16, %v3687_v37  ;;  %v3772_v14 = vpop.f32.mrf.mxu1 }
 0x2eb   : > { %v3690_v11 = vpop.f32.mrf.mxu0 }
 0x2ec   : > { %v5330_v28 = vadd.f32 %v3765_v3, %v3689_v58  ;;  %v3773_v60 = vpop.f32.mrf.mxu1 }
 0x2ed   : > { %v3691_v23 = vpop.f32.mrf.mxu0  ;;  %v3774_v36 = vadd.f32 %v3773_v60, %v3772_v14 }
 0x2ee   : > { %v3692_v4 = vadd.f32 %v3691_v23, %v3690_v11  ;;  %v3775_v34 = vpop.f32.mrf.mxu1 }
 0x2ef   : > { %v3693_v22 = vpop.f32.mrf.mxu0 }
 0x2f0   : > { %v5332_v7 = vadd.f32 %v3768_v56, %v3692_v4  ;;  %v3776_v9 = vpop.f32.mrf.mxu1 }
 0x2f1   : > { %v3694_v27 = vpop.f32.mrf.mxu0  ;;  %v3777_v33 = vadd.f32 %v3776_v9, %v3775_v34 }
 0x2f2   : > { %v3695_v26 = vadd.f32 %v3694_v27, %v3693_v22  ;;  %v3778_v30 = vpop.f32.mrf.mxu1 }
 0x2f3   : > { %v3696_v19 = vpop.f32.mrf.mxu0 }
 0x2f4   : > { %v5334_v49 = vadd.f32 %v3771_v32, %v3695_v26  ;;  %v3779_v25 = vpop.f32.mrf.mxu1 }
 0x2f5   : > { %v3697_v38 = vpop.f32.mrf.mxu0  ;;  %v3780_v3 = vadd.f32 %v3779_v25, %v3778_v30 }
 0x2f6   : > { %v3698_v0 = vadd.f32 %v3697_v38, %v3696_v19  ;;  %v5338_v56 = vpop.f32.mrf.mxu1 }
 0x2f7   : > { %v3699_v48 = vpop.f32.mrf.mxu0 }
 0x2f8   : > { %v5336_v44 = vadd.f32 %v3774_v36, %v3698_v0  ;;  %v5342_v60 = vpop.f32.mrf.mxu1 }
 0x2f9   : > { %v3700_v5 = vpop.f32.mrf.mxu0 }
 0x2fa   : > { %v3701_v37 = vadd.f32 %v3700_v5, %v3699_v48  ;;  %v5346_v22 = vpop.f32.mrf.mxu1 }
 0x2fb   : > { %v3702_v29 = vpop.f32.mrf.mxu0 }
 0x2fc   : > { %v5340_v16 = vadd.f32 %v3777_v33, %v3701_v37  ;;  %v5351_v33 = vpop.f32.mrf.mxu1 }
 0x2fd   : > { %v3703_v58 = vpop.f32.mrf.mxu0 }
 0x2fe   : > { %v3704_v14 = vadd.f32 %v3703_v58, %v3702_v29 }
 0x2ff   : > { %v3797_v11 = vpop.f32.mrf.mxu0 }
 0x300   : > { %v5344_v32 = vadd.f32 %v3780_v3, %v3704_v14  ;;  %v5356_v3 = vpop.f32.mrf.mxu1 }
 0x301   : > { %v3798_v23 = vpop.f32.mrf.mxu0 }
 0x302   : > { %v3799_v4 = vadd.f32 %v3798_v23, %v3797_v11  ;;  %v5361_v37 = vpop.f32.mrf.mxu1 }
 0x303   : > { %v3800_v34 = vpop.f32.mrf.mxu0 }
 0x304   : > { %v5349_v36 = vadd.f32 %v3799_v4, %v5295_v31  ;;  %v5366_v11 = vpop.f32.mrf.mxu1 }
 0x305   : > { %v3801_v9 = vpop.f32.mrf.mxu0 }
 0x306   : > { %v3802_v27 = vadd.f32 %v3801_v9, %v3800_v34  ;;  %v5371_v9 = vpop.f32.mrf.mxu1 }
 0x307   : > { %v3803_v26 = vpop.f32.mrf.mxu0  ;;  %v3884_v39 = vadd.f32 %v5371_v9, %v5366_v11 }
 0x308   : > { %v5354_v30 = vadd.f32 %v3802_v27, %v5298_v13 }
 0x309   : > { %v3804_v19 = vpop.f32.mrf.mxu0 }
 0x30a   : > { %v3805_v25 = vadd.f32 %v3804_v19, %v3803_v26 }
 0x30b   : > { %v3806_v38 = vpop.f32.mrf.mxu0 }
 0x30c   : > { %v5359_v0 = vadd.f32 %v3805_v25, %v5301_v46  ;;  %v5376_v25 = vpop.f32.mrf.mxu1 }
 0x30d   : > { %v3807_v48 = vpop.f32.mrf.mxu0 }
 0x30e   : > { %v3808_v5 = vadd.f32 %v3807_v48, %v3806_v38 }
 0x30f   : > { %v3809_v31 = vpop.f32.mrf.mxu0 }
 0x310   : > { %v5364_v29 = vadd.f32 %v3808_v5, %v5304_v53 }
 0x311   : > { %v3810_v58 = vpop.f32.mrf.mxu0 }
 0x312   : > { %v3811_v14 = vadd.f32 %v3810_v58, %v3809_v31  ;;  %v5381_v31 = vpop.f32.mrf.mxu1 }
 0x313   : > { %v3812_v13 = vpop.f32.mrf.mxu0 }
 0x314   : > { %v5369_v23 = vadd.f32 %v3811_v14, %v5307_v20 }
 0x315   : > { %v3813_v4 = vpop.f32.mrf.mxu0 }
 0x316   : > { %v3814_v34 = vadd.f32 %v3813_v4, %v3812_v13  ;;  %v5386_v4 = vpop.f32.mrf.mxu1 }
 0x317   : > { %v3815_v46 = vpop.f32.mrf.mxu0 }
 0x318   : > { %v5374_v27 = vadd.f32 %v3814_v34, %v5310_v41 }
 0x319   : > { %v3816_v26 = vpop.f32.mrf.mxu0 }
 0x31a   : > { %v3817_v19 = vadd.f32 %v3816_v26, %v3815_v46 }
 0x31b   : > { %v3818_v53 = vpop.f32.mrf.mxu0 }
 0x31c   : > { %v5379_v38 = vadd.f32 %v3817_v19, %v5313_v54  ;;  %v5391_v19 = vpop.f32.mrf.mxu1 }
 0x31d   : > { %v3819_v48 = vpop.f32.mrf.mxu0 }
 0x31e   : > { %v3820_v5 = vadd.f32 %v3819_v48, %v3818_v53 }
 0x31f   : > { %v3821_v20 = vpop.f32.mrf.mxu0 }
 0x320   : > { %v5384_v58 = vadd.f32 %v3820_v5, %v5316_v51  ;;  %v5396_v5 = vpop.f32.mrf.mxu1 }
 0x321   : > { %v3822_v14 = vpop.f32.mrf.mxu0 }
 0x322   : > { %v3823_v13 = vadd.f32 %v3822_v14, %v3821_v20 }
 0x323   : > { %v3824_v41 = vpop.f32.mrf.mxu0 }
 0x324   : > { %v5389_v34 = vadd.f32 %v3823_v13, %v5318_v40  ;;  %v5401_v13 = vpop.f32.mrf.mxu1 }
 0x325   : > { %v3825_v46 = vpop.f32.mrf.mxu0 }
 0x326   : > { %v3826_v26 = vadd.f32 %v3825_v46, %v3824_v41 }
 0x327   : > { %v3827_v54 = vpop.f32.mrf.mxu0 }
 0x328   : > { %v5394_v53 = vadd.f32 %v3826_v26, %v5320_v15  ;;  %v5406_v26 = vpop.f32.mrf.mxu1 }
 0x329   : > { %v3828_v48 = vpop.f32.mrf.mxu0 }
 0x32a   : > { %v3829_v21 = vadd.f32 %v3828_v48, %v3827_v54 }
 0x32b   : > { %v3830_v51 = vpop.f32.mrf.mxu0 }
 0x32c   : > { %v5399_v20 = vadd.f32 %v3829_v21, %v5322_v35  ;;  %v5411_v35 = vpop.f32.mrf.mxu1 }
 0x32d   : > { %v3831_v14 = vpop.f32.mrf.mxu0 }
 0x32e   : > { %v3832_v42 = vadd.f32 %v3831_v14, %v3830_v51 }
 0x32f   : > { %v3833_v40 = vpop.f32.mrf.mxu0 }
 0x330   : > { %v5404_v41 = vadd.f32 %v3832_v42, %v5324_v63  ;;  %v5416_v63 = vpop.f32.mrf.mxu1 }
 0x331   : > { %v3834_v46 = vpop.f32.mrf.mxu0 }
 0x332   : > { %v3835_v43 = vadd.f32 %v3834_v46, %v3833_v40 }
 0x333   : > { %v3836_v15 = vpop.f32.mrf.mxu0 }
 0x334   : > { %v5409_v54 = vadd.f32 %v3835_v43, %v5326_v18  ;;  %v5421_v18 = vpop.f32.mrf.mxu1 }
 0x335   : > { %v3837_v48 = vpop.f32.mrf.mxu0 }
 0x336   : > { %6080 = vst [vmem:[#allocation52_spill] sm:$0xff] %v5409_v54  ;;  %v3838_v1 = vadd.f32 %v3837_v48, %v3836_v15 }
 0x337   : > { %v3839_v21 = vpop.f32.mrf.mxu0 }
 0x338   : > { %v5414_v51 = vadd.f32 %v3838_v1, %v5328_v24  ;;  %v5426_v24 = vpop.f32.mrf.mxu1 }
 0x339   : > { %v3840_v14 = vpop.f32.mrf.mxu0 }
 0x33a   : > { %6081 = vst [vmem:[#allocation53_spill] sm:$0xff] %v5414_v51  ;;  %v3841_v12 = vadd.f32 %v3840_v14, %v3839_v21 }
 0x33b   : > { %v3842_v42 = vpop.f32.mrf.mxu0 }
 0x33c   : > { %v5419_v40 = vadd.f32 %v3841_v12, %v5330_v28  ;;  %v5431_v28 = vpop.f32.mrf.mxu1 }
 0x33d   : > { %v3843_v46 = vpop.f32.mrf.mxu0 }
 0x33e   : > { %6082 = vst [vmem:[#allocation54_spill] sm:$0xff] %v5419_v40  ;;  %v3844_v61 = vadd.f32 %v3843_v46, %v3842_v42 }
 0x33f   : > { %v3845_v43 = vpop.f32.mrf.mxu0 }
 0x340   : > { %v5424_v15 = vadd.f32 %v3844_v61, %v5332_v7  ;;  %v5436_v7 = vpop.f32.mrf.mxu1 }
 0x341   : > { %v3846_v48 = vpop.f32.mrf.mxu0 }
 0x342   : > { %6083 = vst [vmem:[#allocation55_spill] sm:$0xff] %v5424_v15  ;;  %v3847_v6 = vadd.f32 %v3846_v48, %v3845_v43 }
 0x343   : > { %v3848_v1 = vpop.f32.mrf.mxu0 }
 0x344   : > { %v5429_v21 = vadd.f32 %v3847_v6, %v5334_v49  ;;  %v5441_v49 = vpop.f32.mrf.mxu1 }
 0x345   : > { %v3849_v14 = vpop.f32.mrf.mxu0 }
 0x346   : > { %6084 = vst [vmem:[#allocation56_spill] sm:$0xff] %v5429_v21  ;;  %v3850_v59 = vadd.f32 %v3849_v14, %v3848_v1 }
 0x347   : > { %v3851_v12 = vpop.f32.mrf.mxu0 }
 0x348   : > { %v5434_v42 = vadd.f32 %v3850_v59, %v5336_v44  ;;  %v5446_v59 = vpop.f32.mrf.mxu1 }
 0x349   : > { %v3852_v46 = vpop.f32.mrf.mxu0 }
 0x34a   : > { %6085 = vst [vmem:[#allocation57_spill] sm:$0xff] %v5434_v42  ;;  %v3853_v40 = vadd.f32 %v3852_v46, %v3851_v12  ;;  %v5448_v46 = vpop.f32.mrf.mxu1 }
 0x34b   : > { %v3854_v61 = vpop.f32.mrf.mxu0 }
 0x34c   : > { %v5439_v43 = vadd.f32 %v3853_v40, %v5340_v16  ;;  %v5450_v16 = vpop.f32.mrf.mxu1  ;;  %v3878_v40 = vadd.f32 %v5351_v33, %v5346_v22 }
 0x34d   : > { %v3855_v48 = vpop.f32.mrf.mxu0  ;;  %6088 = vst [vmem:[#allocation60_spill] sm:$0xff] %v5450_v16 }
 0x34e   : > { %6086 = vst [vmem:[#allocation58_spill] sm:$0xff] %v5439_v43  ;;  %v3856_v15 = vadd.f32 %v3855_v48, %v3854_v61  ;;  %v2542_v43 = vadd.f32 %v3878_v40, %v5354_v30  ;;  %v5461_v16 = vpop.f32.mrf.mxu1  ;;  %v2544_v30 = vadd.f32 %v3884_v39, %v5364_v29 }
 0x34f   : > { %v3949_v6 = vpop.f32.mrf.mxu0 }
 0x350   : > { %v5444_v1 = vadd.f32 %v3856_v15, %v5344_v32  ;;  %v3875_v32 = vadd.f32 %v5342_v60, %v5338_v56  ;;  %v3881_v15 = vadd.f32 %v5361_v37, %v5356_v3  ;;  %v3887_v60 = vadd.f32 %v5381_v31, %v5376_v25 }
 0x351   : > { %v3950_v14 = vpop.f32.mrf.mxu0 }
 0x352   : > { %6087 = vst [vmem:[#allocation59_spill] sm:$0xff] %v5444_v1  ;;  %v3951_v1 = vadd.f32 %v3950_v14, %v3949_v6  ;;  %v2541_v22 = vadd.f32 %v3875_v32, %v5349_v36  ;;  %v5468_v14 = vpop.f32.mrf.mxu1  ;;  %v5473_v36 = vld [vmem:[%s5991_s7 + $0x1] ss:$0 sm:$0xff] }
 0x353   : > { %v3952_v21 = vpop.f32.mrf.mxu0 }
 0x354   : > { %v2833_v3 = vadd.f32 %v3951_v1, %v2541_v22 }
 0x355   : > { %v3953_v44 = vpop.f32.mrf.mxu0 }
 0x356   : > { %v3954_v61 = vadd.f32 %v3953_v44, %v3952_v21  ;;  %v2543_v21 = vadd.f32 %v3881_v15, %v5359_v0  ;;  %v3890_v0 = vadd.f32 %v5391_v19, %v5386_v4  ;;  %v5482_v29 = vadd.f32 %v5473_v36, %v2833_v3  ;;  %v5490_v19 = vpop.f32.mrf.mxu1 }
 0x357   : > { %v3955_v12 = vpop.f32.mrf.mxu0  ;;  %v3893_v4 = vadd.f32 %v5401_v13, %v5396_v5  ;;  %v3896_v15 = vadd.f32 %v5411_v35, %v5406_v26 }
 0x358   : > { %v2834_v33 = vadd.f32 %v3954_v61, %v2542_v43  ;;  %v5507_v22 = vpop.f32.mrf.mxu1 }
 0x359   : > { %v3956_v42 = vpop.f32.mrf.mxu0  ;;  %v2547_v61 = vadd.f32 %v3893_v4, %v5379_v38 }
 0x35a   : > { %v3957_v8 = vadd.f32 %v3956_v42, %v3955_v12  ;;  %v5478_v11 = vadd.f32 %v5473_v36, %v2834_v33 }
 0x35b   : > { %v3958_v51 = vpop.f32.mrf.mxu0 }
 0x35c   : > { %v2835_v37 = vadd.f32 %v3957_v8, %v2543_v21  ;;  %v2545_v8 = vadd.f32 %v3887_v60, %v5369_v23  ;;  %v2880_v23 = vmul.f32 %v5478_v11, %v4868_v50  ;;  %v2548_v60 = vadd.f32 %v3896_v15, %v5384_v58 }
 0x35d   : > { %v3959_v48 = vpop.f32.mrf.mxu0 }
 0x35e   : > { %v3960_v44 = vadd.f32 %v3959_v48, %v3958_v51  ;;  %v5485_v31 = vadd.f32 %v5473_v36, %v2835_v37  ;;  %v2546_v51 = vadd.f32 %v3890_v0, %v5374_v27  ;;  %v2879_v27 = vmul.f32 %v5482_v29, %v4858_v45  ;;  %v5522_v0 = vpop.f32.mrf.mxu1 }
 0x35f   : > { %v3961_v54 = vpop.f32.mrf.mxu0  ;;  %v2925_v21 = vmul.f32 %v2880_v23, %v2880_v23 }
 0x360   : > { %v2836_v9 = vadd.f32 %v3960_v44, %v2544_v30  ;;  %v2881_v32 = vmul.f32 %v5485_v31, %v4862_v47  ;;  %v2924_v37 = vmul.f32 %v2879_v27, %v2879_v27 }
 0x361   : > { %v3962_v56 = vpop.f32.mrf.mxu0 }
 0x362   : > { %v3963_v42 = vadd.f32 %v3962_v56, %v3961_v54  ;;  %v5495_v1 = vadd.f32 %v5473_v36, %v2836_v9  ;;  %v2926_v30 = vmul.f32 %v2881_v32, %v2881_v32  ;;  %v2899_v9 = vadd.f32 %v2880_v23, %v2879_v27 }
 0x363   : > { %v3964_v6 = vpop.f32.mrf.mxu0  ;;  %v3902_v23 = vadd.f32 %v5431_v28, %v5426_v24  ;;  %v3905_v28 = vadd.f32 %v5441_v49, %v5436_v7  ;;  %v3908_v7 = vadd.f32 %v5448_v46, %v5446_v59  ;;  %v6089_v59 = vld [vmem:[#allocation60_spill] sm:$0xff] }
 0x364   : > { %v2837_v54 = vadd.f32 %v3963_v42, %v2545_v8  ;;  %v2882_v38 = vmul.f32 %v5495_v1, %v4872_v52  ;;  %v3911_v46 = vadd.f32 %v5461_v16, %v6089_v59  ;;  %v3914_v16 = vadd.f32 %v5490_v19, %v5468_v14 }
 0x365   : > { %v3965_v25 = vpop.f32.mrf.mxu0 }
 0x366   : > { %v3966_v39 = vadd.f32 %v3965_v25, %v3964_v6  ;;  %v5503_v5 = vadd.f32 %v5473_v36, %v2837_v54  ;;  %v3899_v6 = vadd.f32 %v5421_v18, %v5416_v63  ;;  %v2944_v25 = vadd.f32 %v2925_v21, %v2924_v37 }
 0x367   : > { %v3967_v43 = vpop.f32.mrf.mxu0 }
 0x368   : > { %v2838_v12 = vadd.f32 %v3966_v39, %v2546_v51  ;;  %v2883_v42 = vmul.f32 %v5503_v5, %v4878_v55  ;;  %v2927_v39 = vmul.f32 %v2882_v38, %v2882_v38  ;;  %v2900_v51 = vadd.f32 %v2899_v9, %v2881_v32 }
 0x369   : > { %v3968_v40 = vpop.f32.mrf.mxu0  ;;  %v2549_v4 = vadd.f32 %v3899_v6, %v5389_v34 }
 0x36a   : > { %v3969_v48 = vadd.f32 %v3968_v40, %v3967_v43  ;;  %v5512_v44 = vadd.f32 %v5473_v36, %v2838_v12  ;;  %v2945_v40 = vadd.f32 %v2944_v25, %v2926_v30  ;;  %v2901_v27 = vadd.f32 %v2900_v51, %v2882_v38 }
 0x36b   : > { %v3970_v13 = vpop.f32.mrf.mxu0 }
 0x36c   : > { %v2839_v33 = vadd.f32 %v3969_v48, %v2547_v61  ;;  %v2884_v58 = vmul.f32 %v5512_v44, %v4880_v57  ;;  %v2928_v61 = vmul.f32 %v2883_v42, %v2883_v42  ;;  %v5534_v48 = vpop.f32.mrf.mxu1  ;;  %v2946_v32 = vadd.f32 %v2945_v40, %v2927_v39 }
 0x36d   : > { %v3971_v56 = vpop.f32.mrf.mxu0  ;;  %v2902_v21 = vadd.f32 %v2901_v27, %v2883_v42 }
 0x36e   : > { %v3972_v3 = vadd.f32 %v3971_v56, %v3970_v13  ;;  %v5518_v26 = vadd.f32 %v5473_v36, %v2839_v33  ;;  %v2929_v15 = vmul.f32 %v2884_v58, %v2884_v58  ;;  %v2947_v37 = vadd.f32 %v2946_v32, %v2928_v61  ;;  %v5544_v38 = vpop.f32.mrf.mxu1 }
 0x36f   : > { %v3973_v35 = vpop.f32.mrf.mxu0 }
 0x370   : > { %v2840_v8 = vadd.f32 %v3972_v3, %v2548_v60  ;;  %v2885_v63 = vmul.f32 %v5518_v26, %v4890_v62  ;;  %v2550_v60 = vadd.f32 %v3902_v23, %v5394_v53  ;;  %v2948_v42 = vadd.f32 %v2947_v37, %v2929_v15 }
 0x371   : > { %v3974_v54 = vpop.f32.mrf.mxu0 }
 0x372   : > { %v5527_v43 = vadd.f32 %v5473_v36, %v2840_v8  ;;  %v3975_v12 = vadd.f32 %v3974_v54, %v3973_v35  ;;  %v2930_v30 = vmul.f32 %v2885_v63, %v2885_v63  ;;  %v2903_v35 = vadd.f32 %v2902_v21, %v2884_v58 }
 0x373   : > { %v3976_v18 = vpop.f32.mrf.mxu0  ;;  %v2551_v54 = vadd.f32 %v3905_v28, %v5399_v20 }
 0x374   : > { %v2841_v13 = vadd.f32 %v3975_v12, %v2549_v4  ;;  %v2886_v33 = vmul.f32 %v5527_v43, %v4898_v2  ;;  %v2904_v39 = vadd.f32 %v2903_v35, %v2885_v63  ;;  %v2949_v49 = vadd.f32 %v2948_v42, %v2930_v30  ;;  %v3921_v12 = vpop.f32.mrf.mxu1 }
 0x375   : > { %v3977_v34 = vpop.f32.mrf.mxu0  ;;  %v2552_v63 = vadd.f32 %v3908_v7, %v5404_v41  ;;  %v6091_v41 = vld [vmem:[#allocation52_spill] sm:$0xff] }
 0x376   : > { %v5539_v56 = vadd.f32 %v5473_v36, %v2841_v13  ;;  %v3978_v3 = vadd.f32 %v3977_v34, %v3976_v18  ;;  %v2931_v8 = vmul.f32 %v2886_v33, %v2886_v33  ;;  %v2905_v40 = vadd.f32 %v2904_v39, %v2886_v33  ;;  %v3922_v33 = vpop.f32.mrf.mxu1 }
 0x377   : > { %v3979_v24 = vpop.f32.mrf.mxu0  ;;  %v2553_v28 = vadd.f32 %v3911_v46, %v6091_v41  ;;  %v6095_v46 = vld [vmem:[#allocation54_spill] sm:$0xff]  ;;  %v3920_v41 = vadd.f32 %v5544_v38, %v5534_v48 }
 0x378   : > { %v2887_v6 = vmul.f32 %v5539_v56, %v4911_v10  ;;  %v2842_v9 = vadd.f32 %v3978_v3, %v2550_v60  ;;  %v2950_v23 = vadd.f32 %v2949_v49, %v2931_v8  ;;  %v6090_v3 = vld [vmem:[#allocation42_spill] sm:$0xff]  ;;  %v3924_v39 = vpop.f32.mrf.mxu1 }
 0x379   : > { %v3980_v25 = vpop.f32.mrf.mxu0  ;;  %v6098_v38 = vld [vmem:[#allocation46_spill] sm:$0xff] }
 0x37a   : > { %v5549_v53 = vadd.f32 %v5473_v36, %v2842_v9  ;;  %v3981_v51 = vadd.f32 %v3980_v25, %v3979_v24  ;;  %v2932_v4 = vmul.f32 %v2887_v6, %v2887_v6  ;;  %v2906_v13 = vadd.f32 %v2905_v40, %v2887_v6  ;;  %v3925_v19 = vpop.f32.mrf.mxu1 }
 0x37b   : > { %v3982_v58 = vpop.f32.mrf.mxu0 }
 0x37c   : > { %v2888_v61 = vmul.f32 %v5549_v53, %v4919_v17  ;;  %v2843_v18 = vadd.f32 %v3981_v51, %v2551_v54  ;;  %v2951_v34 = vadd.f32 %v2950_v23, %v2932_v4  ;;  %v6092_v51 = vld [vmem:[#allocation43_spill] sm:$0xff]  ;;  %v6093_v4 = vld [vmem:[#allocation53_spill] sm:$0xff] }
 0x37d   : > { %v3983_v27 = vpop.f32.mrf.mxu0 }
 0x37e   : > { %v2933_v32 = vmul.f32 %v2888_v61, %v2888_v61  ;;  %v5558_v20 = vadd.f32 %v5473_v36, %v2843_v18  ;;  %v3984_v15 = vadd.f32 %v3983_v27, %v3982_v58  ;;  %v2907_v60 = vadd.f32 %v2906_v13, %v2888_v61 }
 0x37f   : > { %v3985_v21 = vpop.f32.mrf.mxu0  ;;  %v2554_v58 = vadd.f32 %v3914_v16, %v6093_v4  ;;  %v3917_v27 = vadd.f32 %v5522_v0, %v5507_v22  ;;  %v3927_v0 = vpop.f32.mrf.mxu1 }
 0x380   : > { %v2889_v37 = vmul.f32 %v5558_v20, %v6090_v3  ;;  %v2844_v30 = vadd.f32 %v3984_v15, %v2552_v63  ;;  %v2952_v24 = vadd.f32 %v2951_v34, %v2933_v32  ;;  %v6094_v32 = vld [vmem:[#allocation44_spill] sm:$0xff] }
 0x381   : > { %v3986_v35 = vpop.f32.mrf.mxu0  ;;  %v2555_v34 = vadd.f32 %v3917_v27, %v6095_v46  ;;  %v6099_v27 = vld [vmem:[#allocation56_spill] sm:$0xff] }
 0x382   : > { %v2908_v6 = vadd.f32 %v2907_v60, %v2889_v37  ;;  %v2934_v9 = vmul.f32 %v2889_v37, %v2889_v37  ;;  %v5566_v42 = vadd.f32 %v5473_v36, %v2844_v30  ;;  %v3987_v8 = vadd.f32 %v3986_v35, %v3985_v21  ;;  %v6096_v35 = vld [vmem:[#allocation45_spill] sm:$0xff] }
 0x383   : > { %v3988_v25 = vpop.f32.mrf.mxu0 }
 0x384   : > { %v2953_v54 = vadd.f32 %v2952_v24, %v2934_v9  ;;  %v2890_v7 = vmul.f32 %v5566_v42, %v6092_v51  ;;  %v2845_v49 = vadd.f32 %v3987_v8, %v2553_v28  ;;  %v6097_v8 = vld [vmem:[#allocation55_spill] sm:$0xff] }
 0x385   : > { %v3989_v40 = vpop.f32.mrf.mxu0  ;;  %v2556_v16 = vadd.f32 %v3920_v41, %v6097_v8 }
 0x386   : > { %v2909_v61 = vadd.f32 %v2908_v6, %v2890_v7  ;;  %v2935_v18 = vmul.f32 %v2890_v7, %v2890_v7  ;;  %v5574_v23 = vadd.f32 %v5473_v36, %v2845_v49  ;;  %v3990_v63 = vadd.f32 %v3989_v40, %v3988_v25 }
 0x387   : > { %v3991_v14 = vpop.f32.mrf.mxu0 }
 0x388   : > { %v2954_v13 = vadd.f32 %v2953_v54, %v2935_v18  ;;  %v2891_v15 = vmul.f32 %v5574_v23, %v6094_v32  ;;  %v2846_v59 = vadd.f32 %v3990_v63, %v2554_v58  ;;  %v3923_v58 = vadd.f32 %v3922_v33, %v3921_v12  ;;  %v6100_v33 = vld [vmem:[#allocation47_spill] sm:$0xff] }
 0x389   : > { %v3992_v21 = vpop.f32.mrf.mxu0 }
 0x38a   : > { %v2910_v60 = vadd.f32 %v2909_v61, %v2891_v15  ;;  %v2936_v37 = vmul.f32 %v2891_v15, %v2891_v15  ;;  %v5582_v30 = vadd.f32 %v5473_v36, %v2846_v59  ;;  %v3993_v24 = vadd.f32 %v3992_v21, %v3991_v14  ;;  %v3928_v61 = vpop.f32.mrf.mxu1 }
 0x38b   : > { %v3994_v22 = vpop.f32.mrf.mxu0  ;;  %v2557_v14 = vadd.f32 %v3923_v58, %v6099_v27  ;;  %v3926_v21 = vadd.f32 %v3925_v19, %v3924_v39  ;;  %v6102_v19 = vld [vmem:[#allocation48_spill] sm:$0xff] }
 0x38c   : > { %v2955_v28 = vadd.f32 %v2954_v13, %v2936_v37  ;;  %v2892_v6 = vmul.f32 %v5582_v30, %v6096_v35  ;;  %v2847_v9 = vadd.f32 %v3993_v24, %v2555_v34  ;;  %v3930_v37 = vpop.f32.mrf.mxu1 }
 0x38d   : > { %v3995_v25 = vpop.f32.mrf.mxu0 }
 0x38e   : > { %v2911_v54 = vadd.f32 %v2910_v60, %v2892_v6  ;;  %v2937_v7 = vmul.f32 %v2892_v6, %v2892_v6  ;;  %v5590_v49 = vadd.f32 %v5473_v36, %v2847_v9  ;;  %v3996_v4 = vadd.f32 %v3995_v25, %v3994_v22  ;;  %v6101_v22 = vld [vmem:[#allocation57_spill] sm:$0xff] }
 0x38f   : > { %v3997_v40 = vpop.f32.mrf.mxu0 }
 0x390   : > { %v2956_v48 = vadd.f32 %v2955_v28, %v2937_v7  ;;  %v2893_v18 = vmul.f32 %v5590_v49, %v6098_v38  ;;  %v2848_v63 = vadd.f32 %v3996_v4, %v2556_v16  ;;  %v2558_v28 = vadd.f32 %v3926_v21, %v6101_v22  ;;  %v3931_v4 = vpop.f32.mrf.mxu1 }
 0x391   : > { %v3998_v13 = vpop.f32.mrf.mxu0 }
 0x392   : > { %v2912_v15 = vadd.f32 %v2911_v54, %v2893_v18  ;;  %v2938_v59 = vmul.f32 %v2893_v18, %v2893_v18  ;;  %v5596_v46 = vadd.f32 %v5473_v36, %v2848_v63  ;;  %v3999_v34 = vadd.f32 %v3998_v13, %v3997_v40 }
 0x393   : > { %v4000_v60 = vpop.f32.mrf.mxu0  ;;  %v3929_v54 = vadd.f32 %v3928_v61, %v3927_v0  ;;  %v6104_v0 = vld [vmem:[#allocation49_spill] sm:$0xff] }
 0x394   : > { %v2957_v12 = vadd.f32 %v2956_v48, %v2938_v59  ;;  %v2894_v24 = vmul.f32 %v5596_v46, %v6100_v33  ;;  %v2849_v41 = vadd.f32 %v3999_v34, %v2557_v14  ;;  %v6103_v48 = vld [vmem:[#allocation58_spill] sm:$0xff]  ;;  %v3932_v59 = vadd.f32 %v3931_v4, %v3930_v37 }
 0x395   : > { %v4001_v6 = vpop.f32.mrf.mxu0  ;;  %v2559_v18 = vadd.f32 %v3929_v54, %v6103_v48 }
 0x396   : > { %v2913_v9 = vadd.f32 %v2912_v15, %v2894_v24  ;;  %v2939_v8 = vmul.f32 %v2894_v24, %v2894_v24  ;;  %v5602_v16 = vadd.f32 %v5473_v36, %v2849_v41  ;;  %v4002_v25 = vadd.f32 %v4001_v6, %v4000_v60 }
 0x397   : > { %v4003_v7 = vpop.f32.mrf.mxu0 }
 0x398   : > { %v2958_v39 = vadd.f32 %v2957_v12, %v2939_v8  ;;  %v2895_v58 = vmul.f32 %v5602_v16, %v6102_v19  ;;  %v2850_v40 = vadd.f32 %v4002_v25, %v2558_v28  ;;  %v6105_v12 = vld [vmem:[#allocation59_spill] sm:$0xff]  ;;  %v6106_v25 = vld [vmem:[#allocation50_spill] sm:$0xff] }
 0x399   : > { %v4004_v63 = vpop.f32.mrf.mxu0  ;;  %v2560_v24 = vadd.f32 %v3932_v59, %v6105_v12 }
 0x39a   : > { %v2914_v27 = vadd.f32 %v2913_v9, %v2895_v58  ;;  %v2940_v14 = vmul.f32 %v2895_v58, %v2895_v58  ;;  %v5608_v13 = vadd.f32 %v5473_v36, %v2850_v40  ;;  %v4005_v15 = vadd.f32 %v4004_v63, %v4003_v7  ;;  %v6107_v40 = vld [vmem:[#allocation51_spill] sm:$0xff] }
 0x39b   : > { %v4006_v34 = vpop.f32.mrf.mxu0 }
 0x39c   : > { %v2959_v21 = vadd.f32 %v2958_v39, %v2940_v14  ;;  %v2896_v61 = vmul.f32 %v5608_v13, %v6104_v0  ;;  %v2851_v60 = vadd.f32 %v4005_v15, %v2559_v18 }
 0x39d   : > { %v4007_v41 = vpop.f32.mrf.mxu0 }
 0x39e   : > { %v2915_v22 = vadd.f32 %v2914_v27, %v2896_v61  ;;  %v2941_v28 = vmul.f32 %v2896_v61, %v2896_v61  ;;  %v5614_v6 = vadd.f32 %v5473_v36, %v2851_v60  ;;  %v4008_v9 = vadd.f32 %v4007_v41, %v4006_v34 }
 0x3a0   : > { %v2960_v8 = vadd.f32 %v2959_v21, %v2941_v28  ;;  %v2897_v54 = vmul.f32 %v5614_v6, %v6106_v25  ;;  %v2852_v37 = vadd.f32 %v4008_v9, %v2560_v24 }
 0x3a2   : > { %v2916_v7 = vadd.f32 %v2915_v22, %v2897_v54  ;;  %v2942_v4 = vmul.f32 %v2897_v54, %v2897_v54  ;;  %v5619_v39 = vadd.f32 %v5473_v36, %v2852_v37 }
 0x3a4   : > { %v2961_v58 = vadd.f32 %v2960_v8, %v2942_v4  ;;  %v2898_v48 = vmul.f32 %v5619_v39, %v6107_v40  ;;  %v3371_v4 = vld [vmem:[%s5989_s5] ss:$0 sm:$0xff] }
 0x3a6   : > { %v2917_v18 = vadd.f32 %v2916_v7, %v2898_v48  ;;  %v2943_v63 = vmul.f32 %v2898_v48, %v2898_v48  ;;  %v6122_v48 = vld [vmem:[#allocation29_spill] sm:$0xff] }
 0x3a8   : > { %v2918_v27 = vrot.slane %v2917_v18, 4  ;;  %v2962_v14 = vadd.f32 %v2961_v58, %v2943_v63  ;;  %v6123_v58 = vld [vmem:[#allocation30_spill] sm:$0xff] }
 0x3a9   : > { %v677_v37 = vadd.f32 %v3371_v4, %v6123_v58 }
 0x3aa   : > { %v2919_v15 = vadd.f32 %v2918_v27, %v2917_v18  ;;  %v2963_v59 = vrot.slane %v2962_v14, 4 }
 0x3ac   : > { %v2920_v34 = vrot.slane %v2919_v15, 2  ;;  %v2964_v21 = vadd.f32 %v2963_v59, %v2962_v14  ;;  %v6120_v14 = vld [vmem:[#allocation27_spill] sm:$0xff] }
 0x3ad   : > { %v682_v27 = vadd.f32 %v6120_v14, %v3371_v4 }
 0x3ae   : > { %v2921_v61 = vadd.f32 %v2920_v34, %v2919_v15  ;;  %v2965_v60 = vrot.slane %v2964_v21, 2 }
 0x3b0   : > { %v2922_v12 = vrot.slane %v2921_v61, 1  ;;  %v2966_v24 = vadd.f32 %v2965_v60, %v2964_v21 }
 0x3b2   : > { %v2923_v41 = vadd.f32 %v2922_v12, %v2921_v61  ;;  %v2967_v22 = vrot.slane %v2966_v24, 1  ;;  %v6108_v61 = vld [vmem:[#allocation19_spill] sm:$0xff]  ;;  %v6109_v12 = vld [vmem:[#allocation20_spill] sm:$0xff] }
 0x3b3   : > { %v650_v60 = vadd.f32 %v6108_v61, %v3371_v4  ;;  %v6116_v61 = vld [vmem:[#allocation23_spill] sm:$0xff] }
 0x3b4   : > { %v2968_v36 = vadd.f32 %v2967_v22, %v2966_v24  ;;  %v5623_v28 = vmul.f32 0.015625, %v2923_v41  ;;  %v642_v24 = vadd.f32 %v3371_v4, %v6109_v12  ;;  %v6110_v22 = vld [vmem:[#allocation21_spill] sm:$0xff]  ;;  %v666_v12 = vadd.f32 %v6116_v61, %v3371_v4 }
 0x3b5   : > { %v5660_v59 = vmul.f32 %v4862_v47, %v650_v60  ;;  %v6121_v60 = vld [vmem:[#allocation28_spill] sm:$0xff]  ;;  %v6129_v47 = vld [vmem:[#allocation38_spill] sm:$0xff] }
 0x3b6   : > { %v2970_v9 = vmul.f32 0.015625, %v2968_v36  ;;  %v2971_v8 = vmul.f32 %v5623_v28, %v5623_v28  ;;  %v653_v36 = vadd.f32 %v6110_v22, %v3371_v4  ;;  %v6118_v22 = vld [vmem:[#allocation25_spill] sm:$0xff]  ;;  %v674_v63 = vadd.f32 %v3371_v4, %v6121_v60 }
 0x3b7   : > { %6113 = vst [vmem:[#allocation42_spill] sm:$0xff] %v5660_v59  ;;  %v6126_v59 = vld [vmem:[#allocation33_spill] sm:$0xff]  ;;  %v5688_v60 = vmul.f32 %v4890_v62, %v666_v12 }
 0x3b8   : > { %v2972_v7 = vsub.f32 %v2970_v9, %v2971_v8  ;;  %v6111_v9 = vld [vmem:[#allocation22_spill] sm:$0xff]  ;;  %v5666_v21 = vmul.f32 %v4872_v52, %v653_v36  ;;  %v6124_v36 = vld [vmem:[#allocation31_spill] sm:$0xff]  ;;  %v6128_v52 = vld [vmem:[#allocation36_spill] sm:$0xff] }
 0x3b9   : > { %v645_v8 = vadd.f32 %v3371_v4, %v6111_v9  ;;  %v6119_v9 = vld [vmem:[#allocation26_spill] sm:$0xff]  ;;  %v698_v54 = vadd.f32 %v6124_v36, %v3371_v4 }
 0x3ba   : > { %v2973_v18 = vmax.f32 %v2972_v7, 0.0  ;;  %v5657_v7 = vmul.f32 %v4858_v45, %v642_v24  ;;  %6115 = vst [vmem:[#allocation43_spill] sm:$0xff] %v5666_v21  ;;  %v661_v24 = vadd.f32 %v3371_v4, %v6119_v9  ;;  %v6125_v21 = vld [vmem:[#allocation32_spill] sm:$0xff]  ;;  %v706_v9 = vadd.f32 %v3371_v4, %v6129_v47 }
 0x3bb   : > { %v5663_v34 = vmul.f32 %v4868_v50, %v645_v8  ;;  %v685_v8 = vadd.f32 %v6122_v48, %v3371_v4  ;;  %v690_v61 = vadd.f32 %v3371_v4, %v6125_v21  ;;  %v6130_v48 = vld [vmem:[#allocation40_spill] sm:$0xff]  ;;  %v6131_v50 = vld [vmem:[#allocation41_spill] sm:$0xff]  ;;  %v5702_v47 = vmul.f32 %v6090_v3, %v682_v27 }
 0x3bc   : > { %v2994_v41 = vadd.f32 1e-05, %v2973_v18  ;;  %6112 = vst [vmem:[#allocation60_spill] sm:$0xff] %v5657_v7  ;;  %v6117_v18 = vld [vmem:[#allocation24_spill] sm:$0xff]  ;;  %v717_v58 = vadd.f32 %v6130_v48, %v3371_v4  ;;  %v709_v36 = vadd.f32 %v3371_v4, %v6131_v50  ;;  %v5693_v21 = vmul.f32 %v4880_v57, %v661_v24 }
 0x3bd   : > { %6114 = vst [vmem:[#allocation52_spill] sm:$0xff] %v5663_v34  ;;  %v658_v15 = vadd.f32 %v3371_v4, %v6117_v18  ;;  %v701_v18 = vadd.f32 %v6126_v59, %v3371_v4  ;;  %v6127_v34 = vld [vmem:[#allocation35_spill] sm:$0xff]  ;;  %v5711_v50 = vmul.f32 %v6094_v32, %v690_v61  ;;  %v5723_v27 = vmul.f32 %v6102_v19, %v706_v9 }
 0x3be   : > { %4299 = vrsqrt.f32 %v2994_v41  ;;  %v669_v41 = vadd.f32 %v6118_v22, %v3371_v4  ;;  %v693_v7 = vadd.f32 %v3371_v4, %v6127_v34  ;;  %v714_v22 = vadd.f32 %v6128_v52, %v3371_v4 }
 0x3bf   : > { %v5685_v14 = vmul.f32 %v4878_v55, %v658_v15  ;;  %v5699_v52 = vmul.f32 %v4911_v10, %v674_v63  ;;  %v5705_v15 = vmul.f32 %v4919_v17, %v677_v37  ;;  %v5708_v34 = vmul.f32 %v6092_v51, %v685_v8  ;;  %6132 = vst [vmem:[#allocation53_spill] sm:$0xff] %v5711_v50 }
 0x3c0   : > { %v5696_v59 = vmul.f32 %v4898_v2, %v669_v41  ;;  %v5714_v4 = vmul.f32 %v6098_v38, %v698_v54  ;;  %v5717_v12 = vmul.f32 %v6096_v35, %v693_v7  ;;  %v5720_v63 = vmul.f32 %v6100_v33, %v701_v18  ;;  %6136 = vst [vmem:[#allocation55_spill] sm:$0xff] %v5723_v27 }
 0x3c1   : > { %v838_v37 = vmul.f32 %v6106_v25, %v714_v22  ;;  %v5727_v41 = vmul.f32 %v6104_v0, %v709_v36  ;;  %v839_v24 = vmul.f32 %v6107_v40, %v717_v58  ;;  %v5731_v8 = vstv %s5670_s22 }
 0x3c2   : > { %6133 = vst [vmem:[#allocation44_spill] sm:$0xff] %v5714_v4  ;;  %6134 = vst [vmem:[#allocation54_spill] sm:$0xff] %v5717_v12  ;;  %v2974_v54 = vsub.f32 %v5482_v29, %v5623_v28  ;;  %v2975_v7 = vsub.f32 %v5478_v11, %v5623_v28  ;;  %v2976_v61 = vsub.f32 %v5485_v31, %v5623_v28 }
 0x3c3   : > { %6135 = vst [vmem:[#allocation45_spill] sm:$0xff] %v5720_v63  ;;  %6137 = vst [vmem:[#allocation46_spill] sm:$0xff] %v5727_v41  ;;  %v2977_v18 = vsub.f32 %v5495_v1, %v5623_v28  ;;  %v2978_v22 = vsub.f32 %v5503_v5, %v5623_v28  ;;  %v2979_v48 = vsub.f32 %v5512_v44, %v5623_v28 }
 0x3c4   : > { %v2980_v58 = vsub.f32 %v5518_v26, %v5623_v28  ;;  %v2981_v29 = vsub.f32 %v5527_v43, %v5623_v28  ;;  %v2982_v11 = vsub.f32 %v5539_v56, %v5623_v28  ;;  %v6138_v31 = vsub.f32 %v5614_v6, %v5623_v28 }
 0x3c5   : > { %v6139_v5 = vsub.f32 %v5619_v39, %v5623_v28  ;;  %v6142_v4 = vsub.f32 %v5566_v42, %v5623_v28  ;;  %v6143_v12 = vsub.f32 %v5574_v23, %v5623_v28  ;;  %v6146_v42 = vsub.f32 %v5596_v46, %v5623_v28 }
 0x3c6   : > { %v6148_v23 = vsub.f32 %v5608_v13, %v5623_v28 }
 0x3cb   : > { %v4300_v9 = vpop.eup %4299 }
 0x3cc   : > { %v3014_v1 = vmul.f32 %v4300_v9, %v6138_v31  ;;  %v3015_v36 = vmul.f32 %v4300_v9, %v6139_v5  ;;  %v5757_v41 = vmul.f32 %v4300_v9, %v2974_v54  ;;  %v5759_v44 = vmul.f32 %v4300_v9, %v2975_v7 }
 0x3cd   : > { %v5761_v27 = vmul.f32 %v4300_v9, %v2976_v61  ;;  %v5763_v26 = vmul.f32 %v4300_v9, %v2977_v18  ;;  %v5765_v43 = vmul.f32 %v4300_v9, %v2978_v22  ;;  %v5767_v63 = vmul.f32 %v4300_v9, %v2979_v48 }
 0x3ce   : > { %vm3034_vm4 = vcmp.ge.f32.partialorder %v3014_v1, 0.0  ;;  %vm3035_vm5 = vcmp.ge.f32.partialorder %v3015_v36, 0.0  ;;  %v3055_v56 = vmul.f32 %v5731_v8, %v3014_v1  ;;  %v3056_v6 = vmul.f32 %v5731_v8, %v3015_v36 }
 0x3cf   : > { %v5771_v39 = vmul.f32 %v4300_v9, %v2980_v58  ;;  %v5773_v54 = vmul.f32 %v4300_v9, %v2981_v29  ;;  %v5775_v7 = vmul.f32 %v4300_v9, %v2982_v11  ;;  %v6140_v61 = vsub.f32 %v5549_v53, %v5623_v28 }
 0x3d0   : > { %v3075_v22 = vsel %vm3034_vm4, %v3014_v1, %v3055_v56  ;;  %v3076_v48 = vsel %vm3035_vm5, %v3015_v36, %v3056_v6  ;;  %v6141_v31 = vsub.f32 %v5558_v20, %v5623_v28  ;;  %v3007_v58 = vmul.f32 %v4300_v9, %v6142_v4 }
 0x3d1   : > { %v5780_v18 = vmul.f32 %v4300_v9, %v6140_v61  ;;  %v3095_v29 = vmul.f32 %v3075_v22, %v6106_v25  ;;  %v3096_v11 = vmul.f32 %v3076_v48, %v6107_v40  ;;  %v3008_v53 = vmul.f32 %v4300_v9, %v6143_v12 }
 0x3d2   : > { %v3006_v5 = vmul.f32 %v4300_v9, %v6141_v31  ;;  %v6144_v1 = vsub.f32 %v5582_v30, %v5623_v28  ;;  %v6145_v20 = vsub.f32 %v5590_v49, %v5623_v28  ;;  %v3011_v4 = vmul.f32 %v4300_v9, %v6146_v42 }
 0x3d3   : > { %v6147_v25 = vsub.f32 %v5602_v16, %v5623_v28  ;;  %v3013_v12 = vmul.f32 %v4300_v9, %v6148_v23  ;;  %v3115_v6 = vadd.f32 %v3095_v29, %v838_v37  ;;  %v3116_v30 = vadd.f32 %v3096_v11, %v839_v24 }
 0x3d4   : > { %v3009_v36 = vmul.f32 %v4300_v9, %v6144_v1  ;;  %v3010_v56 = vmul.f32 %v4300_v9, %v6145_v20  ;;  %vm3016_vm6 = vcmp.ge.f32.partialorder %v5757_v41, 0.0  ;;  %vm3017_vm7 = vcmp.ge.f32.partialorder %v5759_v44, 0.0 }
 0x3d5   : > { %v3012_v40 = vmul.f32 %v4300_v9, %v6147_v25  ;;  %vm3018_vm8 = vcmp.ge.f32.partialorder %v5761_v27, 0.0  ;;  %vm3019_vm9 = vcmp.ge.f32.partialorder %v5763_v26, 0.0  ;;  %v3582_v49 = vpack.c.bf16 %v3116_v30, %v3115_v6 }
 0x3d6   : > { %vm3022_vm12 = vcmp.ge.f32.partialorder %v5771_v39, 0.0  ;;  %vm3023_vm13 = vcmp.ge.f32.partialorder %v5773_v54, 0.0  ;;  %vm3024_vm14 = vcmp.ge.f32.partialorder %v5775_v7, 0.0  ;;  %vm3025_vm15 = vcmp.ge.f32.partialorder %v5780_v18, 0.0 }
 0x3d7   : > { %vm3026_vm0 = vcmp.ge.f32.partialorder %v3006_v5, 0.0  ;;  %vm3027_vm1 = vcmp.ge.f32.partialorder %v3007_v58, 0.0  ;;  %vm3028_vm2 = vcmp.ge.f32.partialorder %v3008_v53, 0.0  ;;  %3592 = vst [vmem:[%s5820_s19 + $0x48] sm:$0xff] %v3582_v49   ;;  %vm3029_vm3 = vcmp.ge.f32.partialorder %v3009_v36, 0.0 }
 0x3d8   : > { %vm3030_vm4 = vcmp.ge.f32.partialorder %v3010_v56, 0.0  ;;  %vm3031_vm5 = vcmp.ge.f32.partialorder %v3011_v4, 0.0  ;;  %v3037_v46 = vmul.f32 %v5731_v8, %v5757_v41  ;;  %v3038_v16 = vmul.f32 %v5731_v8, %v5759_v44 }
 0x3d9   : > { %v3039_v13 = vmul.f32 %v5731_v8, %v5761_v27  ;;  %v3040_v28 = vmul.f32 %v5731_v8, %v5763_v26  ;;  %v3041_v37 = vmul.f32 %v5731_v8, %v5765_v43  ;;  %v3042_v24 = vmul.f32 %v5731_v8, %v5767_v63 }
 0x3da   : > { %v3043_v9 = vmul.f32 %v5731_v8, %v5771_v39  ;;  %v3044_v61 = vmul.f32 %v5731_v8, %v5773_v54  ;;  %v3045_v22 = vmul.f32 %v5731_v8, %v5775_v7  ;;  %v3046_v48 = vmul.f32 %v5731_v8, %v5780_v18 }
 0x3db   : > { %v3047_v31 = vmul.f32 %v5731_v8, %v3006_v5  ;;  %v3048_v29 = vmul.f32 %v5731_v8, %v3007_v58  ;;  %v3049_v11 = vmul.f32 %v5731_v8, %v3008_v53  ;;  %v3050_v1 = vmul.f32 %v5731_v8, %v3009_v36 }
 0x3dc   : > { %v3051_v20 = vmul.f32 %v5731_v8, %v3010_v56  ;;  %v3052_v42 = vmul.f32 %v5731_v8, %v3011_v4  ;;  %v3053_v25 = vmul.f32 %v5731_v8, %v3012_v40  ;;  %v3054_v23 = vmul.f32 %v5731_v8, %v3013_v12 }
 0x3dd   : > { %v3057_v6 = vsel %vm3016_vm6, %v5757_v41, %v3037_v46  ;;  %v3058_v30 = vsel %vm3017_vm7, %v5759_v44, %v3038_v16  ;;  %v3059_v49 = vsel %vm3018_vm8, %v5761_v27, %v3039_v13  ;;  %v3060_v50 = vsel %vm3019_vm9, %v5763_v26, %v3040_v28 }
 0x3de   : > { %vm6149_vm10 = vcmp.ge.f32.partialorder %v5765_v43, 0.0  ;;  %vm6150_vm11 = vcmp.ge.f32.partialorder %v5767_v63, 0.0  ;;  %v3063_v44 = vsel %vm3022_vm12, %v5771_v39, %v3043_v9  ;;  %v3064_v27 = vsel %vm3023_vm13, %v5773_v54, %v3044_v61  ;;  %v6154_v9 = vld [vmem:[#allocation34_spill] sm:$0xff]  ;;  %v6155_v61 = vld [vmem:[#allocation39_spill] sm:$0xff] }
 0x3df   : > { %v3061_v8 = vsel %vm6149_vm10, %v5765_v43, %v3041_v37  ;;  %v3062_v41 = vsel %vm6150_vm11, %v5767_v63, %v3042_v24  ;;  %v3065_v26 = vsel %vm3024_vm14, %v5775_v7, %v3045_v22  ;;  %v3066_v43 = vsel %vm3025_vm15, %v5780_v18, %v3046_v48  ;;  %v6153_v24 = vld [vmem:[#allocation37_spill] sm:$0xff] }
 0x3e0   : > { %v3067_v46 = vsel %vm3026_vm0, %v3006_v5, %v3047_v31  ;;  %v3068_v63 = vsel %vm3027_vm1, %v3007_v58, %v3048_v29  ;;  %v3069_v16 = vsel %vm3028_vm2, %v3008_v53, %v3049_v11  ;;  %v3070_v39 = vsel %vm3029_vm3, %v3009_v36, %v3050_v1 }
 0x3e1   : > { %v3071_v13 = vsel %vm3030_vm4, %v3010_v56, %v3051_v20  ;;  %v3072_v54 = vsel %vm3031_vm5, %v3011_v4, %v3052_v42  ;;  %vm6151_vm6 = vcmp.ge.f32.partialorder %v3012_v40, 0.0  ;;  %vm6152_vm7 = vcmp.ge.f32.partialorder %v3013_v12, 0.0 }
 0x3e2   : > { %v3073_v28 = vsel %vm6151_vm6, %v3012_v40, %v3053_v25  ;;  %v3074_v7 = vsel %vm6152_vm7, %v3013_v12, %v3054_v23  ;;  %v3077_v37 = vmul.f32 %v3057_v6, %v4858_v45  ;;  %v3078_v18 = vmul.f32 %v3058_v30, %v6153_v24  ;;  %v6160_v25 = vld [vmem:[#allocation53_spill] sm:$0xff]  ;;  %v6161_v6 = vld [vmem:[#allocation54_spill] sm:$0xff] }
 0x3e3   : > { %v3079_v5 = vmul.f32 %v3059_v49, %v6154_v9  ;;  %v3080_v58 = vmul.f32 %v3060_v50, %v6155_v61  ;;  %v3081_v53 = vmul.f32 %v3061_v8, %v4878_v55  ;;  %v3082_v36 = vmul.f32 %v3062_v41, %v4880_v57  ;;  %v6163_v30 = vld [vmem:[#allocation45_spill] sm:$0xff]  ;;  %v6164_v49 = vld [vmem:[#allocation55_spill] sm:$0xff]  ;;  %v6165_v8 = vld [vmem:[#allocation46_spill] sm:$0xff] }
 0x3e4   : > { %v3083_v56 = vmul.f32 %v3063_v44, %v4890_v62  ;;  %v3084_v4 = vmul.f32 %v3064_v27, %v4898_v2  ;;  %v3085_v40 = vmul.f32 %v3065_v26, %v4911_v10  ;;  %v3086_v12 = vmul.f32 %v3066_v43, %v4919_v17  ;;  %v6156_v10 = vld [vmem:[#allocation60_spill] sm:$0xff] }
 0x3e5   : > { %v3087_v45 = vmul.f32 %v3067_v46, %v6090_v3  ;;  %v3088_v22 = vmul.f32 %v3068_v63, %v6092_v51  ;;  %v3089_v48 = vmul.f32 %v3069_v16, %v6094_v32  ;;  %v3090_v50 = vmul.f32 %v3070_v39, %v6096_v35  ;;  %v6157_v17 = vld [vmem:[#allocation52_spill] sm:$0xff]  ;;  %v6158_v3 = vld [vmem:[#allocation42_spill] sm:$0xff]  ;;  %v6159_v51 = vld [vmem:[#allocation43_spill] sm:$0xff] }
 0x3e6   : > { %v3091_v55 = vmul.f32 %v3071_v13, %v6098_v38  ;;  %v3092_v57 = vmul.f32 %v3072_v54, %v6100_v33  ;;  %v3093_v62 = vmul.f32 %v3073_v28, %v6102_v19  ;;  %v3094_v2 = vmul.f32 %v3074_v7, %v6104_v0 }
 0x3e7   : > { %v3097_v31 = vadd.f32 %v3077_v37, %v6156_v10  ;;  %v3098_v29 = vadd.f32 %v3078_v18, %v6157_v17  ;;  %v3099_v11 = vadd.f32 %v3079_v5, %v6158_v3  ;;  %v3100_v1 = vadd.f32 %v3080_v58, %v6159_v51 }
 0x3e8   : > { %v3101_v32 = vadd.f32 %v3081_v53, %v5685_v14  ;;  %v3102_v35 = vadd.f32 %v3082_v36, %v5693_v21  ;;  %v3103_v38 = vadd.f32 %v3083_v56, %v5688_v60  ;;  %v3104_v33 = vadd.f32 %v3084_v4, %v5696_v59  ;;  %v6162_v21 = vld [vmem:[#allocation44_spill] sm:$0xff] }
 0x3e9   : > { %v3105_v19 = vadd.f32 %v3085_v40, %v5699_v52  ;;  %v3106_v0 = vadd.f32 %v3086_v12, %v5705_v15  ;;  %v3107_v20 = vadd.f32 %v3087_v45, %v5702_v47  ;;  %v3108_v42 = vadd.f32 %v3088_v22, %v5708_v34 }
 0x3ea   : > { %v3109_v23 = vadd.f32 %v3089_v48, %v6160_v25  ;;  %v3110_v14 = vadd.f32 %v3090_v50, %v6161_v6  ;;  %v3111_v60 = vadd.f32 %v3091_v55, %v6162_v21  ;;  %v3112_v59 = vadd.f32 %v3092_v57, %v6163_v30 }
 0x3eb   : > { %v3113_v52 = vadd.f32 %v3093_v62, %v6164_v49  ;;  %v3114_v15 = vadd.f32 %v3094_v2, %v6165_v8  ;;  %v3537_v47 = vpack.c.bf16 %v3098_v29, %v3097_v31  ;;  %v3542_v34 = vpack.c.bf16 %v3100_v1, %v3099_v11 }
 0x3ec   : > { %v3547_v41 = vpack.c.bf16 %v3102_v35, %v3101_v32  ;;  %v3552_v44 = vpack.c.bf16 %v3104_v33, %v3103_v38  ;;  %v3557_v27 = vpack.c.bf16 %v3106_v0, %v3105_v19  ;;  %v3562_v26 = vpack.c.bf16 %v3108_v42, %v3107_v20 }
 0x3ed   : > { %v3567_v43 = vpack.c.bf16 %v3110_v14, %v3109_v23  ;;  %3538 = vst [vmem:[%s5820_s19] sm:$0xff] %v3537_v47   ;;  %3584 = vst [vmem:[%s5820_s19 + $0x8] sm:$0xff] %v3542_v34   ;;  %v3572_v46 = vpack.c.bf16 %v3112_v59, %v3111_v60  ;;  %v3577_v63 = vpack.c.bf16 %v3114_v15, %v3113_v52 }
 0x3ee   : > { %3585 = vst [vmem:[%s5820_s19 + $0x10] sm:$0xff] %v3547_v41   ;;  %3586 = vst [vmem:[%s5820_s19 + $0x18] sm:$0xff] %v3552_v44  }
 0x3ef   : > { %3587 = vst [vmem:[%s5820_s19 + $0x20] sm:$0xff] %v3557_v27   ;;  %3588 = vst [vmem:[%s5820_s19 + $0x28] sm:$0xff] %v3562_v26  }
 0x3f0   : > { %3589 = vst [vmem:[%s5820_s19 + $0x30] sm:$0xff] %v3567_v43   ;;  %3590 = vst [vmem:[%s5820_s19 + $0x38] sm:$0xff] %v3572_v46  }
 0x3f1   : > { %3591 = vst [vmem:[%s5820_s19 + $0x40] sm:$0xff] %v3577_v63  }
 0x3f2   : > { %4436 = shalt.err (!%p4433_p8)
}
 0x3f3   : > { %s4437_s26 = scalar_lea.hbm %s5930_s3, 1280  ;;  %s4441_s22 = scalar_lea.hbm %s5993_s9, 2560 }
 0x3f4   : > { %p4438_p0 = scmp.ne.s32.totalorder %s5930_s3, %s4437_s26  ;;  %p4442_p7 = scmp.lt.s32.totalorder %s5930_s3, %s5993_s9 }
 0x3f5   : > { %p4443_p1 = scmp.lt.s32.totalorder %s4441_s22, %s4437_s26 }
 0x3f6   : > { %p4439_p11 = pnand %p4438_p0, %p6166_p13 }
 0x3f7   : > { %p4444_p12 = por %p4443_p1, %p4442_p7 }
 0x3f8   : > { %p4440_p5 = pneg %p4439_p11 }
 0x3fa   : > { %p4445_p9 = pnand %p4444_p12, %p4440_p5 }
 0x3fc   : > { %4448 = shalt.err (!%p4445_p9)
}
 0x3fd   : > { %s4512_s29 = smov 64   ;;  %s4513_s4 = smov 4  }
 0x3fe   : > { %4104 = dma.vmem_to_hbm [thread:$0]  (%p6166_p13), %s5935_s13, 1280, %s5930_s3, %s3218_s6, %s4512_s29, %s4512_s29, %s4513_s4  }
 0x3ff PF: > { %s3246_s21 = sand.u32 1, %s4487_s30   ;;  %p6167_p3 = scmp.ne.s32.totalorder %s6027_s16, 0 }
 0x400   : > { %p6168_p2 = scmp.ge.s32.totalorder %s4499_s12, 2  ;;  %s3247_s18 = scalar_lea.sflag [#allocation5], %s3246_s21 }
 0x402   : > { %p4124_p10 = pnand %p6168_p2, %p6167_p3 }
 0x404   : > { %p4125_p6 = pneg %p4124_p10 }
 0x406   : > { %4482 = dma.done.wait (%p4125_p6), %s3247_s18, 1280  }
 0x407   : > { %4484 = vsyncadd (%p4125_p6), %s3247_s18, 4294966016  ;;  %p25_p4 = scmp.ge.s32.totalorder %s4661_s24, 4   ;;  %s6169_s30 = smov %s4491_s10 }
 0x408   : > { %s6170_s10 = smov %s4495_s11  ;;  %s6171_s11 = smov %s4670_s20 }
 0x409   : > { %s6172_s12 = smov %s4661_s24  ;;  %27 = sbr.rel (!%p25_p4) target bundleno = 12 (0xc), region = 125 }
 0x40e   :  { %3252 = vsyncpa [#allocation4], 1 }
 0x40f   :  { %3254 = vsyncpa [#allocation4 + $0x1], 1 }
 0x410   :  { %3255 = vsyncpa [#allocation8], 1 }
 0x411   :  { %3256 = vsyncpa [#allocation11], 1 }
 0x412   :  { %3257 = vsyncpa [#allocation5], 1 }
 0x413   :  { %3259 = vsyncpa [#allocation5 + $0x1], 1 }
 0x414   :  { %3260 = vsyncpa [#allocation6], 1 }
 0x415   :  { %3262 = vsyncpa [#allocation6 + $0x1], 1 }

</bundles_post_ra>
